<compile_context>
chip_gen: v6e
topology: v6e:2x2x1
jax: 0.10.0
libtpu: 0.0.40
codegen_flags: <defaults>
</compile_context>

<pallas_src>
import jax
import jax.numpy as jnp
from jax.experimental import pallas as pl
from jax.experimental.pallas import tpu as pltpu

EPS = 1e-5


def _round_up(x, m):
    return (x + m - 1) // m * m


def _make_down_kernel(N, Dp, Hp, Wp, CIN, CMID, COUT):
    M2 = N * Dp * Hp                          # rows: (n, d, h)
    Dpad, Hpad = Dp + 2, Hp + 2
    LW1 = _round_up((Wp + 2) * CIN, 128)      # lane width of padded buffer (conv1)
    LW2 = _round_up((Wp + 2) * CMID, 128)     # lane width of padded buffer (conv2)

    def conv_bn_relu(src, pad_ref, patch_ref, wt_ref, g_ref, be_ref, p_ref, cin):
        """src: (N, Dp, Hp, Wp*cin).  Returns BN+ReLU output (M2, Wp*cout)."""
        LW = pad_ref.shape[-1]
        WC = Wp * cin
        # --- zero only the 1-voxel halo; the interior is fully overwritten ---
        pad_ref[:, 0:1, :, :] = jnp.zeros((N, 1, Hpad, LW), jnp.float32)
        pad_ref[:, Dp + 1:Dp + 2, :, :] = jnp.zeros((N, 1, Hpad, LW), jnp.float32)
        pad_ref[:, :, 0:1, :] = jnp.zeros((N, Dpad, 1, LW), jnp.float32)
        pad_ref[:, :, Hp + 1:Hp + 2, :] = jnp.zeros((N, Dpad, 1, LW), jnp.float32)
        pad_ref[:, :, :, 0:cin] = jnp.zeros((N, Dpad, Hpad, cin), jnp.float32)
        rem = LW - cin - WC
        if rem > 0:   # right W-halo + lane-alignment tail
            pad_ref[:, :, :, cin + WC:LW] = jnp.zeros((N, Dpad, Hpad, rem),
                                                      jnp.float32)
        # --- interior: rows (n, dpad, hpad), lanes (wpad, c) ---
        pad_ref[:, 1:1 + Dp, 1:1 + Hp, cin:cin + WC] = src
        # --- im2col over (kd, kh) only; kw lives in the Toeplitz weight.
        #     Each copy lands at a 128-aligned lane offset (full-lane store). ---
        t = 0
        for kd in range(3):
            for kh in range(3):
                slab = pad_ref[:, kd:kd + Dp, kh:kh + Hp, :]      # (N, Dp, Hp, LW)
                patch_ref[:, t * LW:(t + 1) * LW] = slab.reshape(M2, LW)
                t += 1
        # --- single MXU matmul per conv (default precision) ---
        acc = jnp.dot(patch_ref[...], wt_ref[...],
                      preferred_element_type=jnp.float32)         # (M2, Wp*cout)
        # --- BatchNorm (training-mode batch stats), single sum/sum-sq pass.
        #     acc @ P folds the w positions into per-channel sums already
        #     broadcast back onto the (w, c) lane layout. ---
        inv_cnt = 1.0 / float(M2 * Wp)
        mean = jnp.sum(jnp.dot(acc, p_ref[...],
                               preferred_element_type=jnp.float32),
                       axis=0, keepdims=True) * inv_cnt           # (1, Wp*cout)
        ex2 = jnp.sum(jnp.dot(acc * acc, p_ref[...],
                              preferred_element_type=jnp.float32),
                      axis=0, keepdims=True) * inv_cnt            # (1, Wp*cout)
        inv = jax.lax.rsqrt(ex2 - mean * mean + EPS)
        scale = g_ref[...] * inv                                  # gamma / sigma
        shift = be_ref[...] - mean * scale
        return jnp.maximum(acc * scale + shift, 0.0)              # fused BN + ReLU

    def kernel(xw_ref, wt1_ref, g1_ref, be1_ref, p1_ref,
               wt2_ref, g2_ref, be2_ref, p2_ref,
               o_ref, h1_ref):
        # MaxPool3d(2): elementwise max over the 8 pooling-window offsets,
        # already presented in the (rows=(n,d,h), lanes=(w,c)) conv layout.
        p = xw_ref[0]
        for t in range(1, 8):
            p = jnp.maximum(p, xw_ref[t])
        pooled = p.reshape(N, Dp, Hp, Wp * CIN)

        # Sequential run_scoped regions reuse the same VMEM offset, so peak
        # scratch is max(stage1, stage2) instead of their sum.
        def stage1(pad_ref, patch_ref):
            h1_ref[...] = conv_bn_relu(pooled, pad_ref, patch_ref,
                                       wt1_ref, g1_ref, be1_ref, p1_ref, CIN)

        pl.run_scoped(stage1,
                      pltpu.VMEM((N, Dpad, Hpad, LW1), jnp.float32),
                      pltpu.VMEM((M2, 9 * LW1), jnp.float32))

        def stage2(pad_ref, patch_ref):
            src = h1_ref[...].reshape(N, Dp, Hp, Wp * CMID)
            o_ref[...] = conv_bn_relu(src, pad_ref, patch_ref,
                                      wt2_ref, g2_ref, be2_ref, p2_ref, CMID)

        pl.run_scoped(stage2,
                      pltpu.VMEM((N, Dpad, Hpad, LW2), jnp.float32),
                      pltpu.VMEM((M2, 9 * LW2), jnp.float32))

    return kernel, LW1, LW2


def _toeplitz_weight(w, Wp, lane_width):
    """PyTorch conv weight (CO, CI, 3, 3, 3) -> block-Toeplitz (9*lane_width, Wp*CO).

    Row = (kd*3 + kh)*lane_width + wpad*CI + ci,  Col = w*CO + co,
    Entry = w[co, ci, kd, kh, wpad - w] if 0 <= wpad - w <= 2 else 0,
    so   patch_row . wt  ==  Conv3d(pad=1) output in (w, co) lane order.
    Rows >= (Wp+2)*CI per tap are zero (lane-alignment padding of the patch).
    """
    CO, CI = w.shape[0], w.shape[1]
    Wpad = Wp + 2
    kw = jnp.arange(Wpad)[:, None] - jnp.arange(Wp)[None, :]          # (Wpad, Wp)
    valid = ((kw >= 0) & (kw <= 2)).astype(w.dtype)
    wg = w[:, :, :, :, jnp.clip(kw, 0, 2)] * valid[None, None, None, None]
    wt = jnp.transpose(wg, (2, 3, 4, 1, 5, 0))                        # kd,kh,wpad,ci,w,co
    wt = wt.reshape(9, Wpad * CI, Wp * CO)
    wt = jnp.pad(wt, ((0, 0), (0, lane_width - Wpad * CI), (0, 0)))
    return wt.reshape(9 * lane_width, Wp * CO)


def _bn_fold_matrix(Wp, C):
    """(Wp*C, Wp*C) projector: P[i, j] = 1 iff i % C == j % C (same channel)."""
    return jnp.tile(jnp.eye(C, dtype=jnp.float32), (Wp, Wp))


@jax.jit
def down_forward(x_ncdhw, params):
    # Conv biases b1/b2 are intentionally NOT used: with training-mode BN the
    # per-channel bias is exactly cancelled by the batch-mean subtraction.
    w1, b1, g1, be1, w2, b2, g2, be2 = params
    N, CIN, D, H, W = x_ncdhw.shape
    CMID, COUT = w1.shape[0], w2.shape[0]
    Dp, Hp, Wp = D // 2, H // 2, W // 2
    M2 = N * Dp * Hp

    kernel, LW1, LW2 = _make_down_kernel(N, Dp, Hp, Wp, CIN, CMID, COUT)

    # One fused transpose: NCDHW -> (2x2x2 window offset, (n,d,h), (w,c)).
    xw = x_ncdhw.reshape(N, CIN, Dp, 2, Hp, 2, Wp, 2)
    xw = jnp.transpose(xw, (3, 5, 7, 0, 2, 4, 6, 1))
    xw = xw.reshape(8, M2, Wp * CIN)

    # Block-Toeplitz conv weights (kw folded in, rows zero-padded to 128-lane
    # segment boundaries) and BN fold/broadcast projectors + pre-tiled affine.
    wt1 = _toeplitz_weight(w1, Wp, LW1)                        # (9*LW1, Wp*CMID)
    wt2 = _toeplitz_weight(w2, Wp, LW2)                        # (9*LW2, Wp*COUT)
    p1 = _bn_fold_matrix(Wp, CMID)
    p2 = _bn_fold_matrix(Wp, COUT)
    g1_wc = jnp.tile(g1, Wp).reshape(1, Wp * CMID)
    be1_wc = jnp.tile(be1, Wp).reshape(1, Wp * CMID)
    g2_wc = jnp.tile(g2, Wp).reshape(1, Wp * COUT)
    be2_wc = jnp.tile(be2, Wp).reshape(1, Wp * COUT)

    out2d = pl.pallas_call(
        kernel,
        out_shape=jax.ShapeDtypeStruct((M2, Wp * COUT), jnp.float32),
        in_specs=[pl.BlockSpec(memory_space=pltpu.MemorySpace.VMEM)] * 9,
        out_specs=pl.BlockSpec(memory_space=pltpu.MemorySpace.VMEM),
        scratch_shapes=[pltpu.VMEM((M2, Wp * CMID), jnp.float32)],  # h1 activation
    )(xw, wt1, g1_wc, be1_wc, p1, wt2, g2_wc, be2_wc, p2)

    # (n,d,h) x (w,c)  ->  NCDHW
    out = out2d.reshape(N, Dp, Hp, Wp, COUT)
    return jnp.transpose(out, (0, 4, 1, 2, 3))


def ref_forward(x, params):
    """Pure-JAX reference matching PyTorch Down.forward (training-mode BN)."""
    w1, b1, g1, be1, w2, b2, g2, be2 = params
    p = jax.lax.reduce_window(x, -jnp.inf, jax.lax.max,
                              (1, 1, 2, 2, 2), (1, 1, 2, 2, 2), "VALID")

    def block(h, w, b, g, be):
        y = jax.lax.conv_general_dilated(
            h, w, window_strides=(1, 1, 1),
            padding=((1, 1), (1, 1), (1, 1)),
            dimension_numbers=("NCDHW", "OIDHW", "NCDHW"))
        y = y + b[None, :, None, None, None]   # bias (cancelled by BN below)
        mu = jnp.mean(y, axis=(0, 2, 3, 4), keepdims=True)
        var = jnp.mean((y - mu) ** 2, axis=(0, 2, 3, 4), keepdims=True)
        y = (y - mu) * jax.lax.rsqrt(var + EPS)
        y = y * g[None, :, None, None, None] + be[None, :, None, None, None]
        return jnp.maximum(y, 0.0)

    h = block(p, w1, b1, g1, be1)
    return block(h, w2, b2, g2, be2)


if __name__ == "__main__":
    key = jax.random.PRNGKey(0)
    N, CIN, D, H, W = 2, 4, 16, 16, 16
    COUT = 8  # Down(in_channels=4, out_channels=8)

    ks = jax.random.split(key, 9)
    x = jax.random.normal(ks[0], (N, CIN, D, H, W), jnp.float32)
    # Deterministic synthetic parameters (shapes from the module's __init__)
    w1 = 0.2 * jax.random.normal(ks[1], (COUT, CIN, 3, 3, 3), jnp.float32)
    b1 = 0.1 * jax.random.normal(ks[2], (COUT,), jnp.float32)
    g1 = 1.0 + 0.1 * jax.random.normal(ks[3], (COUT,), jnp.float32)
    be1 = 0.1 * jax.random.normal(ks[4], (COUT,), jnp.float32)
    w2 = 0.2 * jax.random.normal(ks[5], (COUT, COUT, 3, 3, 3), jnp.float32)
    b2 = 0.1 * jax.random.normal(ks[6], (COUT,), jnp.float32)
    g2 = 1.0 + 0.1 * jax.random.normal(ks[7], (COUT,), jnp.float32)
    be2 = 0.1 * jax.random.normal(ks[8], (COUT,), jnp.float32)
    params = (w1, b1, g1, be1, w2, b2, g2, be2)

    out = down_forward(x, params)
    out = jax.block_until_ready(out)

    ref = ref_forward(x, params)
    assert out.shape == (N, COUT, D // 2, H // 2, W // 2), out.shape
    err = float(jnp.max(jnp.abs(out - ref)))
    assert err < 2e-3, f"max abs diff too large: {err}"
    print("KERNEL_OK")
</pallas_src>

<mosaic_0001>
module attributes {stable_mosaic.version = 11 : i64} {
  func.func @kernel(%arg0: memref<8x128x32xf32, #tpu.memory_space<vmem>>, %arg1: memref<1152x64xf32, #tpu.memory_space<vmem>>, %arg2: memref<1x64xf32, #tpu.memory_space<vmem>>, %arg3: memref<1x64xf32, #tpu.memory_space<vmem>>, %arg4: memref<64x64xf32, #tpu.memory_space<vmem>>, %arg5: memref<1152x64xf32, #tpu.memory_space<vmem>>, %arg6: memref<1x64xf32, #tpu.memory_space<vmem>>, %arg7: memref<1x64xf32, #tpu.memory_space<vmem>>, %arg8: memref<64x64xf32, #tpu.memory_space<vmem>>, %arg9: memref<128x64xf32, #tpu.memory_space<vmem>>, %arg10: memref<128x64xf32, #tpu.memory_space<vmem>>) attributes {dimension_semantics = [], scalar_prefetch = 0 : i64, scratch_operands = 1 : i64, tpu.core_type = #tpu.core_type<tc>} {
    %c0 = arith.constant 0 : index
    %c0_0 = arith.constant 0 : index
    %c0_1 = arith.constant 0 : index
    %0 = vector.load %arg0[%c0, %c0_0, %c0_1] : memref<8x128x32xf32, #tpu.memory_space<vmem>>, vector<1x128x32xf32>
    %1 = vector.shape_cast %0 : vector<1x128x32xf32> to vector<128x32xf32>
    %c1 = arith.constant 1 : index
    %c0_2 = arith.constant 0 : index
    %c0_3 = arith.constant 0 : index
    %2 = vector.load %arg0[%c1, %c0_2, %c0_3] : memref<8x128x32xf32, #tpu.memory_space<vmem>>, vector<1x128x32xf32>
    %3 = vector.shape_cast %2 : vector<1x128x32xf32> to vector<128x32xf32>
    %4 = arith.maximumf %1, %3 : vector<128x32xf32>
    %c2 = arith.constant 2 : index
    %c0_4 = arith.constant 0 : index
    %c0_5 = arith.constant 0 : index
    %5 = vector.load %arg0[%c2, %c0_4, %c0_5] : memref<8x128x32xf32, #tpu.memory_space<vmem>>, vector<1x128x32xf32>
    %6 = vector.shape_cast %5 : vector<1x128x32xf32> to vector<128x32xf32>
    %7 = arith.maximumf %4, %6 : vector<128x32xf32>
    %c3 = arith.constant 3 : index
    %c0_6 = arith.constant 0 : index
    %c0_7 = arith.constant 0 : index
    %8 = vector.load %arg0[%c3, %c0_6, %c0_7] : memref<8x128x32xf32, #tpu.memory_space<vmem>>, vector<1x128x32xf32>
    %9 = vector.shape_cast %8 : vector<1x128x32xf32> to vector<128x32xf32>
    %10 = arith.maximumf %7, %9 : vector<128x32xf32>
    %c4 = arith.constant 4 : index
    %c0_8 = arith.constant 0 : index
    %c0_9 = arith.constant 0 : index
    %11 = vector.load %arg0[%c4, %c0_8, %c0_9] : memref<8x128x32xf32, #tpu.memory_space<vmem>>, vector<1x128x32xf32>
    %12 = vector.shape_cast %11 : vector<1x128x32xf32> to vector<128x32xf32>
    %13 = arith.maximumf %10, %12 : vector<128x32xf32>
    %c5 = arith.constant 5 : index
    %c0_10 = arith.constant 0 : index
    %c0_11 = arith.constant 0 : index
    %14 = vector.load %arg0[%c5, %c0_10, %c0_11] : memref<8x128x32xf32, #tpu.memory_space<vmem>>, vector<1x128x32xf32>
    %15 = vector.shape_cast %14 : vector<1x128x32xf32> to vector<128x32xf32>
    %16 = arith.maximumf %13, %15 : vector<128x32xf32>
    %c6 = arith.constant 6 : index
    %c0_12 = arith.constant 0 : index
    %c0_13 = arith.constant 0 : index
    %17 = vector.load %arg0[%c6, %c0_12, %c0_13] : memref<8x128x32xf32, #tpu.memory_space<vmem>>, vector<1x128x32xf32>
    %18 = vector.shape_cast %17 : vector<1x128x32xf32> to vector<128x32xf32>
    %19 = arith.maximumf %16, %18 : vector<128x32xf32>
    %c7 = arith.constant 7 : index
    %c0_14 = arith.constant 0 : index
    %c0_15 = arith.constant 0 : index
    %20 = vector.load %arg0[%c7, %c0_14, %c0_15] : memref<8x128x32xf32, #tpu.memory_space<vmem>>, vector<1x128x32xf32>
    %21 = vector.shape_cast %20 : vector<1x128x32xf32> to vector<128x32xf32>
    %22 = arith.maximumf %19, %21 : vector<128x32xf32>
    %23 = vector.shape_cast %22 : vector<128x32xf32> to vector<2x8x8x32xf32>
    "tpu.region"() ({
      %alloca = memref.alloca() : memref<2x10x10x128xf32, #tpu.memory_space<vmem>>
      %alloca_16 = memref.alloca() : memref<128x1152xf32, #tpu.memory_space<vmem>>
      %cst = arith.constant 0.000000e+00 : f32
      %24 = vector.broadcast %cst : f32 to vector<2x1x10x128xf32>
      %c0_17 = arith.constant 0 : index
      %c0_18 = arith.constant 0 : index
      %c0_19 = arith.constant 0 : index
      %c0_20 = arith.constant 0 : index
      %25 = vector.load %alloca[%c0_17, %c0_18, %c0_19, %c0_20] : memref<2x10x10x128xf32, #tpu.memory_space<vmem>>, vector<2x1x10x128xf32>
      tpu.vector_store %alloca[%c0_17, %c0_18, %c0_19, %c0_20], %24 {strides = array<i32>} : memref<2x10x10x128xf32, #tpu.memory_space<vmem>>, vector<2x1x10x128xf32>,
      %cst_21 = arith.constant 0.000000e+00 : f32
      %26 = vector.broadcast %cst_21 : f32 to vector<2x1x10x128xf32>
      %c0_22 = arith.constant 0 : index
      %c9 = arith.constant 9 : index
      %c0_23 = arith.constant 0 : index
      %c0_24 = arith.constant 0 : index
      %27 = vector.load %alloca[%c0_22, %c9, %c0_23, %c0_24] : memref<2x10x10x128xf32, #tpu.memory_space<vmem>>, vector<2x1x10x128xf32>
      tpu.vector_store %alloca[%c0_22, %c9, %c0_23, %c0_24], %26 {strides = array<i32>} : memref<2x10x10x128xf32, #tpu.memory_space<vmem>>, vector<2x1x10x128xf32>,
      %cst_25 = arith.constant 0.000000e+00 : f32
      %28 = vector.broadcast %cst_25 : f32 to vector<2x10x1x128xf32>
      %c0_26 = arith.constant 0 : index
      %c0_27 = arith.constant 0 : index
      %c0_28 = arith.constant 0 : index
      %c0_29 = arith.constant 0 : index
      %29 = vector.load %alloca[%c0_26, %c0_27, %c0_28, %c0_29] : memref<2x10x10x128xf32, #tpu.memory_space<vmem>>, vector<2x10x1x128xf32>
      tpu.vector_store %alloca[%c0_26, %c0_27, %c0_28, %c0_29], %28 {strides = array<i32>} : memref<2x10x10x128xf32, #tpu.memory_space<vmem>>, vector<2x10x1x128xf32>,
      %cst_30 = arith.constant 0.000000e+00 : f32
      %30 = vector.broadcast %cst_30 : f32 to vector<2x10x1x128xf32>
      %c0_31 = arith.constant 0 : index
      %c0_32 = arith.constant 0 : index
      %c9_33 = arith.constant 9 : index
      %c0_34 = arith.constant 0 : index
      %31 = vector.load %alloca[%c0_31, %c0_32, %c9_33, %c0_34] : memref<2x10x10x128xf32, #tpu.memory_space<vmem>>, vector<2x10x1x128xf32>
      tpu.vector_store %alloca[%c0_31, %c0_32, %c9_33, %c0_34], %30 {strides = array<i32>} : memref<2x10x10x128xf32, #tpu.memory_space<vmem>>, vector<2x10x1x128xf32>,
      %cst_35 = arith.constant 0.000000e+00 : f32
      %32 = vector.broadcast %cst_35 : f32 to vector<2x10x10x4xf32>
      %c0_36 = arith.constant 0 : index
      %c0_37 = arith.constant 0 : index
      %c0_38 = arith.constant 0 : index
      %c0_39 = arith.constant 0 : index
      %33 = vector.load %alloca[%c0_36, %c0_37, %c0_38, %c0_39] : memref<2x10x10x128xf32, #tpu.memory_space<vmem>>, vector<2x10x10x4xf32>
      tpu.vector_store %alloca[%c0_36, %c0_37, %c0_38, %c0_39], %32 {strides = array<i32>} : memref<2x10x10x128xf32, #tpu.memory_space<vmem>>, vector<2x10x10x4xf32>,
      %cst_40 = arith.constant 0.000000e+00 : f32
      %34 = vector.broadcast %cst_40 : f32 to vector<2x10x10x92xf32>
      %c0_41 = arith.constant 0 : index
      %c0_42 = arith.constant 0 : index
      %c0_43 = arith.constant 0 : index
      %c36 = arith.constant 36 : index
      %35 = vector.load %alloca[%c0_41, %c0_42, %c0_43, %c36] : memref<2x10x10x128xf32, #tpu.memory_space<vmem>>, vector<2x10x10x92xf32>
      tpu.vector_store %alloca[%c0_41, %c0_42, %c0_43, %c36], %34 {strides = array<i32>} : memref<2x10x10x128xf32, #tpu.memory_space<vmem>>, vector<2x10x10x92xf32>,
      %c0_44 = arith.constant 0 : index
      %c1_45 = arith.constant 1 : index
      %c1_46 = arith.constant 1 : index
      %c4_47 = arith.constant 4 : index
      %36 = vector.load %alloca[%c0_44, %c1_45, %c1_46, %c4_47] : memref<2x10x10x128xf32, #tpu.memory_space<vmem>>, vector<2x8x8x32xf32>
      tpu.vector_store %alloca[%c0_44, %c1_45, %c1_46, %c4_47], %23 {strides = array<i32>} : memref<2x10x10x128xf32, #tpu.memory_space<vmem>>, vector<2x8x8x32xf32>,
      %c0_48 = arith.constant 0 : index
      %c0_49 = arith.constant 0 : index
      %c0_50 = arith.constant 0 : index
      %c0_51 = arith.constant 0 : index
      %37 = vector.load %alloca[%c0_48, %c0_49, %c0_50, %c0_51] : memref<2x10x10x128xf32, #tpu.memory_space<vmem>>, vector<2x8x8x128xf32>
      %38 = vector.shape_cast %37 : vector<2x8x8x128xf32> to vector<128x128xf32>
      %c0_52 = arith.constant 0 : index
      %c0_53 = arith.constant 0 : index
      %39 = vector.load %alloca_16[%c0_52, %c0_53] : memref<128x1152xf32, #tpu.memory_space<vmem>>, vector<128x128xf32>
      tpu.vector_store %alloca_16[%c0_52, %c0_53], %38 {strides = array<i32>} : memref<128x1152xf32, #tpu.memory_space<vmem>>, vector<128x128xf32>,
      %c0_54 = arith.constant 0 : index
      %c0_55 = arith.constant 0 : index
      %c1_56 = arith.constant 1 : index
      %c0_57 = arith.constant 0 : index
      %40 = vector.load %alloca[%c0_54, %c0_55, %c1_56, %c0_57] : memref<2x10x10x128xf32, #tpu.memory_space<vmem>>, vector<2x8x8x128xf32>
      %41 = vector.shape_cast %40 : vector<2x8x8x128xf32> to vector<128x128xf32>
      %c0_58 = arith.constant 0 : index
      %c128 = arith.constant 128 : index
      %42 = vector.load %alloca_16[%c0_58, %c128] : memref<128x1152xf32, #tpu.memory_space<vmem>>, vector<128x128xf32>
      tpu.vector_store %alloca_16[%c0_58, %c128], %41 {strides = array<i32>} : memref<128x1152xf32, #tpu.memory_space<vmem>>, vector<128x128xf32>,
      %c0_59 = arith.constant 0 : index
      %c0_60 = arith.constant 0 : index
      %c2_61 = arith.constant 2 : index
      %c0_62 = arith.constant 0 : index
      %43 = vector.load %alloca[%c0_59, %c0_60, %c2_61, %c0_62] : memref<2x10x10x128xf32, #tpu.memory_space<vmem>>, vector<2x8x8x128xf32>
      %44 = vector.shape_cast %43 : vector<2x8x8x128xf32> to vector<128x128xf32>
      %c0_63 = arith.constant 0 : index
      %c256 = arith.constant 256 : index
      %45 = vector.load %alloca_16[%c0_63, %c256] : memref<128x1152xf32, #tpu.memory_space<vmem>>, vector<128x128xf32>
      tpu.vector_store %alloca_16[%c0_63, %c256], %44 {strides = array<i32>} : memref<128x1152xf32, #tpu.memory_space<vmem>>, vector<128x128xf32>,
      %c0_64 = arith.constant 0 : index
      %c1_65 = arith.constant 1 : index
      %c0_66 = arith.constant 0 : index
      %c0_67 = arith.constant 0 : index
      %46 = vector.load %alloca[%c0_64, %c1_65, %c0_66, %c0_67] : memref<2x10x10x128xf32, #tpu.memory_space<vmem>>, vector<2x8x8x128xf32>
      %47 = vector.shape_cast %46 : vector<2x8x8x128xf32> to vector<128x128xf32>
      %c0_68 = arith.constant 0 : index
      %c384 = arith.constant 384 : index
      %48 = vector.load %alloca_16[%c0_68, %c384] : memref<128x1152xf32, #tpu.memory_space<vmem>>, vector<128x128xf32>
      tpu.vector_store %alloca_16[%c0_68, %c384], %47 {strides = array<i32>} : memref<128x1152xf32, #tpu.memory_space<vmem>>, vector<128x128xf32>,
      %c0_69 = arith.constant 0 : index
      %c1_70 = arith.constant 1 : index
      %c1_71 = arith.constant 1 : index
      %c0_72 = arith.constant 0 : index
      %49 = vector.load %alloca[%c0_69, %c1_70, %c1_71, %c0_72] : memref<2x10x10x128xf32, #tpu.memory_space<vmem>>, vector<2x8x8x128xf32>
      %50 = vector.shape_cast %49 : vector<2x8x8x128xf32> to vector<128x128xf32>
      %c0_73 = arith.constant 0 : index
      %c512 = arith.constant 512 : index
      %51 = vector.load %alloca_16[%c0_73, %c512] : memref<128x1152xf32, #tpu.memory_space<vmem>>, vector<128x128xf32>
      tpu.vector_store %alloca_16[%c0_73, %c512], %50 {strides = array<i32>} : memref<128x1152xf32, #tpu.memory_space<vmem>>, vector<128x128xf32>,
      %c0_74 = arith.constant 0 : index
      %c1_75 = arith.constant 1 : index
      %c2_76 = arith.constant 2 : index
      %c0_77 = arith.constant 0 : index
      %52 = vector.load %alloca[%c0_74, %c1_75, %c2_76, %c0_77] : memref<2x10x10x128xf32, #tpu.memory_space<vmem>>, vector<2x8x8x128xf32>
      %53 = vector.shape_cast %52 : vector<2x8x8x128xf32> to vector<128x128xf32>
      %c0_78 = arith.constant 0 : index
      %c640 = arith.constant 640 : index
      %54 = vector.load %alloca_16[%c0_78, %c640] : memref<128x1152xf32, #tpu.memory_space<vmem>>, vector<128x128xf32>
      tpu.vector_store %alloca_16[%c0_78, %c640], %53 {strides = array<i32>} : memref<128x1152xf32, #tpu.memory_space<vmem>>, vector<128x128xf32>,
      %c0_79 = arith.constant 0 : index
      %c2_80 = arith.constant 2 : index
      %c0_81 = arith.constant 0 : index
      %c0_82 = arith.constant 0 : index
      %55 = vector.load %alloca[%c0_79, %c2_80, %c0_81, %c0_82] : memref<2x10x10x128xf32, #tpu.memory_space<vmem>>, vector<2x8x8x128xf32>
      %56 = vector.shape_cast %55 : vector<2x8x8x128xf32> to vector<128x128xf32>
      %c0_83 = arith.constant 0 : index
      %c768 = arith.constant 768 : index
      %57 = vector.load %alloca_16[%c0_83, %c768] : memref<128x1152xf32, #tpu.memory_space<vmem>>, vector<128x128xf32>
      tpu.vector_store %alloca_16[%c0_83, %c768], %56 {strides = array<i32>} : memref<128x1152xf32, #tpu.memory_space<vmem>>, vector<128x128xf32>,
      %c0_84 = arith.constant 0 : index
      %c2_85 = arith.constant 2 : index
      %c1_86 = arith.constant 1 : index
      %c0_87 = arith.constant 0 : index
      %58 = vector.load %alloca[%c0_84, %c2_85, %c1_86, %c0_87] : memref<2x10x10x128xf32, #tpu.memory_space<vmem>>, vector<2x8x8x128xf32>
      %59 = vector.shape_cast %58 : vector<2x8x8x128xf32> to vector<128x128xf32>
      %c0_88 = arith.constant 0 : index
      %c896 = arith.constant 896 : index
      %60 = vector.load %alloca_16[%c0_88, %c896] : memref<128x1152xf32, #tpu.memory_space<vmem>>, vector<128x128xf32>
      tpu.vector_store %alloca_16[%c0_88, %c896], %59 {strides = array<i32>} : memref<128x1152xf32, #tpu.memory_space<vmem>>, vector<128x128xf32>,
      %c0_89 = arith.constant 0 : index
      %c2_90 = arith.constant 2 : index
      %c2_91 = arith.constant 2 : index
      %c0_92 = arith.constant 0 : index
      %61 = vector.load %alloca[%c0_89, %c2_90, %c2_91, %c0_92] : memref<2x10x10x128xf32, #tpu.memory_space<vmem>>, vector<2x8x8x128xf32>
      %62 = vector.shape_cast %61 : vector<2x8x8x128xf32> to vector<128x128xf32>
      %c0_93 = arith.constant 0 : index
      %c1024 = arith.constant 1024 : index
      %63 = vector.load %alloca_16[%c0_93, %c1024] : memref<128x1152xf32, #tpu.memory_space<vmem>>, vector<128x128xf32>
      tpu.vector_store %alloca_16[%c0_93, %c1024], %62 {strides = array<i32>} : memref<128x1152xf32, #tpu.memory_space<vmem>>, vector<128x128xf32>,
      %c0_94 = arith.constant 0 : index
      %c0_95 = arith.constant 0 : index
      %64 = vector.load %alloca_16[%c0_94, %c0_95] : memref<128x1152xf32, #tpu.memory_space<vmem>>, vector<128x1152xf32>
      %c0_96 = arith.constant 0 : index
      %c0_97 = arith.constant 0 : index
      %65 = vector.load %arg1[%c0_96, %c0_97] : memref<1152x64xf32, #tpu.memory_space<vmem>>, vector<1152x64xf32>
      %cst_98 = arith.constant dense<0.000000e+00> : vector<128x64xf32>
      %66 = tpu.matmul %64, %65, %cst_98 {dimension_numbers = #tpu.dot_dimension_numbers<[1], [0], [0], [1], [0, 0, 1, 1], [], []>} : vector<128x1152xf32>, vector<1152x64xf32>, vector<128x64xf32> -> vector<128x64xf32>
      %c0_99 = arith.constant 0 : index
      %c0_100 = arith.constant 0 : index
      %67 = vector.load %arg4[%c0_99, %c0_100] : memref<64x64xf32, #tpu.memory_space<vmem>>, vector<64x64xf32>
      %cst_101 = arith.constant dense<0.000000e+00> : vector<128x64xf32>
      %68 = tpu.matmul %66, %67, %cst_101 {dimension_numbers = #tpu.dot_dimension_numbers<[1], [0], [0], [1], [0, 0, 1, 1], [], []>} : vector<128x64xf32>, vector<64x64xf32>, vector<128x64xf32> -> vector<128x64xf32>
      %cst_102 = arith.constant dense<0.000000e+00> : vector<64xf32>
      %69 = vector.multi_reduction <add>, %68, %cst_102 [0] : vector<128x64xf32> to vector<64xf32>
      %70 = vector.shape_cast %69 : vector<64xf32> to vector<1x64xf32>
      %cst_103 = arith.constant 9.765625E-4 : f32
      %71 = vector.broadcast %cst_103 : f32 to vector<1x64xf32>
      %72 = arith.mulf %70, %71 : vector<1x64xf32>
      %73 = arith.mulf %66, %66 : vector<128x64xf32>
      %c0_104 = arith.constant 0 : index
      %c0_105 = arith.constant 0 : index
      %74 = vector.load %arg4[%c0_104, %c0_105] : memref<64x64xf32, #tpu.memory_space<vmem>>, vector<64x64xf32>
      %cst_106 = arith.constant dense<0.000000e+00> : vector<128x64xf32>
      %75 = tpu.matmul %73, %74, %cst_106 {dimension_numbers = #tpu.dot_dimension_numbers<[1], [0], [0], [1], [0, 0, 1, 1], [], []>} : vector<128x64xf32>, vector<64x64xf32>, vector<128x64xf32> -> vector<128x64xf32>
      %cst_107 = arith.constant dense<0.000000e+00> : vector<64xf32>
      %76 = vector.multi_reduction <add>, %75, %cst_107 [0] : vector<128x64xf32> to vector<64xf32>
      %77 = vector.shape_cast %76 : vector<64xf32> to vector<1x64xf32>
      %cst_108 = arith.constant 9.765625E-4 : f32
      %78 = vector.broadcast %cst_108 : f32 to vector<1x64xf32>
      %79 = arith.mulf %77, %78 : vector<1x64xf32>
      %80 = arith.mulf %72, %72 : vector<1x64xf32>
      %81 = arith.subf %79, %80 : vector<1x64xf32>
      %cst_109 = arith.constant 9.99999974E-6 : f32
      %82 = vector.broadcast %cst_109 : f32 to vector<1x64xf32>
      %83 = arith.addf %81, %82 : vector<1x64xf32>
      %84 = math.rsqrt %83 : vector<1x64xf32>
      %c0_110 = arith.constant 0 : index
      %c0_111 = arith.constant 0 : index
      %85 = vector.load %arg2[%c0_110, %c0_111] : memref<1x64xf32, #tpu.memory_space<vmem>>, vector<1x64xf32>
      %86 = arith.mulf %85, %84 : vector<1x64xf32>
      %c0_112 = arith.constant 0 : index
      %c0_113 = arith.constant 0 : index
      %87 = vector.load %arg3[%c0_112, %c0_113] : memref<1x64xf32, #tpu.memory_space<vmem>>, vector<1x64xf32>
      %88 = arith.mulf %72, %86 : vector<1x64xf32>
      %89 = arith.subf %87, %88 : vector<1x64xf32>
      %90 = vector.broadcast %86 : vector<1x64xf32> to vector<128x64xf32>
      %91 = arith.mulf %66, %90 : vector<128x64xf32>
      %92 = vector.broadcast %89 : vector<1x64xf32> to vector<128x64xf32>
      %93 = arith.addf %91, %92 : vector<128x64xf32>
      %cst_114 = arith.constant 0.000000e+00 : f32
      %94 = vector.broadcast %cst_114 : f32 to vector<128x64xf32>
      %95 = arith.maximumf %93, %94 : vector<128x64xf32>
      %c0_115 = arith.constant 0 : index
      %c0_116 = arith.constant 0 : index
      %96 = vector.load %arg10[%c0_115, %c0_116] : memref<128x64xf32, #tpu.memory_space<vmem>>, vector<128x64xf32>
      tpu.vector_store %arg10[%c0_115, %c0_116], %95 {strides = array<i32>} : memref<128x64xf32, #tpu.memory_space<vmem>>, vector<128x64xf32>,
      tpu.yield
    }) : () -> ()
    "tpu.region"() ({
      %alloca = memref.alloca() : memref<2x10x10x128xf32, #tpu.memory_space<vmem>>
      %alloca_16 = memref.alloca() : memref<128x1152xf32, #tpu.memory_space<vmem>>
      %c0_17 = arith.constant 0 : index
      %c0_18 = arith.constant 0 : index
      %24 = vector.load %arg10[%c0_17, %c0_18] : memref<128x64xf32, #tpu.memory_space<vmem>>, vector<128x64xf32>
      %25 = vector.shape_cast %24 : vector<128x64xf32> to vector<2x8x8x64xf32>
      %cst = arith.constant 0.000000e+00 : f32
      %26 = vector.broadcast %cst : f32 to vector<2x1x10x128xf32>
      %c0_19 = arith.constant 0 : index
      %c0_20 = arith.constant 0 : index
      %c0_21 = arith.constant 0 : index
      %c0_22 = arith.constant 0 : index
      %27 = vector.load %alloca[%c0_19, %c0_20, %c0_21, %c0_22] : memref<2x10x10x128xf32, #tpu.memory_space<vmem>>, vector<2x1x10x128xf32>
      tpu.vector_store %alloca[%c0_19, %c0_20, %c0_21, %c0_22], %26 {strides = array<i32>} : memref<2x10x10x128xf32, #tpu.memory_space<vmem>>, vector<2x1x10x128xf32>,
      %cst_23 = arith.constant 0.000000e+00 : f32
      %28 = vector.broadcast %cst_23 : f32 to vector<2x1x10x128xf32>
      %c0_24 = arith.constant 0 : index
      %c9 = arith.constant 9 : index
      %c0_25 = arith.constant 0 : index
      %c0_26 = arith.constant 0 : index
      %29 = vector.load %alloca[%c0_24, %c9, %c0_25, %c0_26] : memref<2x10x10x128xf32, #tpu.memory_space<vmem>>, vector<2x1x10x128xf32>
      tpu.vector_store %alloca[%c0_24, %c9, %c0_25, %c0_26], %28 {strides = array<i32>} : memref<2x10x10x128xf32, #tpu.memory_space<vmem>>, vector<2x1x10x128xf32>,
      %cst_27 = arith.constant 0.000000e+00 : f32
      %30 = vector.broadcast %cst_27 : f32 to vector<2x10x1x128xf32>
      %c0_28 = arith.constant 0 : index
      %c0_29 = arith.constant 0 : index
      %c0_30 = arith.constant 0 : index
      %c0_31 = arith.constant 0 : index
      %31 = vector.load %alloca[%c0_28, %c0_29, %c0_30, %c0_31] : memref<2x10x10x128xf32, #tpu.memory_space<vmem>>, vector<2x10x1x128xf32>
      tpu.vector_store %alloca[%c0_28, %c0_29, %c0_30, %c0_31], %30 {strides = array<i32>} : memref<2x10x10x128xf32, #tpu.memory_space<vmem>>, vector<2x10x1x128xf32>,
      %cst_32 = arith.constant 0.000000e+00 : f32
      %32 = vector.broadcast %cst_32 : f32 to vector<2x10x1x128xf32>
      %c0_33 = arith.constant 0 : index
      %c0_34 = arith.constant 0 : index
      %c9_35 = arith.constant 9 : index
      %c0_36 = arith.constant 0 : index
      %33 = vector.load %alloca[%c0_33, %c0_34, %c9_35, %c0_36] : memref<2x10x10x128xf32, #tpu.memory_space<vmem>>, vector<2x10x1x128xf32>
      tpu.vector_store %alloca[%c0_33, %c0_34, %c9_35, %c0_36], %32 {strides = array<i32>} : memref<2x10x10x128xf32, #tpu.memory_space<vmem>>, vector<2x10x1x128xf32>,
      %cst_37 = arith.constant 0.000000e+00 : f32
      %34 = vector.broadcast %cst_37 : f32 to vector<2x10x10x8xf32>
      %c0_38 = arith.constant 0 : index
      %c0_39 = arith.constant 0 : index
      %c0_40 = arith.constant 0 : index
      %c0_41 = arith.constant 0 : index
      %35 = vector.load %alloca[%c0_38, %c0_39, %c0_40, %c0_41] : memref<2x10x10x128xf32, #tpu.memory_space<vmem>>, vector<2x10x10x8xf32>
      tpu.vector_store %alloca[%c0_38, %c0_39, %c0_40, %c0_41], %34 {strides = array<i32>} : memref<2x10x10x128xf32, #tpu.memory_space<vmem>>, vector<2x10x10x8xf32>,
      %cst_42 = arith.constant 0.000000e+00 : f32
      %36 = vector.broadcast %cst_42 : f32 to vector<2x10x10x56xf32>
      %c0_43 = arith.constant 0 : index
      %c0_44 = arith.constant 0 : index
      %c0_45 = arith.constant 0 : index
      %c72 = arith.constant 72 : index
      %37 = vector.load %alloca[%c0_43, %c0_44, %c0_45, %c72] : memref<2x10x10x128xf32, #tpu.memory_space<vmem>>, vector<2x10x10x56xf32>
      tpu.vector_store %alloca[%c0_43, %c0_44, %c0_45, %c72], %36 {strides = array<i32>} : memref<2x10x10x128xf32, #tpu.memory_space<vmem>>, vector<2x10x10x56xf32>,
      %c0_46 = arith.constant 0 : index
      %c1_47 = arith.constant 1 : index
      %c1_48 = arith.constant 1 : index
      %c8 = arith.constant 8 : index
      %38 = vector.load %alloca[%c0_46, %c1_47, %c1_48, %c8] : memref<2x10x10x128xf32, #tpu.memory_space<vmem>>, vector<2x8x8x64xf32>
      tpu.vector_store %alloca[%c0_46, %c1_47, %c1_48, %c8], %25 {strides = array<i32>} : memref<2x10x10x128xf32, #tpu.memory_space<vmem>>, vector<2x8x8x64xf32>,
      %c0_49 = arith.constant 0 : index
      %c0_50 = arith.constant 0 : index
      %c0_51 = arith.constant 0 : index
      %c0_52 = arith.constant 0 : index
      %39 = vector.load %alloca[%c0_49, %c0_50, %c0_51, %c0_52] : memref<2x10x10x128xf32, #tpu.memory_space<vmem>>, vector<2x8x8x128xf32>
      %40 = vector.shape_cast %39 : vector<2x8x8x128xf32> to vector<128x128xf32>
      %c0_53 = arith.constant 0 : index
      %c0_54 = arith.constant 0 : index
      %41 = vector.load %alloca_16[%c0_53, %c0_54] : memref<128x1152xf32, #tpu.memory_space<vmem>>, vector<128x128xf32>
      tpu.vector_store %alloca_16[%c0_53, %c0_54], %40 {strides = array<i32>} : memref<128x1152xf32, #tpu.memory_space<vmem>>, vector<128x128xf32>,
      %c0_55 = arith.constant 0 : index
      %c0_56 = arith.constant 0 : index
      %c1_57 = arith.constant 1 : index
      %c0_58 = arith.constant 0 : index
      %42 = vector.load %alloca[%c0_55, %c0_56, %c1_57, %c0_58] : memref<2x10x10x128xf32, #tpu.memory_space<vmem>>, vector<2x8x8x128xf32>
      %43 = vector.shape_cast %42 : vector<2x8x8x128xf32> to vector<128x128xf32>
      %c0_59 = arith.constant 0 : index
      %c128 = arith.constant 128 : index
      %44 = vector.load %alloca_16[%c0_59, %c128] : memref<128x1152xf32, #tpu.memory_space<vmem>>, vector<128x128xf32>
      tpu.vector_store %alloca_16[%c0_59, %c128], %43 {strides = array<i32>} : memref<128x1152xf32, #tpu.memory_space<vmem>>, vector<128x128xf32>,
      %c0_60 = arith.constant 0 : index
      %c0_61 = arith.constant 0 : index
      %c2_62 = arith.constant 2 : index
      %c0_63 = arith.constant 0 : index
      %45 = vector.load %alloca[%c0_60, %c0_61, %c2_62, %c0_63] : memref<2x10x10x128xf32, #tpu.memory_space<vmem>>, vector<2x8x8x128xf32>
      %46 = vector.shape_cast %45 : vector<2x8x8x128xf32> to vector<128x128xf32>
      %c0_64 = arith.constant 0 : index
      %c256 = arith.constant 256 : index
      %47 = vector.load %alloca_16[%c0_64, %c256] : memref<128x1152xf32, #tpu.memory_space<vmem>>, vector<128x128xf32>
      tpu.vector_store %alloca_16[%c0_64, %c256], %46 {strides = array<i32>} : memref<128x1152xf32, #tpu.memory_space<vmem>>, vector<128x128xf32>,
      %c0_65 = arith.constant 0 : index
      %c1_66 = arith.constant 1 : index
      %c0_67 = arith.constant 0 : index
      %c0_68 = arith.constant 0 : index
      %48 = vector.load %alloca[%c0_65, %c1_66, %c0_67, %c0_68] : memref<2x10x10x128xf32, #tpu.memory_space<vmem>>, vector<2x8x8x128xf32>
      %49 = vector.shape_cast %48 : vector<2x8x8x128xf32> to vector<128x128xf32>
      %c0_69 = arith.constant 0 : index
      %c384 = arith.constant 384 : index
      %50 = vector.load %alloca_16[%c0_69, %c384] : memref<128x1152xf32, #tpu.memory_space<vmem>>, vector<128x128xf32>
      tpu.vector_store %alloca_16[%c0_69, %c384], %49 {strides = array<i32>} : memref<128x1152xf32, #tpu.memory_space<vmem>>, vector<128x128xf32>,
      %c0_70 = arith.constant 0 : index
      %c1_71 = arith.constant 1 : index
      %c1_72 = arith.constant 1 : index
      %c0_73 = arith.constant 0 : index
      %51 = vector.load %alloca[%c0_70, %c1_71, %c1_72, %c0_73] : memref<2x10x10x128xf32, #tpu.memory_space<vmem>>, vector<2x8x8x128xf32>
      %52 = vector.shape_cast %51 : vector<2x8x8x128xf32> to vector<128x128xf32>
      %c0_74 = arith.constant 0 : index
      %c512 = arith.constant 512 : index
      %53 = vector.load %alloca_16[%c0_74, %c512] : memref<128x1152xf32, #tpu.memory_space<vmem>>, vector<128x128xf32>
      tpu.vector_store %alloca_16[%c0_74, %c512], %52 {strides = array<i32>} : memref<128x1152xf32, #tpu.memory_space<vmem>>, vector<128x128xf32>,
      %c0_75 = arith.constant 0 : index
      %c1_76 = arith.constant 1 : index
      %c2_77 = arith.constant 2 : index
      %c0_78 = arith.constant 0 : index
      %54 = vector.load %alloca[%c0_75, %c1_76, %c2_77, %c0_78] : memref<2x10x10x128xf32, #tpu.memory_space<vmem>>, vector<2x8x8x128xf32>
      %55 = vector.shape_cast %54 : vector<2x8x8x128xf32> to vector<128x128xf32>
      %c0_79 = arith.constant 0 : index
      %c640 = arith.constant 640 : index
      %56 = vector.load %alloca_16[%c0_79, %c640] : memref<128x1152xf32, #tpu.memory_space<vmem>>, vector<128x128xf32>
      tpu.vector_store %alloca_16[%c0_79, %c640], %55 {strides = array<i32>} : memref<128x1152xf32, #tpu.memory_space<vmem>>, vector<128x128xf32>,
      %c0_80 = arith.constant 0 : index
      %c2_81 = arith.constant 2 : index
      %c0_82 = arith.constant 0 : index
      %c0_83 = arith.constant 0 : index
      %57 = vector.load %alloca[%c0_80, %c2_81, %c0_82, %c0_83] : memref<2x10x10x128xf32, #tpu.memory_space<vmem>>, vector<2x8x8x128xf32>
      %58 = vector.shape_cast %57 : vector<2x8x8x128xf32> to vector<128x128xf32>
      %c0_84 = arith.constant 0 : index
      %c768 = arith.constant 768 : index
      %59 = vector.load %alloca_16[%c0_84, %c768] : memref<128x1152xf32, #tpu.memory_space<vmem>>, vector<128x128xf32>
      tpu.vector_store %alloca_16[%c0_84, %c768], %58 {strides = array<i32>} : memref<128x1152xf32, #tpu.memory_space<vmem>>, vector<128x128xf32>,
      %c0_85 = arith.constant 0 : index
      %c2_86 = arith.constant 2 : index
      %c1_87 = arith.constant 1 : index
      %c0_88 = arith.constant 0 : index
      %60 = vector.load %alloca[%c0_85, %c2_86, %c1_87, %c0_88] : memref<2x10x10x128xf32, #tpu.memory_space<vmem>>, vector<2x8x8x128xf32>
      %61 = vector.shape_cast %60 : vector<2x8x8x128xf32> to vector<128x128xf32>
      %c0_89 = arith.constant 0 : index
      %c896 = arith.constant 896 : index
      %62 = vector.load %alloca_16[%c0_89, %c896] : memref<128x1152xf32, #tpu.memory_space<vmem>>, vector<128x128xf32>
      tpu.vector_store %alloca_16[%c0_89, %c896], %61 {strides = array<i32>} : memref<128x1152xf32, #tpu.memory_space<vmem>>, vector<128x128xf32>,
      %c0_90 = arith.constant 0 : index
      %c2_91 = arith.constant 2 : index
      %c2_92 = arith.constant 2 : index
      %c0_93 = arith.constant 0 : index
      %63 = vector.load %alloca[%c0_90, %c2_91, %c2_92, %c0_93] : memref<2x10x10x128xf32, #tpu.memory_space<vmem>>, vector<2x8x8x128xf32>
      %64 = vector.shape_cast %63 : vector<2x8x8x128xf32> to vector<128x128xf32>
      %c0_94 = arith.constant 0 : index
      %c1024 = arith.constant 1024 : index
      %65 = vector.load %alloca_16[%c0_94, %c1024] : memref<128x1152xf32, #tpu.memory_space<vmem>>, vector<128x128xf32>
      tpu.vector_store %alloca_16[%c0_94, %c1024], %64 {strides = array<i32>} : memref<128x1152xf32, #tpu.memory_space<vmem>>, vector<128x128xf32>,
      %c0_95 = arith.constant 0 : index
      %c0_96 = arith.constant 0 : index
      %66 = vector.load %alloca_16[%c0_95, %c0_96] : memref<128x1152xf32, #tpu.memory_space<vmem>>, vector<128x1152xf32>
      %c0_97 = arith.constant 0 : index
      %c0_98 = arith.constant 0 : index
      %67 = vector.load %arg5[%c0_97, %c0_98] : memref<1152x64xf32, #tpu.memory_space<vmem>>, vector<1152x64xf32>
      %cst_99 = arith.constant dense<0.000000e+00> : vector<128x64xf32>
      %68 = tpu.matmul %66, %67, %cst_99 {dimension_numbers = #tpu.dot_dimension_numbers<[1], [0], [0], [1], [0, 0, 1, 1], [], []>} : vector<128x1152xf32>, vector<1152x64xf32>, vector<128x64xf32> -> vector<128x64xf32>
      %c0_100 = arith.constant 0 : index
      %c0_101 = arith.constant 0 : index
      %69 = vector.load %arg8[%c0_100, %c0_101] : memref<64x64xf32, #tpu.memory_space<vmem>>, vector<64x64xf32>
      %cst_102 = arith.constant dense<0.000000e+00> : vector<128x64xf32>
      %70 = tpu.matmul %68, %69, %cst_102 {dimension_numbers = #tpu.dot_dimension_numbers<[1], [0], [0], [1], [0, 0, 1, 1], [], []>} : vector<128x64xf32>, vector<64x64xf32>, vector<128x64xf32> -> vector<128x64xf32>
      %cst_103 = arith.constant dense<0.000000e+00> : vector<64xf32>
      %71 = vector.multi_reduction <add>, %70, %cst_103 [0] : vector<128x64xf32> to vector<64xf32>
      %72 = vector.shape_cast %71 : vector<64xf32> to vector<1x64xf32>
      %cst_104 = arith.constant 9.765625E-4 : f32
      %73 = vector.broadcast %cst_104 : f32 to vector<1x64xf32>
      %74 = arith.mulf %72, %73 : vector<1x64xf32>
      %75 = arith.mulf %68, %68 : vector<128x64xf32>
      %c0_105 = arith.constant 0 : index
      %c0_106 = arith.constant 0 : index
      %76 = vector.load %arg8[%c0_105, %c0_106] : memref<64x64xf32, #tpu.memory_space<vmem>>, vector<64x64xf32>
      %cst_107 = arith.constant dense<0.000000e+00> : vector<128x64xf32>
      %77 = tpu.matmul %75, %76, %cst_107 {dimension_numbers = #tpu.dot_dimension_numbers<[1], [0], [0], [1], [0, 0, 1, 1], [], []>} : vector<128x64xf32>, vector<64x64xf32>, vector<128x64xf32> -> vector<128x64xf32>
      %cst_108 = arith.constant dense<0.000000e+00> : vector<64xf32>
      %78 = vector.multi_reduction <add>, %77, %cst_108 [0] : vector<128x64xf32> to vector<64xf32>
      %79 = vector.shape_cast %78 : vector<64xf32> to vector<1x64xf32>
      %cst_109 = arith.constant 9.765625E-4 : f32
      %80 = vector.broadcast %cst_109 : f32 to vector<1x64xf32>
      %81 = arith.mulf %79, %80 : vector<1x64xf32>
      %82 = arith.mulf %74, %74 : vector<1x64xf32>
      %83 = arith.subf %81, %82 : vector<1x64xf32>
      %cst_110 = arith.constant 9.99999974E-6 : f32
      %84 = vector.broadcast %cst_110 : f32 to vector<1x64xf32>
      %85 = arith.addf %83, %84 : vector<1x64xf32>
      %86 = math.rsqrt %85 : vector<1x64xf32>
      %c0_111 = arith.constant 0 : index
      %c0_112 = arith.constant 0 : index
      %87 = vector.load %arg6[%c0_111, %c0_112] : memref<1x64xf32, #tpu.memory_space<vmem>>, vector<1x64xf32>
      %88 = arith.mulf %87, %86 : vector<1x64xf32>
      %c0_113 = arith.constant 0 : index
      %c0_114 = arith.constant 0 : index
      %89 = vector.load %arg7[%c0_113, %c0_114] : memref<1x64xf32, #tpu.memory_space<vmem>>, vector<1x64xf32>
      %90 = arith.mulf %74, %88 : vector<1x64xf32>
      %91 = arith.subf %89, %90 : vector<1x64xf32>
      %92 = vector.broadcast %88 : vector<1x64xf32> to vector<128x64xf32>
      %93 = arith.mulf %68, %92 : vector<128x64xf32>
      %94 = vector.broadcast %91 : vector<1x64xf32> to vector<128x64xf32>
      %95 = arith.addf %93, %94 : vector<128x64xf32>
      %cst_115 = arith.constant 0.000000e+00 : f32
      %96 = vector.broadcast %cst_115 : f32 to vector<128x64xf32>
      %97 = arith.maximumf %95, %96 : vector<128x64xf32>
      %c0_116 = arith.constant 0 : index
      %c0_117 = arith.constant 0 : index
      %98 = vector.load %arg9[%c0_116, %c0_117] : memref<128x64xf32, #tpu.memory_space<vmem>>, vector<128x64xf32>
      tpu.vector_store %arg9[%c0_116, %c0_117], %97 {strides = array<i32>} : memref<128x64xf32, #tpu.memory_space<vmem>>, vector<128x64xf32>,
      tpu.yield
    }) : () -> ()
    return
  }
}

</mosaic_0001>

<bundles_post_ra>
// kernel: tile.43
= control target key start
LH: loop header
LB: loop body
LE: loop exit
PB: predicated region body
PF: predicated region fallthrough
CT: control target
= control target key end

     0   :  { %s22_s0 = inlined_call_operand.vmem [shape: f32[8], index: 0, kind: input, shape index: {}]   ;;  %s23_s1 = inlined_call_operand.vmem [shape: f32[8,8], index: 1, kind: output, shape index: {}]  }
   0x1   :  { %v4_v0 = vld [vmem:[%s22_s0] ss:$0 sm:$0xff] }
   0x2   :  { %5 = vst [vmem:[%s23_s1] sm:$0xff] %v4_v0 }

// kernel: tile.44
= control target key start
LH: loop header
LB: loop body
LE: loop exit
PB: predicated region body
PF: predicated region fallthrough
CT: control target
= control target key end

     0   :  { %s69_s10 = smov 56   ;;  %s70_s11 = smov 40   ;;  %vm3_vm0 = vcmask 64512   ;;  %vm9_vm1 = vcmask 523712   ;;  %vm15_vm2 = vcmask 458112   ;;  %vm21_vm3 = vcmask 392512   ;;  %s113_s0 = inlined_call_operand.vmem [shape: f32[8,8], index: 0, kind: input, shape index: {}]   ;;  %s114_s1 = inlined_call_operand.vmem [shape: f32[1,64], index: 1, kind: output, shape index: {}]  }
   0x1   :  { %v55_v0 = vld [vmem:[%s113_s0 + $0x7] sm:$0x1]   ;;  %v57_v1 = vld [vmem:[%s113_s0 + $0x5] sm:$0x1]   ;;  %v56_v2 = vld [vmem:[%s113_s0 + $0x6] sm:$0x1]  }
   0x2   :  { %7 = vrot.lane.b32.xlu0 %v55_v0, %s69_s10  ;;  %19 = vrot.lane.b32.xlu1 %v57_v1, %s70_s11  ;;  %v58_v3 = vld [vmem:[%s113_s0 + $0x4] sm:$0x1]   ;;  %v2_v4 = vld [vmem:[%s113_s0] sm:$0x1]   ;;  %s71_s18 = smov 48   ;;  %s72_s19 = smov 32  }
   0x3   :  { %4 = vst.msk [vmem:[#allocation0] sm:$0x1] %vm3_vm0, %v2_v4   ;;  %v59_v5 = vld [vmem:[%s113_s0 + $0x3] sm:$0x1]   ;;  %v60_v6 = vld [vmem:[%s113_s0 + $0x2] sm:$0x1]  }
   0x4   :  { %s73_s24 = smov 24   ;;  %s74_s25 = smov 16   ;;  %v61_v7 = vld [vmem:[%s113_s0 + $0x1] sm:$0x1]   ;;  %vm27_vm4 = vcmask 326912   ;;  %vm33_vm5 = vcmask 261312  }
   0x5   :  { %s75_s0 = smov 8   ;;  %vm39_vm6 = vcmask 195712   ;;  %vm45_vm7 = vcmask 130112  }
   0x6   :  { %13 = vrot.lane.b32.xlu0 %v56_v2, %s71_s18  ;;  %25 = vrot.lane.b32.xlu1 %v58_v3, %s72_s19 }
   0xa   :  { %31 = vrot.lane.b32.xlu0 %v59_v5, %s73_s24  ;;  %37 = vrot.lane.b32.xlu1 %v60_v6, %s74_s25 }
   0xe   :  { %43 = vrot.lane.b32.xlu0 %v61_v7, %s75_s0 }
  0x74   :  { %v8_v8 = vpop.permute.xlu0 %7   ;;  %v20_v9 = vpop.permute.xlu1 %19  }
  0x75   :  { %10 = vst.msk [vmem:[#allocation0] sm:$0x1] %vm9_vm1, %v8_v8  }
  0x78   :  { %v14_v10 = vpop.permute.xlu0 %13   ;;  %v26_v11 = vpop.permute.xlu1 %25  }
  0x79   :  { %16 = vst.msk [vmem:[#allocation0] sm:$0x1] %vm15_vm2, %v14_v10  }
  0x7a   :  { %22 = vst.msk [vmem:[#allocation0] sm:$0x1] %vm21_vm3, %v20_v9  }
  0x7b   :  { %28 = vst.msk [vmem:[#allocation0] sm:$0x1] %vm27_vm4, %v26_v11  }
  0x7c   :  { %v32_v12 = vpop.permute.xlu0 %31   ;;  %v38_v13 = vpop.permute.xlu1 %37  }
  0x7d   :  { %34 = vst.msk [vmem:[#allocation0] sm:$0x1] %vm33_vm5, %v32_v12  }
  0x7e   :  { %40 = vst.msk [vmem:[#allocation0] sm:$0x1] %vm39_vm6, %v38_v13  }
  0x80   :  { %v44_v14 = vpop.permute.xlu0 %43  }
  0x81   :  { %46 = vst.msk [vmem:[#allocation0] sm:$0x1] %vm45_vm7, %v44_v14  }
  0x88   :  { %v51_v15 = vld [vmem:[#allocation0] sm:$0x1] }
  0x89   :  { %54 = vst [vmem:[%s114_s1] sm:$0x1] %v51_v15 }

// kernel: tile.34
= control target key start
LH: loop header
LB: loop body
LE: loop exit
PB: predicated region body
PF: predicated region fallthrough
CT: control target
= control target key end

     0   :  { %vm4_vm0 = vcmask 1047556   ;;  %s869_s14 = smov 56   ;;  %s870_s26 = smov 48   ;;  %vm6_vm1 = vcmask 64512   ;;  %vm79_vm2 = vcmask 523712   ;;  %vm166_vm3 = vcmask 458112   ;;  %s1606_s0 = inlined_call_operand.vmem [shape: f32[8,8,8,8], index: 0, kind: input, shape index: {}]   ;;  %s1607_s1 = inlined_call_operand.vmem [shape: f32[64,64], index: 1, kind: output, shape index: {}]  }
   0x1   :  { %v706_v0 = vld [vmem:[%s1606_s0 + $0x47] ss:$8 sm:$0xf]   ;;  %v726_v24 = vld [vmem:[%s1606_s0 + $0x106] ss:$8 sm:$0xf]  }
   0x2   :  { %v707_v1 = vld [vmem:[%s1606_s0 + $0x47] ss:$8 sm:$0xf0]   ;;  %v727_v25 = vld [vmem:[%s1606_s0 + $0x106] ss:$8 sm:$0xf0]  }
   0x3   :  { %v97_v2 = vsel %vm4_vm0, %v707_v1, %v706_v0  ;;  %v701_v3 = vld [vmem:[%s1606_s0 + $0x7] ss:$8 sm:$0xf]   ;;  %v724_v26 = vld [vmem:[%s1606_s0 + $0x6] ss:$8 sm:$0xf]   ;;  %v173_v28 = vsel %vm4_vm0, %v727_v25, %v726_v24 }
   0x4   :  { %v702_v4 = vld [vmem:[%s1606_s0 + $0x7] ss:$8 sm:$0xf0]   ;;  %98 = vrot.lane.b32.xlu1 %v97_v2, %s869_s14  ;;  %v725_v27 = vld [vmem:[%s1606_s0 + $0x6] ss:$8 sm:$0xf0]  }
   0x5   :  { %v76_v5 = vsel %vm4_vm0, %v702_v4, %v701_v3  ;;  %v709_v6 = vld [vmem:[%s1606_s0 + $0x147] ss:$8 sm:$0xf]   ;;  %v163_v29 = vsel %vm4_vm0, %v725_v27, %v724_v26  ;;  %v732_v30 = vld [vmem:[%s1606_s0 + $0x146] ss:$8 sm:$0xf]  }
   0x6   :  { %v710_v7 = vld [vmem:[%s1606_s0 + $0x147] ss:$8 sm:$0xf0]   ;;  %77 = vrot.lane.b32.xlu0 %v76_v5, %s869_s14  ;;  %v733_v31 = vld [vmem:[%s1606_s0 + $0x146] ss:$8 sm:$0xf0]  }
   0x7   :  { %v108_v8 = vsel %vm4_vm0, %v710_v7, %v709_v6  ;;  %v703_v9 = vld [vmem:[%s1606_s0 + $0x107] ss:$8 sm:$0xf]   ;;  %v729_v32 = vld [vmem:[%s1606_s0 + $0x46] ss:$8 sm:$0xf]   ;;  %v195_v34 = vsel %vm4_vm0, %v733_v31, %v732_v30 }
   0x8   :  { %v704_v10 = vld [vmem:[%s1606_s0 + $0x107] ss:$8 sm:$0xf0]   ;;  %109 = vrot.lane.b32.xlu1 %v108_v8, %s869_s14  ;;  %v730_v33 = vld [vmem:[%s1606_s0 + $0x46] ss:$8 sm:$0xf0]  }
   0x9   :  { %v86_v11 = vsel %vm4_vm0, %v704_v10, %v703_v9  ;;  %v715_v12 = vld [vmem:[%s1606_s0 + $0x187] ss:$8 sm:$0xf]   ;;  %v184_v35 = vsel %vm4_vm0, %v730_v33, %v729_v32  ;;  %v738_v36 = vld [vmem:[%s1606_s0 + $0x186] ss:$8 sm:$0xf]  }
   0xa   :  { %v716_v13 = vld [vmem:[%s1606_s0 + $0x187] ss:$8 sm:$0xf0]   ;;  %87 = vrot.lane.b32.xlu0 %v86_v11, %s869_s14  ;;  %v739_v37 = vld [vmem:[%s1606_s0 + $0x186] ss:$8 sm:$0xf0]  }
   0xb   :  { %v712_v14 = vld [vmem:[%s1606_s0 + $0x87] ss:$8 sm:$0xf]   ;;  %v130_v16 = vsel %vm4_vm0, %v716_v13, %v715_v12  ;;  %v735_v38 = vld [vmem:[%s1606_s0 + $0x86] ss:$8 sm:$0xf]   ;;  %v217_v40 = vsel %vm4_vm0, %v739_v37, %v738_v36 }
   0xc   :  { %v713_v15 = vld [vmem:[%s1606_s0 + $0x87] ss:$8 sm:$0xf0]   ;;  %131 = vrot.lane.b32.xlu1 %v130_v16, %s869_s14  ;;  %v736_v39 = vld [vmem:[%s1606_s0 + $0x86] ss:$8 sm:$0xf0]  }
   0xd   :  { %v119_v17 = vsel %vm4_vm0, %v713_v15, %v712_v14  ;;  %v721_v18 = vld [vmem:[%s1606_s0 + $0x1c7] ss:$8 sm:$0xf]   ;;  %v206_v41 = vsel %vm4_vm0, %v736_v39, %v735_v38  ;;  %v744_v42 = vld [vmem:[%s1606_s0 + $0x1c6] ss:$8 sm:$0xf]  }
   0xe   :  { %v722_v19 = vld [vmem:[%s1606_s0 + $0x1c7] ss:$8 sm:$0xf0]   ;;  %120 = vrot.lane.b32.xlu0 %v119_v17, %s869_s14  ;;  %v745_v43 = vld [vmem:[%s1606_s0 + $0x1c6] ss:$8 sm:$0xf0]  }
   0xf   :  { %v718_v20 = vld [vmem:[%s1606_s0 + $0xc7] ss:$8 sm:$0xf]   ;;  %v152_v22 = vsel %vm4_vm0, %v722_v19, %v721_v18  ;;  %v741_v44 = vld [vmem:[%s1606_s0 + $0xc6] ss:$8 sm:$0xf]   ;;  %v239_v46 = vsel %vm4_vm0, %v745_v43, %v744_v42 }
  0x10   :  { %v719_v21 = vld [vmem:[%s1606_s0 + $0xc7] ss:$8 sm:$0xf0]   ;;  %153 = vrot.lane.b32.xlu1 %v152_v22, %s869_s14  ;;  %v742_v45 = vld [vmem:[%s1606_s0 + $0xc6] ss:$8 sm:$0xf0]  }
  0x11   :  { %v141_v23 = vsel %vm4_vm0, %v719_v21, %v718_v20  ;;  %v228_v47 = vsel %vm4_vm0, %v742_v45, %v741_v44  ;;  %v749_v48 = vld [vmem:[%s1606_s0 + $0x105] ss:$8 sm:$0xf]   ;;  %s871_s30 = smov 40   ;;  %s872_s5 = smov 32   ;;  %vm253_vm4 = vcmask 392512  }
  0x12   :  { %142 = vrot.lane.b32.xlu0 %v141_v23, %s869_s14  ;;  %v750_v49 = vld [vmem:[%s1606_s0 + $0x105] ss:$8 sm:$0xf0]   ;;  %v772_v8 = vld [vmem:[%s1606_s0 + $0x104] ss:$8 sm:$0xf]  }
  0x13   :  { %v747_v50 = vld [vmem:[%s1606_s0 + $0x5] ss:$8 sm:$0xf]   ;;  %v260_v52 = vsel %vm4_vm0, %v750_v49, %v749_v48  ;;  %v773_v9 = vld [vmem:[%s1606_s0 + $0x104] ss:$8 sm:$0xf0]  }
  0x14   :  { %174 = vrot.lane.b32.xlu1 %v173_v28, %s870_s26  ;;  %v748_v51 = vld [vmem:[%s1606_s0 + $0x5] ss:$8 sm:$0xf0]   ;;  %v770_v10 = vld [vmem:[%s1606_s0 + $0x4] ss:$8 sm:$0xf]   ;;  %v347_v12 = vsel %vm4_vm0, %v773_v9, %v772_v8 }
  0x15   :  { %v250_v53 = vsel %vm4_vm0, %v748_v51, %v747_v50  ;;  %v755_v54 = vld [vmem:[%s1606_s0 + $0x145] ss:$8 sm:$0xf]   ;;  %v771_v11 = vld [vmem:[%s1606_s0 + $0x4] ss:$8 sm:$0xf0]  }
  0x16   :  { %164 = vrot.lane.b32.xlu0 %v163_v29, %s870_s26  ;;  %v756_v55 = vld [vmem:[%s1606_s0 + $0x145] ss:$8 sm:$0xf0]   ;;  %v337_v13 = vsel %vm4_vm0, %v771_v11, %v770_v10  ;;  %v778_v14 = vld [vmem:[%s1606_s0 + $0x144] ss:$8 sm:$0xf]  }
  0x17   :  { %v752_v56 = vld [vmem:[%s1606_s0 + $0x45] ss:$8 sm:$0xf]   ;;  %v282_v58 = vsel %vm4_vm0, %v756_v55, %v755_v54  ;;  %v779_v15 = vld [vmem:[%s1606_s0 + $0x144] ss:$8 sm:$0xf0]  }
  0x18   :  { %196 = vrot.lane.b32.xlu1 %v195_v34, %s870_s26  ;;  %v753_v57 = vld [vmem:[%s1606_s0 + $0x45] ss:$8 sm:$0xf0]   ;;  %v775_v16 = vld [vmem:[%s1606_s0 + $0x44] ss:$8 sm:$0xf]   ;;  %v369_v18 = vsel %vm4_vm0, %v779_v15, %v778_v14 }
  0x19   :  { %v271_v59 = vsel %vm4_vm0, %v753_v57, %v752_v56  ;;  %v761_v60 = vld [vmem:[%s1606_s0 + $0x185] ss:$8 sm:$0xf]   ;;  %v776_v17 = vld [vmem:[%s1606_s0 + $0x44] ss:$8 sm:$0xf0]  }
  0x1a   :  { %185 = vrot.lane.b32.xlu0 %v184_v35, %s870_s26  ;;  %v762_v61 = vld [vmem:[%s1606_s0 + $0x185] ss:$8 sm:$0xf0]   ;;  %v358_v19 = vsel %vm4_vm0, %v776_v17, %v775_v16  ;;  %v784_v20 = vld [vmem:[%s1606_s0 + $0x184] ss:$8 sm:$0xf]  }
  0x1b   :  { %v758_v62 = vld [vmem:[%s1606_s0 + $0x85] ss:$8 sm:$0xf]   ;;  %v304_v0 = vsel %vm4_vm0, %v762_v61, %v761_v60  ;;  %v785_v21 = vld [vmem:[%s1606_s0 + $0x184] ss:$8 sm:$0xf0]  }
  0x1c   :  { %218 = vrot.lane.b32.xlu1 %v217_v40, %s870_s26  ;;  %v759_v63 = vld [vmem:[%s1606_s0 + $0x85] ss:$8 sm:$0xf0]   ;;  %v781_v22 = vld [vmem:[%s1606_s0 + $0x84] ss:$8 sm:$0xf]   ;;  %v391_v24 = vsel %vm4_vm0, %v785_v21, %v784_v20 }
  0x1d   :  { %v293_v1 = vsel %vm4_vm0, %v759_v63, %v758_v62  ;;  %v767_v2 = vld [vmem:[%s1606_s0 + $0x1c5] ss:$8 sm:$0xf]   ;;  %v782_v23 = vld [vmem:[%s1606_s0 + $0x84] ss:$8 sm:$0xf0]  }
  0x1e   :  { %207 = vrot.lane.b32.xlu0 %v206_v41, %s870_s26  ;;  %v768_v3 = vld [vmem:[%s1606_s0 + $0x1c5] ss:$8 sm:$0xf0]   ;;  %v790_v25 = vld [vmem:[%s1606_s0 + $0x1c4] ss:$8 sm:$0xf]   ;;  %v380_v27 = vsel %vm4_vm0, %v782_v23, %v781_v22 }
  0x1f   :  { %v764_v4 = vld [vmem:[%s1606_s0 + $0xc5] ss:$8 sm:$0xf]   ;;  %v326_v6 = vsel %vm4_vm0, %v768_v3, %v767_v2  ;;  %v791_v26 = vld [vmem:[%s1606_s0 + $0x1c4] ss:$8 sm:$0xf0]  }
  0x20   :  { %240 = vrot.lane.b32.xlu1 %v239_v46, %s870_s26  ;;  %v765_v5 = vld [vmem:[%s1606_s0 + $0xc5] ss:$8 sm:$0xf0]   ;;  %v787_v28 = vld [vmem:[%s1606_s0 + $0xc4] ss:$8 sm:$0xf]   ;;  %v413_v35 = vsel %vm4_vm0, %v791_v26, %v790_v25 }
  0x21   :  { %v315_v7 = vsel %vm4_vm0, %v765_v5, %v764_v4  ;;  %v788_v29 = vld [vmem:[%s1606_s0 + $0xc4] ss:$8 sm:$0xf0]   ;;  %v680_v30 = vld [vmem:[%s1606_s0 + $0x40] ss:$8 sm:$0xf]  }
  0x22   :  { %229 = vrot.lane.b32.xlu0 %v228_v47, %s870_s26  ;;  %v795_v31 = vld [vmem:[%s1606_s0 + $0x103] ss:$8 sm:$0xf]   ;;  %v681_v33 = vld [vmem:[%s1606_s0 + $0x40] ss:$8 sm:$0xf0]   ;;  %v402_v41 = vsel %vm4_vm0, %v788_v29, %v787_v28 }
  0x23   :  { %v796_v32 = vld [vmem:[%s1606_s0 + $0x103] ss:$8 sm:$0xf0]   ;;  %v2_v34 = vld [vmem:[%s1606_s0] ss:$8 sm:$0xf]   ;;  %v13_v38 = vsel %vm4_vm0, %v681_v33, %v680_v30 }
  0x24   :  { %261 = vrot.lane.b32.xlu1 %v260_v52, %s871_s30  ;;  %v793_v36 = vld [vmem:[%s1606_s0 + $0x3] ss:$8 sm:$0xf]   ;;  %v3_v39 = vld [vmem:[%s1606_s0] ss:$8 sm:$0xf0]  }
  0x25   :  { %v794_v37 = vld [vmem:[%s1606_s0 + $0x3] ss:$8 sm:$0xf0]   ;;  %v692_v40 = vld [vmem:[%s1606_s0 + $0x140] ss:$8 sm:$0xf]   ;;  %v5_v42 = vsel %vm4_vm0, %v3_v39, %v2_v34 }
  0x26   :  { %251 = vrot.lane.b32.xlu0 %v250_v53, %s871_s30  ;;  %682 = vst.msk [vmem:[%s1607_s1 + $0x8] sm:$0xff] %vm6_vm1, %v13_v38   ;;  %v693_v43 = vld [vmem:[%s1606_s0 + $0x140] ss:$8 sm:$0xf0]   ;;  %7 = vst.msk [vmem:[%s1607_s1] sm:$0xff] %vm6_vm1, %v5_v42   ;;  %v434_v53 = vsel %vm4_vm0, %v796_v32, %v795_v31  ;;  %s873_s25 = smov 24  }
  0x27   :  { %v689_v44 = vld [vmem:[%s1606_s0 + $0x100] ss:$8 sm:$0xf]   ;;  %v49_v45 = vsel %vm4_vm0, %v693_v43, %v692_v40  ;;  %v801_v48 = vld [vmem:[%s1606_s0 + $0x143] ss:$8 sm:$0xf]  }
  0x28   :  { %283 = vrot.lane.b32.xlu1 %v282_v58, %s871_s30  ;;  %v690_v46 = vld [vmem:[%s1606_s0 + $0x100] ss:$8 sm:$0xf0]   ;;  %v802_v49 = vld [vmem:[%s1606_s0 + $0x143] ss:$8 sm:$0xf0]   ;;  %v424_v58 = vsel %vm4_vm0, %v794_v37, %v793_v36 }
  0x29   :  { %v695_v47 = vld [vmem:[%s1606_s0 + $0x180] ss:$8 sm:$0xf]   ;;  %694 = vst.msk [vmem:[%s1607_s1 + $0x28] sm:$0xff] %vm6_vm1, %v49_v45   ;;  %v40_v50 = vsel %vm4_vm0, %v690_v46, %v689_v44  ;;  %v456_v2 = vsel %vm4_vm0, %v802_v49, %v801_v48  ;;  %s874_s4 = smov 16   ;;  %s875_s8 = smov 8  }
  0x2a   :  { %272 = vrot.lane.b32.xlu0 %v271_v59, %s871_s30  ;;  %v696_v51 = vld [vmem:[%s1606_s0 + $0x180] ss:$8 sm:$0xf0]   ;;  %v798_v54 = vld [vmem:[%s1606_s0 + $0x43] ss:$8 sm:$0xf]  }
  0x2b   :  { %v683_v52 = vld [vmem:[%s1606_s0 + $0x80] ss:$8 sm:$0xf]   ;;  %691 = vst.msk [vmem:[%s1607_s1 + $0x20] sm:$0xff] %vm6_vm1, %v40_v50   ;;  %v58_v55 = vsel %vm4_vm0, %v696_v51, %v695_v47  ;;  %vm340_vm5 = vcmask 326912   ;;  %vm427_vm6 = vcmask 261312  }
  0x2c   :  { %305 = vrot.lane.b32.xlu1 %v304_v0, %s871_s30  ;;  %v684_v56 = vld [vmem:[%s1606_s0 + $0x80] ss:$8 sm:$0xf0]   ;;  %697 = vst.msk [vmem:[%s1607_s1 + $0x30] sm:$0xff] %vm6_vm1, %v58_v55   ;;  %vm514_vm7 = vcmask 195712   ;;  %vm601_vm8 = vcmask 130112  }
  0x2d   :  { %v698_v57 = vld [vmem:[%s1606_s0 + $0x1c0] ss:$8 sm:$0xf]   ;;  %v22_v59 = vsel %vm4_vm0, %v684_v56, %v683_v52  ;;  %v799_v62 = vld [vmem:[%s1606_s0 + $0x43] ss:$8 sm:$0xf0]  }
  0x2e   :  { %294 = vrot.lane.b32.xlu0 %v293_v1, %s871_s30  ;;  %v699_v60 = vld [vmem:[%s1606_s0 + $0x1c0] ss:$8 sm:$0xf0]   ;;  %685 = vst.msk [vmem:[%s1607_s1 + $0x10] sm:$0xff] %vm6_vm1, %v22_v59   ;;  %v445_v3 = vsel %vm4_vm0, %v799_v62, %v798_v54 }
  0x2f   :  { %v686_v61 = vld [vmem:[%s1606_s0 + $0xc0] ss:$8 sm:$0xf]   ;;  %v67_v63 = vsel %vm4_vm0, %v699_v60, %v698_v57  ;;  %v807_v4 = vld [vmem:[%s1606_s0 + $0x183] ss:$8 sm:$0xf]  }
  0x30   :  { %327 = vrot.lane.b32.xlu1 %v326_v6, %s871_s30  ;;  %v687_v0 = vld [vmem:[%s1606_s0 + $0xc0] ss:$8 sm:$0xf0]   ;;  %700 = vst.msk [vmem:[%s1607_s1 + $0x38] sm:$0xff] %vm6_vm1, %v67_v63  }
  0x31   :  { %v31_v1 = vsel %vm4_vm0, %v687_v0, %v686_v61  ;;  %v808_v5 = vld [vmem:[%s1606_s0 + $0x183] ss:$8 sm:$0xf0]   ;;  %v818_v16 = vld [vmem:[%s1606_s0 + $0x102] ss:$8 sm:$0xf]  }
  0x32   :  { %316 = vrot.lane.b32.xlu0 %v315_v7, %s871_s30  ;;  %688 = vst.msk [vmem:[%s1607_s1 + $0x18] sm:$0xff] %vm6_vm1, %v31_v1   ;;  %v804_v6 = vld [vmem:[%s1606_s0 + $0x83] ss:$8 sm:$0xf]   ;;  %v478_v8 = vsel %vm4_vm0, %v808_v5, %v807_v4 }
  0x33   :  { %v805_v7 = vld [vmem:[%s1606_s0 + $0x83] ss:$8 sm:$0xf0]   ;;  %v819_v17 = vld [vmem:[%s1606_s0 + $0x102] ss:$8 sm:$0xf0]  }
  0x34   :  { %348 = vrot.lane.b32.xlu1 %v347_v12, %s872_s5  ;;  %v467_v9 = vsel %vm4_vm0, %v805_v7, %v804_v6  ;;  %v813_v10 = vld [vmem:[%s1606_s0 + $0x1c3] ss:$8 sm:$0xf]   ;;  %v521_v20 = vsel %vm4_vm0, %v819_v17, %v818_v16  ;;  %v824_v22 = vld [vmem:[%s1606_s0 + $0x142] ss:$8 sm:$0xf]  }
  0x35   :  { %v814_v11 = vld [vmem:[%s1606_s0 + $0x1c3] ss:$8 sm:$0xf0]   ;;  %v825_v23 = vld [vmem:[%s1606_s0 + $0x142] ss:$8 sm:$0xf0]  }
  0x36   :  { %338 = vrot.lane.b32.xlu0 %v337_v13, %s872_s5  ;;  %v810_v12 = vld [vmem:[%s1606_s0 + $0xc3] ss:$8 sm:$0xf]   ;;  %v500_v14 = vsel %vm4_vm0, %v814_v11, %v813_v10  ;;  %v822_v25 = vld [vmem:[%s1606_s0 + $0x42] ss:$8 sm:$0xf0]   ;;  %v543_v26 = vsel %vm4_vm0, %v825_v23, %v824_v22 }
  0x37   :  { %v811_v13 = vld [vmem:[%s1606_s0 + $0xc3] ss:$8 sm:$0xf0]   ;;  %v830_v28 = vld [vmem:[%s1606_s0 + $0x182] ss:$8 sm:$0xf]  }
  0x38   :  { %370 = vrot.lane.b32.xlu1 %v369_v18, %s872_s5  ;;  %v489_v15 = vsel %vm4_vm0, %v811_v13, %v810_v12  ;;  %v816_v18 = vld [vmem:[%s1606_s0 + $0x2] ss:$8 sm:$0xf]   ;;  %v841_v40 = vld [vmem:[%s1606_s0 + $0x101] ss:$8 sm:$0xf]  }
  0x39   :  { %v831_v29 = vld [vmem:[%s1606_s0 + $0x182] ss:$8 sm:$0xf0]   ;;  %v839_v42 = vld [vmem:[%s1606_s0 + $0x1] ss:$8 sm:$0xf]  }
  0x3a   :  { %359 = vrot.lane.b32.xlu0 %v358_v19, %s872_s5  ;;  %v817_v19 = vld [vmem:[%s1606_s0 + $0x2] ss:$8 sm:$0xf0]   ;;  %v565_v32 = vsel %vm4_vm0, %v831_v29, %v830_v28  ;;  %v840_v43 = vld [vmem:[%s1606_s0 + $0x1] ss:$8 sm:$0xf0]  }
  0x3b   :  { %v511_v21 = vsel %vm4_vm0, %v817_v19, %v816_v18  ;;  %v827_v30 = vld [vmem:[%s1606_s0 + $0x82] ss:$8 sm:$0xf]   ;;  %v598_v45 = vsel %vm4_vm0, %v840_v43, %v839_v42  ;;  %v847_v46 = vld [vmem:[%s1606_s0 + $0x141] ss:$8 sm:$0xf]  }
  0x3c   :  { %392 = vrot.lane.b32.xlu1 %v391_v24, %s872_s5  ;;  %v821_v24 = vld [vmem:[%s1606_s0 + $0x42] ss:$8 sm:$0xf]   ;;  %v848_v47 = vld [vmem:[%s1606_s0 + $0x141] ss:$8 sm:$0xf0]  }
  0x3d   :  { %v828_v31 = vld [vmem:[%s1606_s0 + $0x82] ss:$8 sm:$0xf0]   ;;  %v844_v48 = vld [vmem:[%s1606_s0 + $0x41] ss:$8 sm:$0xf]   ;;  %v630_v50 = vsel %vm4_vm0, %v848_v47, %v847_v46 }
  0x3e   :  { %381 = vrot.lane.b32.xlu0 %v380_v27, %s872_s5  ;;  %v532_v27 = vsel %vm4_vm0, %v822_v25, %v821_v24  ;;  %v554_v33 = vsel %vm4_vm0, %v828_v31, %v827_v30  ;;  %v836_v34 = vld [vmem:[%s1606_s0 + $0x1c2] ss:$8 sm:$0xf]   ;;  %v845_v49 = vld [vmem:[%s1606_s0 + $0x41] ss:$8 sm:$0xf0]  }
  0x3f   :  { %v833_v36 = vld [vmem:[%s1606_s0 + $0xc2] ss:$8 sm:$0xf]   ;;  %v619_v51 = vsel %vm4_vm0, %v845_v49, %v844_v48  ;;  %v853_v52 = vld [vmem:[%s1606_s0 + $0x181] ss:$8 sm:$0xf]  }
  0x40   :  { %414 = vrot.lane.b32.xlu1 %v413_v35, %s872_s5  ;;  %v837_v35 = vld [vmem:[%s1606_s0 + $0x1c2] ss:$8 sm:$0xf0]   ;;  %v850_v54 = vld [vmem:[%s1606_s0 + $0x81] ss:$8 sm:$0xf]  }
  0x41   :  { %v834_v37 = vld [vmem:[%s1606_s0 + $0xc2] ss:$8 sm:$0xf0]   ;;  %v587_v38 = vsel %vm4_vm0, %v837_v35, %v836_v34  ;;  %v851_v55 = vld [vmem:[%s1606_s0 + $0x81] ss:$8 sm:$0xf0]  }
  0x42   :  { %403 = vrot.lane.b32.xlu0 %v402_v41, %s872_s5  ;;  %v576_v39 = vsel %vm4_vm0, %v834_v37, %v833_v36  ;;  %v842_v41 = vld [vmem:[%s1606_s0 + $0x101] ss:$8 sm:$0xf0]   ;;  %v641_v57 = vsel %vm4_vm0, %v851_v55, %v850_v54 }
  0x43   :  { %v608_v44 = vsel %vm4_vm0, %v842_v41, %v841_v40  ;;  %v860_v59 = vld [vmem:[%s1606_s0 + $0x1c1] ss:$8 sm:$0xf0]  }
  0x44   :  { %435 = vrot.lane.b32.xlu1 %v434_v53, %s873_s25  ;;  %v854_v53 = vld [vmem:[%s1606_s0 + $0x181] ss:$8 sm:$0xf0]  }
  0x45   :  { %v652_v56 = vsel %vm4_vm0, %v854_v53, %v853_v52  ;;  %v856_v60 = vld [vmem:[%s1606_s0 + $0xc1] ss:$8 sm:$0xf]  }
  0x46   :  { %425 = vrot.lane.b32.xlu0 %v424_v58, %s873_s25  ;;  %v859_v58 = vld [vmem:[%s1606_s0 + $0x1c1] ss:$8 sm:$0xf]  }
  0x47   :  { %v857_v61 = vld [vmem:[%s1606_s0 + $0xc1] ss:$8 sm:$0xf0]   ;;  %v674_v62 = vsel %vm4_vm0, %v860_v59, %v859_v58 }
  0x48   :  { %457 = vrot.lane.b32.xlu1 %v456_v2, %s873_s25  ;;  %v663_v63 = vsel %vm4_vm0, %v857_v61, %v856_v60 }
  0x4a   :  { %446 = vrot.lane.b32.xlu0 %v445_v3, %s873_s25 }
  0x4c   :  { %479 = vrot.lane.b32.xlu1 %v478_v8, %s873_s25 }
  0x4e   :  { %468 = vrot.lane.b32.xlu0 %v467_v9, %s873_s25 }
  0x50   :  { %501 = vrot.lane.b32.xlu1 %v500_v14, %s873_s25 }
  0x52   :  { %490 = vrot.lane.b32.xlu0 %v489_v15, %s873_s25 }
  0x54   :  { %522 = vrot.lane.b32.xlu1 %v521_v20, %s874_s4 }
  0x56   :  { %512 = vrot.lane.b32.xlu0 %v511_v21, %s874_s4 }
  0x58   :  { %544 = vrot.lane.b32.xlu1 %v543_v26, %s874_s4 }
  0x5a   :  { %533 = vrot.lane.b32.xlu0 %v532_v27, %s874_s4 }
  0x5c   :  { %566 = vrot.lane.b32.xlu1 %v565_v32, %s874_s4 }
  0x5e   :  { %555 = vrot.lane.b32.xlu0 %v554_v33, %s874_s4 }
  0x60   :  { %588 = vrot.lane.b32.xlu1 %v587_v38, %s874_s4 }
  0x62   :  { %577 = vrot.lane.b32.xlu0 %v576_v39, %s874_s4 }
  0x64   :  { %609 = vrot.lane.b32.xlu1 %v608_v44, %s875_s8 }
  0x66   :  { %599 = vrot.lane.b32.xlu0 %v598_v45, %s875_s8 }
  0x68   :  { %631 = vrot.lane.b32.xlu1 %v630_v50, %s875_s8 }
  0x6a   :  { %620 = vrot.lane.b32.xlu0 %v619_v51, %s875_s8 }
  0x6c   :  { %653 = vrot.lane.b32.xlu1 %v652_v56, %s875_s8 }
  0x6e   :  { %642 = vrot.lane.b32.xlu0 %v641_v57, %s875_s8 }
  0x70   :  { %675 = vrot.lane.b32.xlu1 %v674_v62, %s875_s8 }
  0x72   :  { %664 = vrot.lane.b32.xlu0 %v663_v63, %s875_s8 }
  0x76   :  { %v99_v0 = vpop.permute.xlu1 %98  }
  0x77   :  { %708 = vst.msk [vmem:[%s1607_s1 + $0x8] sm:$0xff] %vm79_vm2, %v99_v0  }
  0x78   :  { %v78_v1 = vpop.permute.xlu0 %77  }
  0x79   :  { %80 = vst.msk [vmem:[%s1607_s1] sm:$0xff] %vm79_vm2, %v78_v1  }
  0x7a   :  { %v110_v2 = vpop.permute.xlu1 %109  }
  0x7b   :  { %711 = vst.msk [vmem:[%s1607_s1 + $0x28] sm:$0xff] %vm79_vm2, %v110_v2  }
  0x7c   :  { %v88_v3 = vpop.permute.xlu0 %87  }
  0x7d   :  { %705 = vst.msk [vmem:[%s1607_s1 + $0x20] sm:$0xff] %vm79_vm2, %v88_v3  }
  0x7e   :  { %v132_v4 = vpop.permute.xlu1 %131  }
  0x7f   :  { %717 = vst.msk [vmem:[%s1607_s1 + $0x30] sm:$0xff] %vm79_vm2, %v132_v4  }
  0x80   :  { %v121_v5 = vpop.permute.xlu0 %120  }
  0x81   :  { %714 = vst.msk [vmem:[%s1607_s1 + $0x10] sm:$0xff] %vm79_vm2, %v121_v5  }
  0x82   :  { %v154_v6 = vpop.permute.xlu1 %153  }
  0x83   :  { %723 = vst.msk [vmem:[%s1607_s1 + $0x38] sm:$0xff] %vm79_vm2, %v154_v6  }
  0x84   :  { %v143_v7 = vpop.permute.xlu0 %142  }
  0x85   :  { %720 = vst.msk [vmem:[%s1607_s1 + $0x18] sm:$0xff] %vm79_vm2, %v143_v7  }
  0x86   :  { %v175_v8 = vpop.permute.xlu1 %174  }
  0x87   :  { %728 = vst.msk [vmem:[%s1607_s1 + $0x20] sm:$0xff] %vm166_vm3, %v175_v8  }
  0x88   :  { %v165_v9 = vpop.permute.xlu0 %164  }
  0x89   :  { %167 = vst.msk [vmem:[%s1607_s1] sm:$0xff] %vm166_vm3, %v165_v9  }
  0x8a   :  { %v197_v10 = vpop.permute.xlu1 %196  }
  0x8b   :  { %734 = vst.msk [vmem:[%s1607_s1 + $0x28] sm:$0xff] %vm166_vm3, %v197_v10  }
  0x8c   :  { %v186_v11 = vpop.permute.xlu0 %185  }
  0x8d   :  { %731 = vst.msk [vmem:[%s1607_s1 + $0x8] sm:$0xff] %vm166_vm3, %v186_v11  }
  0x8e   :  { %v219_v12 = vpop.permute.xlu1 %218  }
  0x8f   :  { %740 = vst.msk [vmem:[%s1607_s1 + $0x30] sm:$0xff] %vm166_vm3, %v219_v12  }
  0x90   :  { %v208_v13 = vpop.permute.xlu0 %207  }
  0x91   :  { %737 = vst.msk [vmem:[%s1607_s1 + $0x10] sm:$0xff] %vm166_vm3, %v208_v13  }
  0x92   :  { %v241_v14 = vpop.permute.xlu1 %240  }
  0x93   :  { %746 = vst.msk [vmem:[%s1607_s1 + $0x38] sm:$0xff] %vm166_vm3, %v241_v14  }
  0x94   :  { %v230_v15 = vpop.permute.xlu0 %229  }
  0x95   :  { %743 = vst.msk [vmem:[%s1607_s1 + $0x18] sm:$0xff] %vm166_vm3, %v230_v15  }
  0x96   :  { %v262_v16 = vpop.permute.xlu1 %261  }
  0x97   :  { %751 = vst.msk [vmem:[%s1607_s1 + $0x20] sm:$0xff] %vm253_vm4, %v262_v16  }
  0x98   :  { %v252_v17 = vpop.permute.xlu0 %251  }
  0x99   :  { %254 = vst.msk [vmem:[%s1607_s1] sm:$0xff] %vm253_vm4, %v252_v17  }
  0x9a   :  { %v284_v18 = vpop.permute.xlu1 %283  }
  0x9b   :  { %757 = vst.msk [vmem:[%s1607_s1 + $0x28] sm:$0xff] %vm253_vm4, %v284_v18  }
  0x9c   :  { %v273_v19 = vpop.permute.xlu0 %272  }
  0x9d   :  { %754 = vst.msk [vmem:[%s1607_s1 + $0x8] sm:$0xff] %vm253_vm4, %v273_v19  }
  0x9e   :  { %v306_v20 = vpop.permute.xlu1 %305  }
  0x9f   :  { %763 = vst.msk [vmem:[%s1607_s1 + $0x30] sm:$0xff] %vm253_vm4, %v306_v20  }
  0xa0   :  { %v295_v21 = vpop.permute.xlu0 %294  }
  0xa1   :  { %760 = vst.msk [vmem:[%s1607_s1 + $0x10] sm:$0xff] %vm253_vm4, %v295_v21  }
  0xa2   :  { %v328_v22 = vpop.permute.xlu1 %327  }
  0xa3   :  { %769 = vst.msk [vmem:[%s1607_s1 + $0x38] sm:$0xff] %vm253_vm4, %v328_v22  }
  0xa4   :  { %v317_v23 = vpop.permute.xlu0 %316  }
  0xa5   :  { %766 = vst.msk [vmem:[%s1607_s1 + $0x18] sm:$0xff] %vm253_vm4, %v317_v23  }
  0xa6   :  { %v349_v24 = vpop.permute.xlu1 %348  }
  0xa7   :  { %774 = vst.msk [vmem:[%s1607_s1 + $0x20] sm:$0xff] %vm340_vm5, %v349_v24  }
  0xa8   :  { %v339_v25 = vpop.permute.xlu0 %338  }
  0xa9   :  { %341 = vst.msk [vmem:[%s1607_s1] sm:$0xff] %vm340_vm5, %v339_v25  }
  0xaa   :  { %v371_v26 = vpop.permute.xlu1 %370  }
  0xab   :  { %780 = vst.msk [vmem:[%s1607_s1 + $0x28] sm:$0xff] %vm340_vm5, %v371_v26  }
  0xac   :  { %v360_v27 = vpop.permute.xlu0 %359  }
  0xad   :  { %777 = vst.msk [vmem:[%s1607_s1 + $0x8] sm:$0xff] %vm340_vm5, %v360_v27  }
  0xae   :  { %v393_v28 = vpop.permute.xlu1 %392  }
  0xaf   :  { %786 = vst.msk [vmem:[%s1607_s1 + $0x30] sm:$0xff] %vm340_vm5, %v393_v28  }
  0xb0   :  { %v382_v29 = vpop.permute.xlu0 %381  }
  0xb1   :  { %783 = vst.msk [vmem:[%s1607_s1 + $0x10] sm:$0xff] %vm340_vm5, %v382_v29  }
  0xb2   :  { %v415_v30 = vpop.permute.xlu1 %414  }
  0xb3   :  { %792 = vst.msk [vmem:[%s1607_s1 + $0x38] sm:$0xff] %vm340_vm5, %v415_v30  }
  0xb4   :  { %v404_v31 = vpop.permute.xlu0 %403  }
  0xb5   :  { %789 = vst.msk [vmem:[%s1607_s1 + $0x18] sm:$0xff] %vm340_vm5, %v404_v31  }
  0xb6   :  { %v436_v32 = vpop.permute.xlu1 %435  }
  0xb7   :  { %797 = vst.msk [vmem:[%s1607_s1 + $0x20] sm:$0xff] %vm427_vm6, %v436_v32  }
  0xb8   :  { %v426_v33 = vpop.permute.xlu0 %425  }
  0xb9   :  { %428 = vst.msk [vmem:[%s1607_s1] sm:$0xff] %vm427_vm6, %v426_v33  }
  0xba   :  { %v458_v34 = vpop.permute.xlu1 %457  }
  0xbb   :  { %803 = vst.msk [vmem:[%s1607_s1 + $0x28] sm:$0xff] %vm427_vm6, %v458_v34  }
  0xbc   :  { %v447_v35 = vpop.permute.xlu0 %446  }
  0xbd   :  { %800 = vst.msk [vmem:[%s1607_s1 + $0x8] sm:$0xff] %vm427_vm6, %v447_v35  }
  0xbe   :  { %v480_v36 = vpop.permute.xlu1 %479  }
  0xbf   :  { %809 = vst.msk [vmem:[%s1607_s1 + $0x30] sm:$0xff] %vm427_vm6, %v480_v36  }
  0xc0   :  { %v469_v37 = vpop.permute.xlu0 %468  }
  0xc1   :  { %806 = vst.msk [vmem:[%s1607_s1 + $0x10] sm:$0xff] %vm427_vm6, %v469_v37  }
  0xc2   :  { %v502_v38 = vpop.permute.xlu1 %501  }
  0xc3   :  { %815 = vst.msk [vmem:[%s1607_s1 + $0x38] sm:$0xff] %vm427_vm6, %v502_v38  }
  0xc4   :  { %v491_v39 = vpop.permute.xlu0 %490  }
  0xc5   :  { %812 = vst.msk [vmem:[%s1607_s1 + $0x18] sm:$0xff] %vm427_vm6, %v491_v39  }
  0xc6   :  { %v523_v40 = vpop.permute.xlu1 %522  }
  0xc7   :  { %820 = vst.msk [vmem:[%s1607_s1 + $0x20] sm:$0xff] %vm514_vm7, %v523_v40  }
  0xc8   :  { %v513_v41 = vpop.permute.xlu0 %512  }
  0xc9   :  { %515 = vst.msk [vmem:[%s1607_s1] sm:$0xff] %vm514_vm7, %v513_v41  }
  0xca   :  { %v545_v42 = vpop.permute.xlu1 %544  }
  0xcb   :  { %826 = vst.msk [vmem:[%s1607_s1 + $0x28] sm:$0xff] %vm514_vm7, %v545_v42  }
  0xcc   :  { %v534_v43 = vpop.permute.xlu0 %533  }
  0xcd   :  { %823 = vst.msk [vmem:[%s1607_s1 + $0x8] sm:$0xff] %vm514_vm7, %v534_v43  }
  0xce   :  { %v567_v44 = vpop.permute.xlu1 %566  }
  0xcf   :  { %832 = vst.msk [vmem:[%s1607_s1 + $0x30] sm:$0xff] %vm514_vm7, %v567_v44  }
  0xd0   :  { %v556_v45 = vpop.permute.xlu0 %555  }
  0xd1   :  { %829 = vst.msk [vmem:[%s1607_s1 + $0x10] sm:$0xff] %vm514_vm7, %v556_v45  }
  0xd2   :  { %v589_v46 = vpop.permute.xlu1 %588  }
  0xd3   :  { %838 = vst.msk [vmem:[%s1607_s1 + $0x38] sm:$0xff] %vm514_vm7, %v589_v46  }
  0xd4   :  { %v578_v47 = vpop.permute.xlu0 %577  }
  0xd5   :  { %835 = vst.msk [vmem:[%s1607_s1 + $0x18] sm:$0xff] %vm514_vm7, %v578_v47  }
  0xd6   :  { %v610_v48 = vpop.permute.xlu1 %609  }
  0xd7   :  { %843 = vst.msk [vmem:[%s1607_s1 + $0x20] sm:$0xff] %vm601_vm8, %v610_v48  }
  0xd8   :  { %v600_v49 = vpop.permute.xlu0 %599  }
  0xd9   :  { %602 = vst.msk [vmem:[%s1607_s1] sm:$0xff] %vm601_vm8, %v600_v49  }
  0xda   :  { %v632_v50 = vpop.permute.xlu1 %631  }
  0xdb   :  { %849 = vst.msk [vmem:[%s1607_s1 + $0x28] sm:$0xff] %vm601_vm8, %v632_v50  }
  0xdc   :  { %v621_v51 = vpop.permute.xlu0 %620  }
  0xdd   :  { %846 = vst.msk [vmem:[%s1607_s1 + $0x8] sm:$0xff] %vm601_vm8, %v621_v51  }
  0xde   :  { %v654_v52 = vpop.permute.xlu1 %653  }
  0xdf   :  { %855 = vst.msk [vmem:[%s1607_s1 + $0x30] sm:$0xff] %vm601_vm8, %v654_v52  }
  0xe0   :  { %v643_v53 = vpop.permute.xlu0 %642  }
  0xe1   :  { %852 = vst.msk [vmem:[%s1607_s1 + $0x10] sm:$0xff] %vm601_vm8, %v643_v53  }
  0xe2   :  { %v676_v54 = vpop.permute.xlu1 %675  }
  0xe3   :  { %861 = vst.msk [vmem:[%s1607_s1 + $0x38] sm:$0xff] %vm601_vm8, %v676_v54  }
  0xe4   :  { %v665_v55 = vpop.permute.xlu0 %664  }
  0xe5   :  { %858 = vst.msk [vmem:[%s1607_s1 + $0x18] sm:$0xff] %vm601_vm8, %v665_v55  }

// kernel: tile.33
= control target key start
LH: loop header
LB: loop body
LE: loop exit
PB: predicated region body
PF: predicated region fallthrough
CT: control target
= control target key end

     0   :  { %s442_s0 = inlined_call_operand.vmem [shape: f32[8,8], index: 0, kind: input, shape index: {}]   ;;  %s443_s1 = inlined_call_operand.vmem [shape: f32[8,8,8,8], index: 1, kind: output, shape index: {}]  }
   0x1   :  { %v4_v0 = vld [vmem:[%s442_s0] ss:$0 sm:$0xff]  ;;  %v153_v1 = vld [vmem:[%s442_s0 + $0x1] ss:$0 sm:$0xff]  ;;  %v162_v2 = vld [vmem:[%s442_s0 + $0x2] ss:$0 sm:$0xff] }
   0x2   :  { %5 = vst [vmem:[%s443_s1] sm:$0xff] %v4_v0  ;;  %146 = vst [vmem:[%s443_s1 + $0x40] sm:$0xff] %v4_v0  ;;  %v171_v3 = vld [vmem:[%s442_s0 + $0x3] ss:$0 sm:$0xff]  ;;  %v180_v4 = vld [vmem:[%s442_s0 + $0x4] ss:$0 sm:$0xff] }
   0x3   :  { %147 = vst [vmem:[%s443_s1 + $0x80] sm:$0xff] %v4_v0  ;;  %148 = vst [vmem:[%s443_s1 + $0xc0] sm:$0xff] %v4_v0  ;;  %v189_v5 = vld [vmem:[%s442_s0 + $0x5] ss:$0 sm:$0xff]  ;;  %v198_v6 = vld [vmem:[%s442_s0 + $0x6] ss:$0 sm:$0xff] }
   0x4   :  { %149 = vst [vmem:[%s443_s1 + $0x100] sm:$0xff] %v4_v0  ;;  %150 = vst [vmem:[%s443_s1 + $0x140] sm:$0xff] %v4_v0  ;;  %v207_v7 = vld [vmem:[%s442_s0 + $0x7] ss:$0 sm:$0xff] }
   0x5   :  { %151 = vst [vmem:[%s443_s1 + $0x180] sm:$0xff] %v4_v0  ;;  %152 = vst [vmem:[%s443_s1 + $0x1c0] sm:$0xff] %v4_v0 }
   0x6   :  { %154 = vst [vmem:[%s443_s1 + $0x8] sm:$0xff] %v153_v1  ;;  %155 = vst [vmem:[%s443_s1 + $0x48] sm:$0xff] %v153_v1 }
   0x7   :  { %156 = vst [vmem:[%s443_s1 + $0x88] sm:$0xff] %v153_v1  ;;  %157 = vst [vmem:[%s443_s1 + $0xc8] sm:$0xff] %v153_v1 }
   0x8   :  { %158 = vst [vmem:[%s443_s1 + $0x108] sm:$0xff] %v153_v1  ;;  %159 = vst [vmem:[%s443_s1 + $0x148] sm:$0xff] %v153_v1 }
   0x9   :  { %160 = vst [vmem:[%s443_s1 + $0x188] sm:$0xff] %v153_v1  ;;  %161 = vst [vmem:[%s443_s1 + $0x1c8] sm:$0xff] %v153_v1 }
   0xa   :  { %163 = vst [vmem:[%s443_s1 + $0x10] sm:$0xff] %v162_v2  ;;  %164 = vst [vmem:[%s443_s1 + $0x50] sm:$0xff] %v162_v2 }
   0xb   :  { %165 = vst [vmem:[%s443_s1 + $0x90] sm:$0xff] %v162_v2  ;;  %166 = vst [vmem:[%s443_s1 + $0xd0] sm:$0xff] %v162_v2 }
   0xc   :  { %167 = vst [vmem:[%s443_s1 + $0x110] sm:$0xff] %v162_v2  ;;  %168 = vst [vmem:[%s443_s1 + $0x150] sm:$0xff] %v162_v2 }
   0xd   :  { %169 = vst [vmem:[%s443_s1 + $0x190] sm:$0xff] %v162_v2  ;;  %170 = vst [vmem:[%s443_s1 + $0x1d0] sm:$0xff] %v162_v2 }
   0xe   :  { %172 = vst [vmem:[%s443_s1 + $0x18] sm:$0xff] %v171_v3  ;;  %173 = vst [vmem:[%s443_s1 + $0x58] sm:$0xff] %v171_v3 }
   0xf   :  { %174 = vst [vmem:[%s443_s1 + $0x98] sm:$0xff] %v171_v3  ;;  %175 = vst [vmem:[%s443_s1 + $0xd8] sm:$0xff] %v171_v3 }
  0x10   :  { %176 = vst [vmem:[%s443_s1 + $0x118] sm:$0xff] %v171_v3  ;;  %177 = vst [vmem:[%s443_s1 + $0x158] sm:$0xff] %v171_v3 }
  0x11   :  { %178 = vst [vmem:[%s443_s1 + $0x198] sm:$0xff] %v171_v3  ;;  %179 = vst [vmem:[%s443_s1 + $0x1d8] sm:$0xff] %v171_v3 }
  0x12   :  { %181 = vst [vmem:[%s443_s1 + $0x20] sm:$0xff] %v180_v4  ;;  %182 = vst [vmem:[%s443_s1 + $0x60] sm:$0xff] %v180_v4 }
  0x13   :  { %183 = vst [vmem:[%s443_s1 + $0xa0] sm:$0xff] %v180_v4  ;;  %184 = vst [vmem:[%s443_s1 + $0xe0] sm:$0xff] %v180_v4 }
  0x14   :  { %185 = vst [vmem:[%s443_s1 + $0x120] sm:$0xff] %v180_v4  ;;  %186 = vst [vmem:[%s443_s1 + $0x160] sm:$0xff] %v180_v4 }
  0x15   :  { %187 = vst [vmem:[%s443_s1 + $0x1a0] sm:$0xff] %v180_v4  ;;  %188 = vst [vmem:[%s443_s1 + $0x1e0] sm:$0xff] %v180_v4 }
  0x16   :  { %190 = vst [vmem:[%s443_s1 + $0x28] sm:$0xff] %v189_v5  ;;  %191 = vst [vmem:[%s443_s1 + $0x68] sm:$0xff] %v189_v5 }
  0x17   :  { %192 = vst [vmem:[%s443_s1 + $0xa8] sm:$0xff] %v189_v5  ;;  %193 = vst [vmem:[%s443_s1 + $0xe8] sm:$0xff] %v189_v5 }
  0x18   :  { %194 = vst [vmem:[%s443_s1 + $0x128] sm:$0xff] %v189_v5  ;;  %195 = vst [vmem:[%s443_s1 + $0x168] sm:$0xff] %v189_v5 }
  0x19   :  { %196 = vst [vmem:[%s443_s1 + $0x1a8] sm:$0xff] %v189_v5  ;;  %197 = vst [vmem:[%s443_s1 + $0x1e8] sm:$0xff] %v189_v5 }
  0x1a   :  { %199 = vst [vmem:[%s443_s1 + $0x30] sm:$0xff] %v198_v6  ;;  %200 = vst [vmem:[%s443_s1 + $0x70] sm:$0xff] %v198_v6 }
  0x1b   :  { %201 = vst [vmem:[%s443_s1 + $0xb0] sm:$0xff] %v198_v6  ;;  %202 = vst [vmem:[%s443_s1 + $0xf0] sm:$0xff] %v198_v6 }
  0x1c   :  { %203 = vst [vmem:[%s443_s1 + $0x130] sm:$0xff] %v198_v6  ;;  %204 = vst [vmem:[%s443_s1 + $0x170] sm:$0xff] %v198_v6 }
  0x1d   :  { %205 = vst [vmem:[%s443_s1 + $0x1b0] sm:$0xff] %v198_v6  ;;  %206 = vst [vmem:[%s443_s1 + $0x1f0] sm:$0xff] %v198_v6 }
  0x1e   :  { %208 = vst [vmem:[%s443_s1 + $0x38] sm:$0xff] %v207_v7  ;;  %209 = vst [vmem:[%s443_s1 + $0x78] sm:$0xff] %v207_v7 }
  0x1f   :  { %210 = vst [vmem:[%s443_s1 + $0xb8] sm:$0xff] %v207_v7  ;;  %211 = vst [vmem:[%s443_s1 + $0xf8] sm:$0xff] %v207_v7 }
  0x20   :  { %212 = vst [vmem:[%s443_s1 + $0x138] sm:$0xff] %v207_v7  ;;  %213 = vst [vmem:[%s443_s1 + $0x178] sm:$0xff] %v207_v7 }
  0x21   :  { %214 = vst [vmem:[%s443_s1 + $0x1b8] sm:$0xff] %v207_v7  ;;  %215 = vst [vmem:[%s443_s1 + $0x1f8] sm:$0xff] %v207_v7 }

// kernel: down_forward.1
= control target key start
LH: loop header
LB: loop body
LE: loop exit
PB: predicated region body
PF: predicated region fallthrough
CT: control target
= control target key end

     0   :  { %s9020_s1 = inlined_call_operand.vmem [shape: f32[1152,64], index: 1, kind: input, shape index: {}]   ;;  %s9021_s2 = inlined_call_operand.vmem [shape: f32[1,64], index: 2, kind: input, shape index: {}]   ;;  %s9022_s3 = inlined_call_operand.vmem [shape: f32[1,64], index: 3, kind: input, shape index: {}]   ;;  %s9023_s4 = inlined_call_operand.vmem [shape: f32[64,64], index: 4, kind: input, shape index: {}, may-alias: {4,8}]   ;;  %s9024_s5 = inlined_call_operand.vmem [shape: f32[1152,64], index: 5, kind: input, shape index: {}]   ;;  %s9025_s6 = inlined_call_operand.vmem [shape: f32[1,64], index: 6, kind: input, shape index: {}]   ;;  %s9026_s7 = inlined_call_operand.vmem [shape: f32[1,64], index: 7, kind: input, shape index: {}]   ;;  %s9027_s8 = inlined_call_operand.vmem [shape: f32[64,64], index: 8, kind: input, shape index: {}, may-alias: {4,8}]   ;;  %s9028_s9 = inlined_call_operand.vmem [shape: f32[128,64], index: 9, kind: output, shape index: {}]   ;;  %s9029_s0 = inlined_call_operand.vmem [shape: f32[8,128,32], index: 0, kind: input, shape index: {}]  }
   0x1   :  { %v5790_v0 = vld [vmem:[%s9029_s0] sm:$0xff]  ;;  %v5795_v1 = vld [vmem:[%s9029_s0 + $0x8] sm:$0xff]  ;;  %v5810_v4 = vld [vmem:[%s9029_s0 + $0x10] sm:$0xff] }
   0x2   :  { %v5800_v2 = vld [vmem:[%s9029_s0 + $0x80] sm:$0xff]  ;;  %v5805_v3 = vld [vmem:[%s9029_s0 + $0x88] sm:$0xff]  ;;  %v5815_v5 = vld [vmem:[%s9029_s0 + $0x18] sm:$0xff] }
   0x3   :  { %v5820_v6 = vld [vmem:[%s9029_s0 + $0x20] sm:$0xff]  ;;  %v5825_v7 = vld [vmem:[%s9029_s0 + $0x90] sm:$0xff]  ;;  %v5830_v8 = vld [vmem:[%s9029_s0 + $0x98] sm:$0xff]  ;;  %v65_v34 = vmax.f32 %v5790_v0, %v5800_v2  ;;  %v66_v35 = vmax.f32 %v5795_v1, %v5805_v3 }
   0x4   :  { %v5835_v9 = vld [vmem:[%s9029_s0 + $0xa0] sm:$0xff]  ;;  %v5840_v10 = vld [vmem:[%s9029_s0 + $0x28] sm:$0xff]  ;;  %v5845_v11 = vld [vmem:[%s9029_s0 + $0x30] sm:$0xff]  ;;  %v67_v39 = vmax.f32 %v5810_v4, %v5825_v7  ;;  %v68_v40 = vmax.f32 %v5815_v5, %v5830_v8 }
   0x5   :  { %v5850_v12 = vld [vmem:[%s9029_s0 + $0x38] sm:$0xff]  ;;  %v5855_v13 = vld [vmem:[%s9029_s0 + $0x40] sm:$0xff]  ;;  %v5860_v14 = vld [vmem:[%s9029_s0 + $0xa8] sm:$0xff]  ;;  %v69_v41 = vmax.f32 %v5820_v6, %v5835_v9 }
   0x6   :  { %v5865_v15 = vld [vmem:[%s9029_s0 + $0xb0] sm:$0xff]  ;;  %v5870_v16 = vld [vmem:[%s9029_s0 + $0xb8] sm:$0xff]  ;;  %v5875_v17 = vld [vmem:[%s9029_s0 + $0xc0] sm:$0xff]  ;;  %v70_v46 = vmax.f32 %v5840_v10, %v5860_v14 }
   0x7   :  { %v5880_v18 = vld [vmem:[%s9029_s0 + $0x48] sm:$0xff]  ;;  %v5885_v19 = vld [vmem:[%s9029_s0 + $0x50] sm:$0xff]  ;;  %v5890_v20 = vld [vmem:[%s9029_s0 + $0x58] sm:$0xff]  ;;  %v71_v47 = vmax.f32 %v5845_v11, %v5865_v15  ;;  %v72_v48 = vmax.f32 %v5850_v12, %v5870_v16  ;;  %v73_v49 = vmax.f32 %v5855_v13, %v5875_v17 }
   0x8   :  { %v5895_v21 = vld [vmem:[%s9029_s0 + $0x60] sm:$0xff]  ;;  %v5900_v22 = vld [vmem:[%s9029_s0 + $0xc8] sm:$0xff]  ;;  %v5905_v23 = vld [vmem:[%s9029_s0 + $0xd0] sm:$0xff] }
   0x9   :  { %v5910_v24 = vld [vmem:[%s9029_s0 + $0xd8] sm:$0xff]  ;;  %v5915_v25 = vld [vmem:[%s9029_s0 + $0xe0] sm:$0xff]  ;;  %v5920_v26 = vld [vmem:[%s9029_s0 + $0x68] sm:$0xff]  ;;  %v74_v54 = vmax.f32 %v5880_v18, %v5900_v22  ;;  %v75_v55 = vmax.f32 %v5885_v19, %v5905_v23 }
   0xa   :  { %v5925_v27 = vld [vmem:[%s9029_s0 + $0x70] sm:$0xff]  ;;  %v5930_v28 = vld [vmem:[%s9029_s0 + $0xe8] sm:$0xff]  ;;  %v4493_v30 = vld [vmem:[%s9029_s0 + $0x100] sm:$0xff]  ;;  %v76_v56 = vmax.f32 %v5890_v20, %v5910_v24  ;;  %v77_v57 = vmax.f32 %v5895_v21, %v5915_v25 }
   0xb   :  { %v5935_v29 = vld [vmem:[%s9029_s0 + $0xf0] sm:$0xff]  ;;  %v4494_v31 = vld [vmem:[%s9029_s0 + $0x108] sm:$0xff]  ;;  %v5946_v32 = vld [vmem:[%s9029_s0 + $0x78] sm:$0xff]  ;;  %v78_v62 = vmax.f32 %v5920_v26, %v5930_v28  ;;  %v6035_v1 = vmax.f32 %v65_v34, %v4493_v30 }
   0xc   :  { %v5951_v33 = vld [vmem:[%s9029_s0 + $0xf8] sm:$0xff]  ;;  %v4495_v36 = vld [vmem:[%s9029_s0 + $0x110] sm:$0xff]  ;;  %v4497_v38 = vld [vmem:[%s9029_s0 + $0x120] sm:$0xff]  ;;  %v79_v63 = vmax.f32 %v5925_v27, %v5935_v29  ;;  %v6037_v2 = vmax.f32 %v66_v35, %v4494_v31 }
   0xd   :  { %v4496_v37 = vld [vmem:[%s9029_s0 + $0x118] sm:$0xff]  ;;  %v4498_v42 = vld [vmem:[%s9029_s0 + $0x128] sm:$0xff]  ;;  %v4499_v43 = vld [vmem:[%s9029_s0 + $0x130] sm:$0xff]  ;;  %v80_v6 = vmax.f32 %v5946_v32, %v5951_v33  ;;  %v100_v7 = vmax.f32 %v67_v39, %v4495_v36  ;;  %v102_v9 = vmax.f32 %v69_v41, %v4497_v38 }
   0xe   :  { %v4500_v44 = vld [vmem:[%s9029_s0 + $0x138] sm:$0xff]  ;;  %v4501_v45 = vld [vmem:[%s9029_s0 + $0x140] sm:$0xff]  ;;  %v4502_v50 = vld [vmem:[%s9029_s0 + $0x148] sm:$0xff]  ;;  %v101_v8 = vmax.f32 %v68_v40, %v4496_v37  ;;  %v103_v14 = vmax.f32 %v70_v46, %v4498_v42  ;;  %v104_v15 = vmax.f32 %v71_v47, %v4499_v43 }
   0xf   :  { %v4503_v51 = vld [vmem:[%s9029_s0 + $0x150] sm:$0xff]  ;;  %v4504_v52 = vld [vmem:[%s9029_s0 + $0x158] sm:$0xff]  ;;  %v4505_v53 = vld [vmem:[%s9029_s0 + $0x160] sm:$0xff]  ;;  %v105_v16 = vmax.f32 %v72_v48, %v4500_v44  ;;  %v106_v17 = vmax.f32 %v73_v49, %v4501_v45  ;;  %v107_v22 = vmax.f32 %v74_v54, %v4502_v50 }
  0x10   :  { %v4506_v58 = vld [vmem:[%s9029_s0 + $0x168] sm:$0xff]  ;;  %v4507_v59 = vld [vmem:[%s9029_s0 + $0x170] sm:$0xff]  ;;  %v6021_v60 = vld [vmem:[%s9029_s0 + $0x180] sm:$0xff]  ;;  %v108_v23 = vmax.f32 %v75_v55, %v4503_v51  ;;  %v109_v24 = vmax.f32 %v76_v56, %v4504_v52  ;;  %v110_v25 = vmax.f32 %v77_v57, %v4505_v53 }
  0x11   :  { %v6026_v61 = vld [vmem:[%s9029_s0 + $0x188] sm:$0xff]  ;;  %v4508_v0 = vld [vmem:[%s9029_s0 + $0x178] sm:$0xff]  ;;  %v6042_v3 = vld [vmem:[%s9029_s0 + $0x190] sm:$0xff]  ;;  %v111_v30 = vmax.f32 %v78_v62, %v4506_v58  ;;  %v112_v31 = vmax.f32 %v79_v63, %v4507_v59  ;;  %v131_v33 = vmax.f32 %v6035_v1, %v6021_v60 }
  0x12   :  { %v6047_v4 = vld [vmem:[%s9029_s0 + $0x198] sm:$0xff]  ;;  %v6052_v5 = vld [vmem:[%s9029_s0 + $0x1a0] sm:$0xff]  ;;  %v6059_v10 = vld [vmem:[%s9029_s0 + $0x1a8] sm:$0xff]  ;;  %v132_v34 = vmax.f32 %v6037_v2, %v6026_v61  ;;  %v113_v38 = vmax.f32 %v80_v6, %v4508_v0  ;;  %v133_v39 = vmax.f32 %v100_v7, %v6042_v3 }
  0x13   :  { %v6064_v11 = vld [vmem:[%s9029_s0 + $0x1b0] sm:$0xff]  ;;  %v6069_v12 = vld [vmem:[%s9029_s0 + $0x1b8] sm:$0xff]  ;;  %v6074_v13 = vld [vmem:[%s9029_s0 + $0x1c0] sm:$0xff]  ;;  %v134_v40 = vmax.f32 %v101_v8, %v6047_v4  ;;  %v135_v41 = vmax.f32 %v102_v9, %v6052_v5  ;;  %v136_v45 = vmax.f32 %v103_v14, %v6059_v10 }
  0x14   :  { %v6079_v18 = vld [vmem:[%s9029_s0 + $0x1c8] sm:$0xff]  ;;  %v6084_v19 = vld [vmem:[%s9029_s0 + $0x1d0] sm:$0xff]  ;;  %v6089_v20 = vld [vmem:[%s9029_s0 + $0x1d8] sm:$0xff]  ;;  %v137_v46 = vmax.f32 %v104_v15, %v6064_v11  ;;  %v138_v47 = vmax.f32 %v105_v16, %v6069_v12  ;;  %v139_v48 = vmax.f32 %v106_v17, %v6074_v13 }
  0x15   :  { %v6094_v21 = vld [vmem:[%s9029_s0 + $0x1e0] sm:$0xff]  ;;  %v4522_v26 = vld [vmem:[%s9029_s0 + $0x1e8] sm:$0xff]  ;;  %v4523_v27 = vld [vmem:[%s9029_s0 + $0x1f0] sm:$0xff]  ;;  %v140_v52 = vmax.f32 %v107_v22, %v6079_v18  ;;  %v141_v53 = vmax.f32 %v108_v23, %v6084_v19  ;;  %v142_v54 = vmax.f32 %v109_v24, %v6089_v20 }
  0x16   :  { %v4525_v28 = vld [vmem:[%s9029_s0 + $0x200] sm:$0xff]  ;;  %v4526_v29 = vld [vmem:[%s9029_s0 + $0x208] sm:$0xff]  ;;  %v6111_v32 = vld [vmem:[%s9029_s0 + $0x1f8] sm:$0xff]  ;;  %v143_v55 = vmax.f32 %v110_v25, %v6094_v21  ;;  %v144_v59 = vmax.f32 %v111_v30, %v4522_v26  ;;  %v145_v60 = vmax.f32 %v112_v31, %v4523_v27 }
  0x17   :  { %v4527_v35 = vld [vmem:[%s9029_s0 + $0x210] sm:$0xff]  ;;  %v4528_v36 = vld [vmem:[%s9029_s0 + $0x218] sm:$0xff]  ;;  %v4529_v37 = vld [vmem:[%s9029_s0 + $0x220] sm:$0xff]  ;;  %v164_v63 = vmax.f32 %v131_v33, %v4525_v28  ;;  %v165_v0 = vmax.f32 %v132_v34, %v4526_v29  ;;  %v146_v2 = vmax.f32 %v113_v38, %v6111_v32 }
  0x18   :  { %v4530_v42 = vld [vmem:[%s9029_s0 + $0x228] sm:$0xff]  ;;  %v4531_v43 = vld [vmem:[%s9029_s0 + $0x230] sm:$0xff]  ;;  %v4532_v44 = vld [vmem:[%s9029_s0 + $0x238] sm:$0xff]  ;;  %v166_v3 = vmax.f32 %v133_v39, %v4527_v35  ;;  %v167_v4 = vmax.f32 %v134_v40, %v4528_v36  ;;  %v168_v5 = vmax.f32 %v135_v41, %v4529_v37 }
  0x19   :  { %v4533_v49 = vld [vmem:[%s9029_s0 + $0x240] sm:$0xff]  ;;  %v4534_v50 = vld [vmem:[%s9029_s0 + $0x248] sm:$0xff]  ;;  %v4535_v51 = vld [vmem:[%s9029_s0 + $0x250] sm:$0xff]  ;;  %v169_v9 = vmax.f32 %v136_v45, %v4530_v42  ;;  %v170_v10 = vmax.f32 %v137_v46, %v4531_v43  ;;  %v171_v11 = vmax.f32 %v138_v47, %v4532_v44 }
  0x1a   :  { %v4536_v56 = vld [vmem:[%s9029_s0 + $0x258] sm:$0xff]  ;;  %v4537_v57 = vld [vmem:[%s9029_s0 + $0x260] sm:$0xff]  ;;  %v4538_v58 = vld [vmem:[%s9029_s0 + $0x268] sm:$0xff]  ;;  %v172_v12 = vmax.f32 %v139_v48, %v4533_v49  ;;  %v173_v16 = vmax.f32 %v140_v52, %v4534_v50  ;;  %v174_v17 = vmax.f32 %v141_v53, %v4535_v51 }
  0x1b   :  { %v4539_v61 = vld [vmem:[%s9029_s0 + $0x270] sm:$0xff]  ;;  %v4540_v62 = vld [vmem:[%s9029_s0 + $0x278] sm:$0xff]  ;;  %v4541_v1 = vld [vmem:[%s9029_s0 + $0x280] sm:$0xff]  ;;  %v175_v18 = vmax.f32 %v142_v54, %v4536_v56  ;;  %v176_v19 = vmax.f32 %v143_v55, %v4537_v57  ;;  %v177_v23 = vmax.f32 %v144_v59, %v4538_v58 }
  0x1c   :  { %v4542_v6 = vld [vmem:[%s9029_s0 + $0x288] sm:$0xff]  ;;  %v4543_v7 = vld [vmem:[%s9029_s0 + $0x290] sm:$0xff]  ;;  %v4544_v8 = vld [vmem:[%s9029_s0 + $0x298] sm:$0xff]  ;;  %v178_v24 = vmax.f32 %v145_v60, %v4539_v61  ;;  %v197_v28 = vmax.f32 %v164_v63, %v4541_v1  ;;  %v179_v30 = vmax.f32 %v146_v2, %v4540_v62 }
  0x1d   :  { %v4545_v13 = vld [vmem:[%s9029_s0 + $0x2a0] sm:$0xff]  ;;  %v4546_v14 = vld [vmem:[%s9029_s0 + $0x2a8] sm:$0xff]  ;;  %v4547_v15 = vld [vmem:[%s9029_s0 + $0x2b0] sm:$0xff]  ;;  %v198_v29 = vmax.f32 %v165_v0, %v4542_v6  ;;  %v199_v34 = vmax.f32 %v166_v3, %v4543_v7  ;;  %v200_v35 = vmax.f32 %v167_v4, %v4544_v8 }
  0x1e   :  { %v4548_v20 = vld [vmem:[%s9029_s0 + $0x2b8] sm:$0xff]  ;;  %v4549_v21 = vld [vmem:[%s9029_s0 + $0x2c0] sm:$0xff]  ;;  %v4550_v22 = vld [vmem:[%s9029_s0 + $0x2c8] sm:$0xff]  ;;  %v201_v36 = vmax.f32 %v168_v5, %v4545_v13  ;;  %v202_v37 = vmax.f32 %v169_v9, %v4546_v14  ;;  %v203_v38 = vmax.f32 %v170_v10, %v4547_v15 }
  0x1f   :  { %v4551_v25 = vld [vmem:[%s9029_s0 + $0x2d0] sm:$0xff]  ;;  %v4552_v26 = vld [vmem:[%s9029_s0 + $0x2d8] sm:$0xff]  ;;  %v4553_v27 = vld [vmem:[%s9029_s0 + $0x2e0] sm:$0xff]  ;;  %v204_v39 = vmax.f32 %v171_v11, %v4548_v20  ;;  %v205_v40 = vmax.f32 %v172_v12, %v4549_v21  ;;  %v206_v44 = vmax.f32 %v173_v16, %v4550_v22 }
  0x20   :  { %v4554_v31 = vld [vmem:[%s9029_s0 + $0x2e8] sm:$0xff]  ;;  %v4555_v32 = vld [vmem:[%s9029_s0 + $0x2f0] sm:$0xff]  ;;  %v4556_v33 = vld [vmem:[%s9029_s0 + $0x2f8] sm:$0xff]  ;;  %v207_v45 = vmax.f32 %v174_v17, %v4551_v25  ;;  %v208_v46 = vmax.f32 %v175_v18, %v4552_v26  ;;  %v209_v47 = vmax.f32 %v176_v19, %v4553_v27 }
  0x21   :  { %v4557_v41 = vld [vmem:[%s9029_s0 + $0x300] sm:$0xff]  ;;  %v4558_v42 = vld [vmem:[%s9029_s0 + $0x308] sm:$0xff]  ;;  %v4559_v43 = vld [vmem:[%s9029_s0 + $0x310] sm:$0xff]  ;;  %v210_v51 = vmax.f32 %v177_v23, %v4554_v31  ;;  %v211_v52 = vmax.f32 %v178_v24, %v4555_v32  ;;  %v212_v58 = vmax.f32 %v179_v30, %v4556_v33 }
  0x22   :  { %v4560_v48 = vld [vmem:[%s9029_s0 + $0x318] sm:$0xff]  ;;  %v4561_v49 = vld [vmem:[%s9029_s0 + $0x320] sm:$0xff]  ;;  %v4562_v50 = vld [vmem:[%s9029_s0 + $0x328] sm:$0xff]  ;;  %v230_v56 = vmax.f32 %v197_v28, %v4557_v41  ;;  %v6246_v57 = vmax.f32 %v198_v29, %v4558_v42  ;;  %v232_v62 = vmax.f32 %v199_v34, %v4559_v43 }
  0x23   :  { %v4563_v53 = vld [vmem:[%s9029_s0 + $0x330] sm:$0xff]  ;;  %v4564_v54 = vld [vmem:[%s9029_s0 + $0x338] sm:$0xff]  ;;  %v4565_v55 = vld [vmem:[%s9029_s0 + $0x340] sm:$0xff]  ;;  %v6257_v63 = vmax.f32 %v200_v35, %v4560_v48  ;;  %v6259_v0 = vmax.f32 %v201_v36, %v4561_v49  ;;  %v6270_v4 = vmax.f32 %v202_v37, %v4562_v50 }
  0x24   :  { %v4566_v59 = vld [vmem:[%s9029_s0 + $0x348] sm:$0xff]  ;;  %v4567_v60 = vld [vmem:[%s9029_s0 + $0x350] sm:$0xff]  ;;  %v4568_v61 = vld [vmem:[%s9029_s0 + $0x358] sm:$0xff]  ;;  %v6272_v5 = vmax.f32 %v203_v38, %v4563_v53  ;;  %v6274_v6 = vmax.f32 %v204_v39, %v4564_v54  ;;  %v6276_v7 = vmax.f32 %v205_v40, %v4565_v55 }
  0x25   :  { %v4569_v1 = vld [vmem:[%s9029_s0 + $0x360] sm:$0xff]  ;;  %v4570_v2 = vld [vmem:[%s9029_s0 + $0x368] sm:$0xff]  ;;  %v4571_v3 = vld [vmem:[%s9029_s0 + $0x370] sm:$0xff]  ;;  %v6281_v9 = vmax.f32 %v206_v44, %v4566_v59  ;;  %v6283_v10 = vmax.f32 %v207_v45, %v4567_v60  ;;  %v6285_v11 = vmax.f32 %v208_v46, %v4568_v61 }
  0x26   :  { %v4572_v8 = vld [vmem:[%s9029_s0 + $0x378] sm:$0xff]  ;;  %v6287_v12 = vmax.f32 %v209_v47, %v4569_v1  ;;  %v4573_v13 = vld [vmem:[%s9029_s0 + $0x380] sm:$0xff]  ;;  %v6295_v14 = vld [vmem:[%s9029_s0 + $0x388] sm:$0xff]  ;;  %v6297_v15 = vmax.f32 %v210_v51, %v4570_v2  ;;  %v6299_v16 = vmax.f32 %v211_v52, %v4571_v3 }
  0x27   :  { %v4575_v17 = vld [vmem:[%s9029_s0 + $0x390] sm:$0xff]  ;;  %v6307_v18 = vld [vmem:[%s9029_s0 + $0x398] sm:$0xff]  ;;  %v6312_v19 = vld [vmem:[%s9029_s0 + $0x3a0] sm:$0xff]  ;;  %v263_v20 = vmax.f32 %v230_v56, %v4573_v13  ;;  %v264_v21 = vmax.f32 %v6246_v57, %v6295_v14  ;;  %v6316_v22 = vmax.f32 %v212_v58, %v4572_v8 }
  0x28   :  { %v6321_v23 = vld [vmem:[%s9029_s0 + $0x3a8] sm:$0xff]  ;;  %v6326_v24 = vld [vmem:[%s9029_s0 + $0x3b0] sm:$0xff]  ;;  %v6331_v25 = vld [vmem:[%s9029_s0 + $0x3b8] sm:$0xff]  ;;  %v265_v26 = vmax.f32 %v232_v62, %v4575_v17  ;;  %v266_v27 = vmax.f32 %v6257_v63, %v6307_v18  ;;  %v267_v28 = vmax.f32 %v6259_v0, %v6312_v19 }
  0x29   :  { %v6340_v29 = vld [vmem:[%s9029_s0 + $0x3c0] sm:$0xff]  ;;  %v6345_v30 = vld [vmem:[%s9029_s0 + $0x3c8] sm:$0xff]  ;;  %v6350_v31 = vld [vmem:[%s9029_s0 + $0x3d0] sm:$0xff]  ;;  %v268_v32 = vmax.f32 %v6270_v4, %v6321_v23  ;;  %v269_v33 = vmax.f32 %v6272_v5, %v6326_v24  ;;  %v270_v34 = vmax.f32 %v6274_v6, %v6331_v25 }
  0x2a   :  { %v6361_v35 = vld [vmem:[%s9029_s0 + $0x3d8] sm:$0xff]  ;;  %v6366_v36 = vld [vmem:[%s9029_s0 + $0x3e0] sm:$0xff]  ;;  %v6371_v37 = vld [vmem:[%s9029_s0 + $0x3e8] sm:$0xff]  ;;  %v271_v38 = vmax.f32 %v6276_v7, %v6340_v29  ;;  %v272_v39 = vmax.f32 %v6281_v9, %v6345_v30  ;;  %v273_v40 = vmax.f32 %v6283_v10, %v6350_v31 }
  0x2b   :  { %v6382_v41 = vld [vmem:[%s9029_s0 + $0x3f0] sm:$0xff]  ;;  %v6387_v42 = vld [vmem:[%s9029_s0 + $0x3f8] sm:$0xff]  ;;  %v274_v43 = vmax.f32 %v6285_v11, %v6361_v35  ;;  %v275_v44 = vmax.f32 %v6287_v12, %v6366_v36  ;;  %v276_v45 = vmax.f32 %v6297_v15, %v6371_v37 }
  0x2c   :  { %v277_v46 = vmax.f32 %v6299_v16, %v6382_v41  ;;  %v278_v47 = vmax.f32 %v6316_v22, %v6387_v42 }
  0x2d   :  { %v958_v48 = vld [vmem:[%s9020_s1 + $0xf8] sm:$0xff]  ;;  %s5733_s16 = smov 4   ;;  %v6412_v50 = vld [vmem:[%s9020_s1 + $0xf0] sm:$0xff]  ;;  %v5734_v51 = vmov 0.0   ;;  %vm328_vm0 = vcmask 31744   ;;  %vm330_vm1 = vcmask 25600  }
  0x2e   :  { %v6405_v49 = vld [vmem:[%s9020_s1 + $0x78] sm:$0xff]  ;;  %428 = vrot.lane.b32.xlu0 %v263_v20, %s5733_s16  ;;  %432 = vrot.lane.b32.xlu1 %v265_v26, %s5733_s16  ;;  %289 = vst [vmem:[#allocation3 + $0xa] sm:$0x1] %v5734_v51  ;;  %309 = vst [vmem:[#allocation3 + $0x13] sm:$0x1] %v5734_v51  ;;  %vm370_vm2 = vcmask 1047840  }
  0x2f   :  { %vm372_vm3 = vcmask 1041696   ;;  %279 = vst [vmem:[#allocation3] sm:$0xff] %v5734_v51  ;;  %280 = vst [vmem:[#allocation3 + $0x8] sm:$0x3] %v5734_v51  ;;  %4653 = vmatprep.subr.mxu0 %v958_v48  ;;  %v990_v52 = vld [vmem:[%s9020_s1 + $0x1f8] sm:$0xff]  ;;  %v941_v53 = vld [vmem:[%s9020_s1 + $0x70] sm:$0xff] }
  0x30   :  { %281 = vst [vmem:[#allocation3 + $0x64] sm:$0xff] %v5734_v51  ;;  %282 = vst [vmem:[#allocation3 + $0x6c] sm:$0x3] %v5734_v51  ;;  %4654 = vmatpush3.msra.mxu0 %v6405_v49  ;;  %4733 = vmatprep.subr.mxu1 %v990_v52  ;;  %v974_v54 = vld [vmem:[%s9020_s1 + $0x178] sm:$0xff]  ;;  %v956_v55 = vld [vmem:[%s9020_s1 + $0xe8] sm:$0xff]  ;;  %vm477_vm4 = vcmask 293920  }
  0x31   :  { %284 = vst [vmem:[#allocation3 + $0x5a] sm:$0xff] %v5734_v51  ;;  %285 = vst [vmem:[#allocation3 + $0x62] sm:$0x3] %v5734_v51  ;;  %4655 = vmatprep.subr.mxu0 %v6412_v50  ;;  %4734 = vmatpush3.msra.mxu1 %v974_v54  ;;  %v989_v56 = vld [vmem:[%s9020_s1 + $0x1f0] sm:$0xff]  ;;  %v940_v59 = vld [vmem:[%s9020_s1 + $0x68] sm:$0xff]  ;;  %vm1804_vm5 = vcmask 523264  }
  0x32   :  { %286 = vst [vmem:[#allocation3 + $0xbe] sm:$0xff] %v5734_v51  ;;  %287 = vst [vmem:[#allocation3 + $0xc6] sm:$0x3] %v5734_v51  ;;  %v973_v58 = vld [vmem:[%s9020_s1 + $0x170] sm:$0xff]  ;;  %430 = vrot.lane.b32.xlu0 %v264_v21, %s5733_s16  ;;  %434 = vrot.lane.b32.xlu1 %v266_v27, %s5733_s16  ;;  %v988_v60 = vld [vmem:[%s9020_s1 + $0x1e8] sm:$0xff] }
  0x33   :  { %290 = vst [vmem:[#allocation3 + $0x14] sm:$0x1] %v5734_v51  ;;  %291 = vst [vmem:[#allocation3 + $0x1e] sm:$0x1] %v5734_v51  ;;  %4656 = vmatpush3.msra.mxu0 %v941_v53  ;;  %4735 = vmatprep.subr.mxu1 %v989_v56  ;;  %v955_v57 = vld [vmem:[%s9020_s1 + $0xe0] sm:$0xff]  ;;  %v972_v61 = vld [vmem:[%s9020_s1 + $0x168] sm:$0xff] }
  0x34   :  { %292 = vst [vmem:[#allocation3 + $0x28] sm:$0x1] %v5734_v51  ;;  %293 = vst [vmem:[#allocation3 + $0x32] sm:$0x1] %v5734_v51  ;;  %4657 = vmatprep.subr.mxu0 %v956_v55  ;;  %4736 = vmatpush3.msra.mxu1 %v973_v58  ;;  %v939_v62 = vld [vmem:[%s9020_s1 + $0x60] sm:$0xff]  ;;  %v954_v1 = vld [vmem:[%s9020_s1 + $0xd8] sm:$0xff] }
  0x35   :  { %294 = vst [vmem:[#allocation3 + $0x3c] sm:$0x1] %v5734_v51  ;;  %295 = vst [vmem:[#allocation3 + $0x46] sm:$0x1] %v5734_v51  ;;  %4658 = vmatpush3.msra.mxu0 %v940_v59  ;;  %4737 = vmatprep.subr.mxu1 %v988_v60  ;;  %v987_v63 = vld [vmem:[%s9020_s1 + $0x1e0] sm:$0xff]  ;;  %v938_v3 = vld [vmem:[%s9020_s1 + $0x58] sm:$0xff] }
  0x36   :  { %296 = vst [vmem:[#allocation3 + $0x50] sm:$0x1] %v5734_v51  ;;  %299 = vst [vmem:[#allocation3 + $0x6e] sm:$0x1] %v5734_v51  ;;  %438 = vrot.lane.b32.xlu1 %v268_v32, %s5733_s16  ;;  %436 = vrot.lane.b32.xlu0 %v267_v28, %s5733_s16  ;;  %v971_v2 = vld [vmem:[%s9020_s1 + $0x160] sm:$0xff]  ;;  %v986_v0 = vld [vmem:[%s9020_s1 + $0x1d8] sm:$0xff] }
  0x37   :  { %300 = vst [vmem:[#allocation3 + $0x78] sm:$0x1] %v5734_v51  ;;  %301 = vst [vmem:[#allocation3 + $0x82] sm:$0x1] %v5734_v51  ;;  %4659 = vmatprep.subr.mxu0 %v955_v57  ;;  %4738 = vmatpush3.msra.mxu1 %v972_v61  ;;  %v953_v4 = vld [vmem:[%s9020_s1 + $0xd0] sm:$0xff]  ;;  %v970_v8 = vld [vmem:[%s9020_s1 + $0x158] sm:$0xff] }
  0x38   :  { %302 = vst [vmem:[#allocation3 + $0x8c] sm:$0x1] %v5734_v51  ;;  %303 = vst [vmem:[#allocation3 + $0x96] sm:$0x1] %v5734_v51  ;;  %4660 = vmatpush3.msra.mxu0 %v939_v62  ;;  %4739 = vmatprep.subr.mxu1 %v987_v63  ;;  %v937_v13 = vld [vmem:[%s9020_s1 + $0x50] sm:$0xff]  ;;  %v952_v7 = vld [vmem:[%s9020_s1 + $0xc8] sm:$0xff] }
  0x39   :  { %304 = vst [vmem:[#allocation3 + $0xa0] sm:$0x1] %v5734_v51  ;;  %305 = vst [vmem:[#allocation3 + $0xaa] sm:$0x1] %v5734_v51  ;;  %4661 = vmatprep.subr.mxu0 %v954_v1  ;;  %4740 = vmatpush3.msra.mxu1 %v971_v2  ;;  %v985_v14 = vld [vmem:[%s9020_s1 + $0x1d0] sm:$0xff]  ;;  %v936_v17 = vld [vmem:[%s9020_s1 + $0x48] sm:$0xff] }
  0x3a   :  { %306 = vst [vmem:[#allocation3 + $0xb4] sm:$0x1] %v5734_v51  ;;  %310 = vst [vmem:[#allocation3 + $0x1d] sm:$0x1] %v5734_v51  ;;  %444 = vrot.lane.b32.xlu1 %v271_v38, %s5733_s16  ;;  %440 = vrot.lane.b32.xlu0 %v269_v33, %s5733_s16  ;;  %v969_v5 = vld [vmem:[%s9020_s1 + $0x150] sm:$0xff]  ;;  %v984_v18 = vld [vmem:[%s9020_s1 + $0x1c8] sm:$0xff] }
  0x3b   :  { %311 = vst [vmem:[#allocation3 + $0x27] sm:$0x1] %v5734_v51  ;;  %312 = vst [vmem:[#allocation3 + $0x31] sm:$0x1] %v5734_v51  ;;  %4662 = vmatpush3.msra.mxu0 %v938_v3  ;;  %4741 = vmatprep.subr.mxu1 %v986_v0  ;;  %v951_v19 = vld [vmem:[%s9020_s1 + $0xc0] sm:$0xff]  ;;  %v968_v20 = vld [vmem:[%s9020_s1 + $0x148] sm:$0xff] }
  0x3c   :  { %313 = vst [vmem:[#allocation3 + $0x3b] sm:$0x1] %v5734_v51  ;;  %314 = vst [vmem:[#allocation3 + $0x45] sm:$0x1] %v5734_v51  ;;  %4663 = vmatprep.subr.mxu0 %v953_v4  ;;  %4742 = vmatpush3.msra.mxu1 %v970_v8  ;;  %v935_v10 = vld [vmem:[%s9020_s1 + $0x40] sm:$0xff]  ;;  %v950_v21 = vld [vmem:[%s9020_s1 + $0xb8] sm:$0xff] }
  0x3d   :  { %315 = vst [vmem:[#allocation3 + $0x4f] sm:$0x1] %v5734_v51  ;;  %316 = vst [vmem:[#allocation3 + $0x59] sm:$0x1] %v5734_v51  ;;  %4664 = vmatpush3.msra.mxu0 %v937_v13  ;;  %4743 = vmatprep.subr.mxu1 %v985_v14  ;;  %v983_v9 = vld [vmem:[%s9020_s1 + $0x1c0] sm:$0xff]  ;;  %v934_v24 = vld [vmem:[%s9020_s1 + $0x38] sm:$0xff] }
  0x3e   :  { %319 = vst [vmem:[#allocation3 + $0x77] sm:$0x1] %v5734_v51  ;;  %320 = vst [vmem:[#allocation3 + $0x81] sm:$0x1] %v5734_v51  ;;  %448 = vrot.lane.b32.xlu1 %v273_v40, %s5733_s16  ;;  %446 = vrot.lane.b32.xlu0 %v272_v39, %s5733_s16  ;;  %v967_v23 = vld [vmem:[%s9020_s1 + $0x140] sm:$0xff]  ;;  %v982_v26 = vld [vmem:[%s9020_s1 + $0x1b8] sm:$0xff] }
  0x3f   :  { %321 = vst [vmem:[#allocation3 + $0x8b] sm:$0x1] %v5734_v51  ;;  %322 = vst [vmem:[#allocation3 + $0x95] sm:$0x1] %v5734_v51  ;;  %4665 = vmatprep.subr.mxu0 %v952_v7  ;;  %4744 = vmatpush3.msra.mxu1 %v969_v5  ;;  %v949_v12 = vld [vmem:[%s9020_s1 + $0xb0] sm:$0xff]  ;;  %v966_v11 = vld [vmem:[%s9020_s1 + $0x138] sm:$0xff] }
  0x40   :  { %323 = vst [vmem:[#allocation3 + $0x9f] sm:$0x1] %v5734_v51  ;;  %324 = vst [vmem:[#allocation3 + $0xa9] sm:$0x1] %v5734_v51  ;;  %4666 = vmatpush3.msra.mxu0 %v936_v17  ;;  %4745 = vmatprep.subr.mxu1 %v984_v18  ;;  %v933_v27 = vld [vmem:[%s9020_s1 + $0x30] sm:$0xff]  ;;  %v948_v29 = vld [vmem:[%s9020_s1 + $0xa8] sm:$0xff] }
  0x41   :  { %325 = vst [vmem:[#allocation3 + $0xb3] sm:$0x1] %v5734_v51  ;;  %326 = vst [vmem:[#allocation3 + $0xbd] sm:$0x1] %v5734_v51  ;;  %4667 = vmatprep.subr.mxu0 %v951_v19  ;;  %4746 = vmatpush3.msra.mxu1 %v968_v20  ;;  %v981_v28 = vld [vmem:[%s9020_s1 + $0x1b0] sm:$0xff]  ;;  %v932_v6 = vld [vmem:[%s9020_s1 + $0x28] sm:$0xff] }
  0x42   :  { %332 = vst.msk [vmem:[#allocation3 + $0xa] sm:$0xff] %vm328_vm0, %v5734_v51  ;;  %288 = vst [vmem:[#allocation3] sm:$0x1] %v5734_v51  ;;  %452 = vrot.lane.b32.xlu1 %v275_v44, %s5733_s16  ;;  %450 = vrot.lane.b32.xlu0 %v274_v43, %s5733_s16  ;;  %v965_v30 = vld [vmem:[%s9020_s1 + $0x130] sm:$0xff]  ;;  %v980_v15 = vld [vmem:[%s9020_s1 + $0x1a8] sm:$0xff] }
  0x43   :  { %333 = vst.msk [vmem:[#allocation3 + $0x12] sm:$0x3] %vm330_vm1, %v5734_v51  ;;  %297 = vst [vmem:[#allocation3 + $0x5a] sm:$0x1] %v5734_v51  ;;  %4668 = vmatpush3.msra.mxu0 %v935_v10  ;;  %4747 = vmatprep.subr.mxu1 %v983_v9  ;;  %v947_v25 = vld [vmem:[%s9020_s1 + $0xa0] sm:$0xff]  ;;  %v964_v31 = vld [vmem:[%s9020_s1 + $0x128] sm:$0xff] }
  0x44   :  { %298 = vst [vmem:[#allocation3 + $0x64] sm:$0x1] %v5734_v51  ;;  %307 = vst [vmem:[#allocation3 + $0xbe] sm:$0x1] %v5734_v51  ;;  %4669 = vmatprep.subr.mxu0 %v950_v21  ;;  %4748 = vmatpush3.msra.mxu1 %v967_v23  ;;  %v931_v32 = vld [vmem:[%s9020_s1 + $0x20] sm:$0xff]  ;;  %v930_v22 = vld [vmem:[%s9020_s1 + $0x18] sm:$0xff] }
  0x45   :  { %308 = vst [vmem:[#allocation3 + $0x9] sm:$0x1] %v5734_v51  ;;  %317 = vst [vmem:[#allocation3 + $0x63] sm:$0x1] %v5734_v51  ;;  %4670 = vmatpush3.msra.mxu0 %v934_v24  ;;  %4749 = vmatprep.subr.mxu1 %v982_v26  ;;  %v979_v33 = vld [vmem:[%s9020_s1 + $0x1a0] sm:$0xff]  ;;  %v978_v35 = vld [vmem:[%s9020_s1 + $0x198] sm:$0xff] }
  0x46   :  { %318 = vst [vmem:[#allocation3 + $0x6d] sm:$0x1] %v5734_v51  ;;  %327 = vst [vmem:[#allocation3 + $0xc7] sm:$0x1] %v5734_v51  ;;  %442 = vrot.lane.b32.xlu1 %v270_v34, %s5733_s16  ;;  %454 = vrot.lane.b32.xlu0 %v276_v45, %s5733_s16  ;;  %v946_v34 = vld [vmem:[%s9020_s1 + $0x98] sm:$0xff]  ;;  %v963_v16 = vld [vmem:[%s9020_s1 + $0x120] sm:$0xff] }
  0x47   :  { %334 = vst.msk [vmem:[#allocation3 + $0x14] sm:$0xff] %vm328_vm0, %v5734_v51  ;;  %336 = vst.msk [vmem:[#allocation3 + $0x1e] sm:$0xff] %vm328_vm0, %v5734_v51  ;;  %4671 = vmatprep.subr.mxu0 %v949_v12  ;;  %4750 = vmatpush3.msra.mxu1 %v966_v11  ;;  %v945_v36 = vld [vmem:[%s9020_s1 + $0x90] sm:$0xff]  ;;  %v962_v39 = vld [vmem:[%s9020_s1 + $0x118] sm:$0xff] }
  0x48   :  { %335 = vst.msk [vmem:[#allocation3 + $0x1c] sm:$0x3] %vm330_vm1, %v5734_v51  ;;  %337 = vst.msk [vmem:[#allocation3 + $0x26] sm:$0x3] %vm330_vm1, %v5734_v51  ;;  %4672 = vmatpush3.msra.mxu0 %v933_v27  ;;  %4751 = vmatprep.subr.mxu1 %v981_v28  ;;  %v929_v38 = vld [vmem:[%s9020_s1 + $0x10] sm:$0xff]  ;;  %v944_v40 = vld [vmem:[%s9020_s1 + $0x88] sm:$0xff] }
  0x49   :  { %338 = vst.msk [vmem:[#allocation3 + $0x28] sm:$0xff] %vm328_vm0, %v5734_v51  ;;  %340 = vst.msk [vmem:[#allocation3 + $0x32] sm:$0xff] %vm328_vm0, %v5734_v51  ;;  %4673 = vmatprep.subr.mxu0 %v948_v29  ;;  %4752 = vmatpush3.msra.mxu1 %v965_v30  ;;  %v977_v41 = vld [vmem:[%s9020_s1 + $0x190] sm:$0xff]  ;;  %v928_v42 = vld [vmem:[%s9020_s1 + $0x8] sm:$0xff] }
  0x4a   :  { %339 = vst.msk [vmem:[#allocation3 + $0x30] sm:$0x3] %vm330_vm1, %v5734_v51  ;;  %341 = vst.msk [vmem:[#allocation3 + $0x3a] sm:$0x3] %vm330_vm1, %v5734_v51  ;;  %456 = vrot.lane.b32.xlu0 %v277_v46, %s5733_s16  ;;  %458 = vrot.lane.b32.xlu1 %v278_v47, %s5733_s16  ;;  %v961_v43 = vld [vmem:[%s9020_s1 + $0x110] sm:$0xff]  ;;  %v943_v44 = vld [vmem:[%s9020_s1 + $0x80] sm:$0xff] }
  0x4b   :  { %342 = vst.msk [vmem:[#allocation3 + $0x3c] sm:$0xff] %vm328_vm0, %v5734_v51  ;;  %344 = vst.msk [vmem:[#allocation3 + $0x46] sm:$0xff] %vm328_vm0, %v5734_v51  ;;  %4674 = vmatpush3.msra.mxu0 %v932_v6  ;;  %4753 = vmatprep.subr.mxu1 %v980_v15  ;;  %v976_v45 = vld [vmem:[%s9020_s1 + $0x188] sm:$0xff]  ;;  %v927_v46 = vld [vmem:[%s9020_s1] sm:$0xff] }
  0x4c   :  { %343 = vst.msk [vmem:[#allocation3 + $0x44] sm:$0x3] %vm330_vm1, %v5734_v51  ;;  %345 = vst.msk [vmem:[#allocation3 + $0x4e] sm:$0x3] %vm330_vm1, %v5734_v51  ;;  %4675 = vmatprep.subr.mxu0 %v947_v25  ;;  %4754 = vmatpush3.msra.mxu1 %v964_v31  ;;  %v960_v47 = vld [vmem:[%s9020_s1 + $0x108] sm:$0xff]  ;;  %v1022_v49 = vld [vmem:[%s9020_s1 + $0x2f8] sm:$0xff] }
  0x4d   :  { %346 = vst.msk [vmem:[#allocation3 + $0x50] sm:$0xff] %vm328_vm0, %v5734_v51  ;;  %352 = vst.msk [vmem:[#allocation3 + $0x6e] sm:$0xff] %vm328_vm0, %v5734_v51  ;;  %4676 = vmatpush3.msra.mxu0 %v931_v32  ;;  %4755 = vmatprep.subr.mxu1 %v979_v33  ;;  %v1006_v50 = vld [vmem:[%s9020_s1 + $0x278] sm:$0xff]  ;;  %v959_v52 = vld [vmem:[%s9020_s1 + $0x100] sm:$0xff] }
  0x4e   :  { %347 = vst.msk [vmem:[#allocation3 + $0x58] sm:$0x3] %vm330_vm1, %v5734_v51  ;;  %353 = vst.msk [vmem:[#allocation3 + $0x76] sm:$0x3] %vm330_vm1, %v5734_v51  ;;  %4677 = vmatprep.subr.mxu0 %v946_v34  ;;  %4756 = vmatpush3.msra.mxu1 %v963_v16  ;;  %v1021_v53 = vld [vmem:[%s9020_s1 + $0x2f0] sm:$0xff]  ;;  %v1054_v55 = vld [vmem:[%s9020_s1 + $0x3f8] sm:$0xff] }
  0x4f   :  { %354 = vst.msk [vmem:[#allocation3 + $0x78] sm:$0xff] %vm328_vm0, %v5734_v51  ;;  %356 = vst.msk [vmem:[#allocation3 + $0x82] sm:$0xff] %vm328_vm0, %v5734_v51  ;;  %4678 = vmatpush3.msra.mxu0 %v930_v22  ;;  %4757 = vmatprep.subr.mxu1 %v978_v35  ;;  %v1005_v54 = vld [vmem:[%s9020_s1 + $0x270] sm:$0xff]  ;;  %v1020_v56 = vld [vmem:[%s9020_s1 + $0x2e8] sm:$0xff] }
  0x50   :  { %355 = vst.msk [vmem:[#allocation3 + $0x80] sm:$0x3] %vm330_vm1, %v5734_v51  ;;  %357 = vst.msk [vmem:[#allocation3 + $0x8a] sm:$0x3] %vm330_vm1, %v5734_v51  ;;  %4679 = vmatprep.subr.mxu0 %v945_v36  ;;  %4758 = vmatpush3.msra.mxu1 %v962_v39  ;;  %v1004_v58 = vld [vmem:[%s9020_s1 + $0x268] sm:$0xff]  ;;  %v1019_v59 = vld [vmem:[%s9020_s1 + $0x2e0] sm:$0xff] }
  0x51   :  { %358 = vst.msk [vmem:[#allocation3 + $0x8c] sm:$0xff] %vm328_vm0, %v5734_v51  ;;  %360 = vst.msk [vmem:[#allocation3 + $0x96] sm:$0xff] %vm328_vm0, %v5734_v51  ;;  %4680 = vmatpush3.msra.mxu0 %v929_v38  ;;  %4759 = vmatprep.subr.mxu1 %v977_v41  ;;  %v1003_v60 = vld [vmem:[%s9020_s1 + $0x260] sm:$0xff]  ;;  %v1018_v57 = vld [vmem:[%s9020_s1 + $0x2d8] sm:$0xff] }
  0x52   :  { %359 = vst.msk [vmem:[#allocation3 + $0x94] sm:$0x3] %vm330_vm1, %v5734_v51  ;;  %361 = vst.msk [vmem:[#allocation3 + $0x9e] sm:$0x3] %vm330_vm1, %v5734_v51  ;;  %4681 = vmatprep.subr.mxu0 %v944_v40  ;;  %4760 = vmatpush3.msra.mxu1 %v961_v43  ;;  %v1002_v61 = vld [vmem:[%s9020_s1 + $0x258] sm:$0xff]  ;;  %v1017_v62 = vld [vmem:[%s9020_s1 + $0x2d0] sm:$0xff] }
  0x53   :  { %362 = vst.msk [vmem:[#allocation3 + $0xa0] sm:$0xff] %vm328_vm0, %v5734_v51  ;;  %364 = vst.msk [vmem:[#allocation3 + $0xaa] sm:$0xff] %vm328_vm0, %v5734_v51  ;;  %4682 = vmatpush3.msra.mxu0 %v928_v42  ;;  %4761 = vmatprep.subr.mxu1 %v976_v45  ;;  %v1001_v63 = vld [vmem:[%s9020_s1 + $0x250] sm:$0xff]  ;;  %v1016_v1 = vld [vmem:[%s9020_s1 + $0x2c8] sm:$0xff] }
  0x54   :  { %363 = vst.msk [vmem:[#allocation3 + $0xa8] sm:$0x3] %vm330_vm1, %v5734_v51  ;;  %365 = vst.msk [vmem:[#allocation3 + $0xb2] sm:$0x3] %vm330_vm1, %v5734_v51  ;;  %4683 = vmatprep.subr.mxu0 %v943_v44  ;;  %4762 = vmatpush3.msra.mxu1 %v960_v47  ;;  %v1000_v2 = vld [vmem:[%s9020_s1 + $0x248] sm:$0xff]  ;;  %v1015_v3 = vld [vmem:[%s9020_s1 + $0x2c0] sm:$0xff] }
  0x55   :  { %366 = vst.msk [vmem:[#allocation3 + $0xb4] sm:$0xff] %vm328_vm0, %v5734_v51  ;;  %329 = vst.msk [vmem:[#allocation3] sm:$0xff] %vm328_vm0, %v5734_v51  ;;  %4684 = vmatpush3.msra.mxu0 %v927_v46  ;;  %v999_v0 = vld [vmem:[%s9020_s1 + $0x240] sm:$0xff]  ;;  %v1014_v4 = vld [vmem:[%s9020_s1 + $0x2b8] sm:$0xff] }
  0x56   :  { %367 = vst.msk [vmem:[#allocation3 + $0xbc] sm:$0x3] %vm330_vm1, %v5734_v51  ;;  %331 = vst.msk [vmem:[#allocation3 + $0x8] sm:$0x3] %vm330_vm1, %v5734_v51  ;;  %4813 = vmatprep.subr.mxu0 %v1022_v49  ;;  %v998_v8 = vld [vmem:[%s9020_s1 + $0x238] sm:$0xff]  ;;  %v1013_v13 = vld [vmem:[%s9020_s1 + $0x2b0] sm:$0xff] }
  0x57   :  { %374 = vst.msk [vmem:[#allocation3 + $0xa] sm:$0xff] %vm370_vm2, %v5734_v51  ;;  %376 = vst.msk [vmem:[#allocation3 + $0x14] sm:$0xff] %vm370_vm2, %v5734_v51  ;;  %v997_v14 = vld [vmem:[%s9020_s1 + $0x230] sm:$0xff]  ;;  %v1012_v7 = vld [vmem:[%s9020_s1 + $0x2a8] sm:$0xff] }
  0x58   :  { %375 = vst.msk [vmem:[#allocation3 + $0x12] sm:$0x3] %vm372_vm3, %v5734_v51  ;;  %377 = vst.msk [vmem:[#allocation3 + $0x1c] sm:$0x3] %vm372_vm3, %v5734_v51  ;;  %v996_v5 = vld [vmem:[%s9020_s1 + $0x228] sm:$0xff]  ;;  %v1011_v17 = vld [vmem:[%s9020_s1 + $0x2a0] sm:$0xff] }
  0x59   :  { %348 = vst.msk [vmem:[#allocation3 + $0x5a] sm:$0xff] %vm328_vm0, %v5734_v51  ;;  %350 = vst.msk [vmem:[#allocation3 + $0x64] sm:$0xff] %vm328_vm0, %v5734_v51  ;;  %v995_v18 = vld [vmem:[%s9020_s1 + $0x220] sm:$0xff]  ;;  %v1010_v19 = vld [vmem:[%s9020_s1 + $0x298] sm:$0xff] }
  0x5a   :  { %349 = vst.msk [vmem:[#allocation3 + $0x62] sm:$0x3] %vm330_vm1, %v5734_v51  ;;  %351 = vst.msk [vmem:[#allocation3 + $0x6c] sm:$0x3] %vm330_vm1, %v5734_v51  ;;  %v994_v20 = vld [vmem:[%s9020_s1 + $0x218] sm:$0xff]  ;;  %v1009_v10 = vld [vmem:[%s9020_s1 + $0x290] sm:$0xff] }
  0x5b   :  { %368 = vst.msk [vmem:[#allocation3 + $0xbe] sm:$0xff] %vm328_vm0, %v5734_v51  ;;  %v993_v9 = vld [vmem:[%s9020_s1 + $0x210] sm:$0xff]  ;;  %v1008_v21 = vld [vmem:[%s9020_s1 + $0x288] sm:$0xff]  ;;  %v1007_v24 = vld [vmem:[%s9020_s1 + $0x280] sm:$0xff] }
  0x5c   :  { %369 = vst.msk [vmem:[#allocation3 + $0xc6] sm:$0x3] %vm330_vm1, %v5734_v51  ;;  %v992_v23 = vld [vmem:[%s9020_s1 + $0x208] sm:$0xff]  ;;  %v991_v26 = vld [vmem:[%s9020_s1 + $0x200] sm:$0xff]  ;;  %v6965_v12 = vld [vmem:[%s9020_s1 + $0x478] sm:$0xff] }
  0x5d   :  { %378 = vst.msk [vmem:[#allocation3 + $0x1e] sm:$0xff] %vm370_vm2, %v5734_v51  ;;  %380 = vst.msk [vmem:[#allocation3 + $0x28] sm:$0xff] %vm370_vm2, %v5734_v51  ;;  %v1038_v32 = vld [vmem:[%s9020_s1 + $0x378] sm:$0xff]  ;;  %v1053_v33 = vld [vmem:[%s9020_s1 + $0x3f0] sm:$0xff] }
  0x5e   :  { %379 = vst.msk [vmem:[#allocation3 + $0x26] sm:$0x3] %vm372_vm3, %v5734_v51  ;;  %381 = vst.msk [vmem:[#allocation3 + $0x30] sm:$0x3] %vm372_vm3, %v5734_v51  ;;  %v1037_v39 = vld [vmem:[%s9020_s1 + $0x370] sm:$0xff]  ;;  %v1052_v40 = vld [vmem:[%s9020_s1 + $0x3e8] sm:$0xff] }
  0x5f   :  { %382 = vst.msk [vmem:[#allocation3 + $0x32] sm:$0xff] %vm370_vm2, %v5734_v51  ;;  %384 = vst.msk [vmem:[#allocation3 + $0x3c] sm:$0xff] %vm370_vm2, %v5734_v51  ;;  %v1036_v46 = vld [vmem:[%s9020_s1 + $0x368] sm:$0xff]  ;;  %v1051_v47 = vld [vmem:[%s9020_s1 + $0x3e0] sm:$0xff] }
  0x60   :  { %383 = vst.msk [vmem:[#allocation3 + $0x3a] sm:$0x3] %vm372_vm3, %v5734_v51  ;;  %385 = vst.msk [vmem:[#allocation3 + $0x44] sm:$0x3] %vm372_vm3, %v5734_v51 }
  0x61   :  { %386 = vst.msk [vmem:[#allocation3 + $0x46] sm:$0xff] %vm370_vm2, %v5734_v51  ;;  %388 = vst.msk [vmem:[#allocation3 + $0x50] sm:$0xff] %vm370_vm2, %v5734_v51 }
  0x62   :  { %387 = vst.msk [vmem:[#allocation3 + $0x4e] sm:$0x3] %vm372_vm3, %v5734_v51  ;;  %389 = vst.msk [vmem:[#allocation3 + $0x58] sm:$0x3] %vm372_vm3, %v5734_v51 }
  0x63   :  { %394 = vst.msk [vmem:[#allocation3 + $0x6e] sm:$0xff] %vm370_vm2, %v5734_v51  ;;  %396 = vst.msk [vmem:[#allocation3 + $0x78] sm:$0xff] %vm370_vm2, %v5734_v51 }
  0x64   :  { %395 = vst.msk [vmem:[#allocation3 + $0x76] sm:$0x3] %vm372_vm3, %v5734_v51  ;;  %397 = vst.msk [vmem:[#allocation3 + $0x80] sm:$0x3] %vm372_vm3, %v5734_v51 }
  0x65   :  { %398 = vst.msk [vmem:[#allocation3 + $0x82] sm:$0xff] %vm370_vm2, %v5734_v51  ;;  %400 = vst.msk [vmem:[#allocation3 + $0x8c] sm:$0xff] %vm370_vm2, %v5734_v51 }
  0x66   :  { %399 = vst.msk [vmem:[#allocation3 + $0x8a] sm:$0x3] %vm372_vm3, %v5734_v51  ;;  %401 = vst.msk [vmem:[#allocation3 + $0x94] sm:$0x3] %vm372_vm3, %v5734_v51 }
  0x67   :  { %402 = vst.msk [vmem:[#allocation3 + $0x96] sm:$0xff] %vm370_vm2, %v5734_v51  ;;  %404 = vst.msk [vmem:[#allocation3 + $0xa0] sm:$0xff] %vm370_vm2, %v5734_v51 }
  0x68   :  { %403 = vst.msk [vmem:[#allocation3 + $0x9e] sm:$0x3] %vm372_vm3, %v5734_v51  ;;  %405 = vst.msk [vmem:[#allocation3 + $0xa8] sm:$0x3] %vm372_vm3, %v5734_v51 }
  0x69   :  { %406 = vst.msk [vmem:[#allocation3 + $0xaa] sm:$0xff] %vm370_vm2, %v5734_v51  ;;  %408 = vst.msk [vmem:[#allocation3 + $0xb4] sm:$0xff] %vm370_vm2, %v5734_v51 }
  0x6a   :  { %407 = vst.msk [vmem:[#allocation3 + $0xb2] sm:$0x3] %vm372_vm3, %v5734_v51  ;;  %409 = vst.msk [vmem:[#allocation3 + $0xbc] sm:$0x3] %vm372_vm3, %v5734_v51 }
  0x6b   :  { %371 = vst.msk [vmem:[#allocation3] sm:$0xff] %vm370_vm2, %v5734_v51  ;;  %390 = vst.msk [vmem:[#allocation3 + $0x5a] sm:$0xff] %vm370_vm2, %v5734_v51 }
  0x6c   :  { %373 = vst.msk [vmem:[#allocation3 + $0x8] sm:$0x3] %vm372_vm3, %v5734_v51  ;;  %391 = vst.msk [vmem:[#allocation3 + $0x62] sm:$0x3] %vm372_vm3, %v5734_v51 }
  0x6d   :  { %392 = vst.msk [vmem:[#allocation3 + $0x64] sm:$0xff] %vm370_vm2, %v5734_v51  ;;  %410 = vst.msk [vmem:[#allocation3 + $0xbe] sm:$0xff] %vm370_vm2, %v5734_v51 }
  0x6e   :  { %393 = vst.msk [vmem:[#allocation3 + $0x6c] sm:$0x3] %vm372_vm3, %v5734_v51  ;;  %411 = vst.msk [vmem:[#allocation3 + $0xc6] sm:$0x3] %vm372_vm3, %v5734_v51  ;;  %v975_v51 = vld [vmem:[%s9020_s1 + $0x180] sm:$0xff] }
  0x6f   :  { %4763 = vmatprep.subr.mxu1 %v975_v51 }
  0x70   :  { %4764 = vmatpush3.msra.mxu1 %v959_v52 }
  0x71   :  { %4893 = vmatprep.subr.mxu1 %v1054_v55 }
  0x72   :  { %v494_v48 = vld [vmem:[#allocation3] sm:$0xff] }
  0x73   :  { %v526_v37 = vld [vmem:[#allocation3 + $0x1] sm:$0xff] }
  0x74   :  { %1135 = vmatprep.mubr.f32.mxu0 %v526_v37  ;;  %v558_v30 = vld [vmem:[#allocation3 + $0x2] sm:$0xff] }
  0x75   :  { %1136 = vmatmul.mubr.f32.vlgmr.msra.gmra.mxu0 %v494_v48 }
  0x76   :  { %4814 = vmatpush3.msra.mxu0 %v1006_v50 }
  0x77   :  { %4815 = vmatprep.subr.mxu0 %v1021_v53  ;;  %v1035_v53 = vld [vmem:[%s9020_s1 + $0x360] sm:$0xff] }
  0x78   :  { %4816 = vmatpush3.msra.mxu0 %v1005_v54  ;;  %v1050_v54 = vld [vmem:[%s9020_s1 + $0x3d8] sm:$0xff] }
  0x79   :  { %4817 = vmatprep.subr.mxu0 %v1020_v56 }
  0x7a   :  { %4818 = vmatpush3.msra.mxu0 %v1004_v58 }
  0x7b   :  { %4819 = vmatprep.subr.mxu0 %v1019_v59 }
  0x7c   :  { %4820 = vmatpush3.msra.mxu0 %v1003_v60 }
  0x7d   :  { %4821 = vmatprep.subr.mxu0 %v1018_v57  ;;  %v1034_v57 = vld [vmem:[%s9020_s1 + $0x358] sm:$0xff] }
  0x7e   :  { %4822 = vmatpush3.msra.mxu0 %v1002_v61  ;;  %v1049_v61 = vld [vmem:[%s9020_s1 + $0x3d0] sm:$0xff] }
  0x7f   :  { %4823 = vmatprep.subr.mxu0 %v1017_v62 }
  0x80   :  { %4824 = vmatpush3.msra.mxu0 %v1001_v63 }
  0x81   :  { %4825 = vmatprep.subr.mxu0 %v1016_v1 }
  0x82   :  { %4826 = vmatpush3.msra.mxu0 %v1000_v2 }
  0x83   :  { %4827 = vmatprep.subr.mxu0 %v1015_v3 }
  0x84   :  { %4828 = vmatpush3.msra.mxu0 %v999_v0  ;;  %v1033_v0 = vld [vmem:[%s9020_s1 + $0x350] sm:$0xff] }
  0x85   :  { %4829 = vmatprep.subr.mxu0 %v1014_v4  ;;  %v1048_v4 = vld [vmem:[%s9020_s1 + $0x3c8] sm:$0xff] }
  0x86   :  { %4830 = vmatpush3.msra.mxu0 %v998_v8  ;;  %v534_v8 = vld [vmem:[#allocation3 + $0x65] sm:$0xff] }
  0x87   :  { %4831 = vmatprep.subr.mxu0 %v1013_v13 }
  0x88   :  { %4832 = vmatpush3.msra.mxu0 %v997_v14 }
  0x89   :  { %4833 = vmatprep.subr.mxu0 %v1012_v7  ;;  %v1032_v7 = vld [vmem:[%s9020_s1 + $0x348] sm:$0xff] }
  0x8a   :  { %4834 = vmatpush3.msra.mxu0 %v996_v5  ;;  %v1047_v5 = vld [vmem:[%s9020_s1 + $0x3c0] sm:$0xff] }
  0x8b   :  { %4835 = vmatprep.subr.mxu0 %v1011_v17  ;;  %v502_v17 = vld [vmem:[#allocation3 + $0x64] sm:$0xff] }
  0x8c   :  { %4836 = vmatpush3.msra.mxu0 %v995_v18 }
  0x8d   :  { %4837 = vmatprep.subr.mxu0 %v1010_v19 }
  0x8e   :  { %4838 = vmatpush3.msra.mxu0 %v994_v20 }
  0x8f   :  { %4839 = vmatprep.subr.mxu0 %v1009_v10  ;;  %v1031_v10 = vld [vmem:[%s9020_s1 + $0x340] sm:$0xff] }
  0x90   :  { %4840 = vmatpush3.msra.mxu0 %v993_v9  ;;  %v1046_v9 = vld [vmem:[%s9020_s1 + $0x3b8] sm:$0xff] }
  0x91   :  { %4841 = vmatprep.subr.mxu0 %v1008_v21  ;;  %v566_v21 = vld [vmem:[#allocation3 + $0x66] sm:$0xff] }
  0x92   :  { %4842 = vmatpush3.msra.mxu0 %v992_v23 }
  0x93   :  { %4843 = vmatprep.subr.mxu0 %v1007_v24 }
  0x94   :  { %4844 = vmatpush3.msra.mxu0 %v991_v26  ;;  %v1030_v26 = vld [vmem:[%s9020_s1 + $0x338] sm:$0xff] }
  0x95   :  { %5453 = vmatprep.subr.mxu0 %v6965_v12 }
  0xa0   :  { %v429_v11 = vpop.permute.xlu0 %428  ;;  %v433_v27 = vpop.permute.xlu1 %432 }
  0xa1   :  { %478 = vst.msk [vmem:[#allocation3 + $0xb] sm:$0xff] %vm477_vm4, %v429_v11  ;;  %480 = vst.msk [vmem:[#allocation3 + $0x1f] sm:$0xff] %vm477_vm4, %v433_v27  ;;  %v1045_v11 = vld [vmem:[%s9020_s1 + $0x3b0] sm:$0xff] }
  0xa4   :  { %v431_v28 = vpop.permute.xlu0 %430  ;;  %v435_v29 = vpop.permute.xlu1 %434 }
  0xa5   :  { %479 = vst.msk [vmem:[#allocation3 + $0x15] sm:$0xff] %vm477_vm4, %v431_v28  ;;  %481 = vst.msk [vmem:[#allocation3 + $0x29] sm:$0xff] %vm477_vm4, %v435_v29 }
  0xa8   :  { %v6972_v6 = vld [vmem:[#allocation3 + $0xb] sm:$0xff]  ;;  %v439_v25 = vpop.permute.xlu1 %438  ;;  %v437_v31 = vpop.permute.xlu0 %436  ;;  %v6983_v34 = vld [vmem:[#allocation3 + $0x1f] sm:$0xff] }
  0xa9   :  { %v590_v15 = vld [vmem:[#allocation3 + $0xa] sm:$0xff]  ;;  %1140 = vmatprep.mubr.f32.mxu0 %v6972_v6  ;;  %483 = vst.msk [vmem:[#allocation3 + $0x3d] sm:$0xff] %vm477_vm4, %v439_v25  ;;  %482 = vst.msk [vmem:[#allocation3 + $0x33] sm:$0xff] %vm477_vm4, %v437_v31  ;;  %v6989_v36 = vld [vmem:[#allocation3 + $0x1e] sm:$0xff] }
  0xaa   :  { %1280 = vmatprep.mubr.f32.mxu1 %v590_v15  ;;  %1141 = vmatmul.mubr.f32.gmra.mxu0 %v590_v15  ;;  %v6993_v38 = vld [vmem:[#allocation3 + $0xc] sm:$0xff]  ;;  %v7029_v52 = vld [vmem:[#allocation3 + $0x20] sm:$0xff] }
  0xab   :  { %1281 = vmatmul.mubr.f32.vlgmr.msra.gmra.mxu1 %v558_v30  ;;  %v1029_v30 = vld [vmem:[%s9020_s1 + $0x330] sm:$0xff]  ;;  %v1044_v15 = vld [vmem:[%s9020_s1 + $0x3a8] sm:$0xff] }
  0xac   :  { %4894 = vmatpush3.msra.mxu1 %v1038_v32  ;;  %v6985_v16 = vld [vmem:[#allocation3 + $0x15] sm:$0xff]  ;;  %v445_v35 = vpop.permute.xlu1 %444  ;;  %v441_v37 = vpop.permute.xlu0 %440  ;;  %v7007_v42 = vld [vmem:[#allocation3 + $0x29] sm:$0xff] }
  0xad   :  { %v6987_v22 = vld [vmem:[#allocation3 + $0x14] sm:$0xff]  ;;  %4895 = vmatprep.subr.mxu1 %v1053_v33  ;;  %1145 = vmatprep.mubr.f32.mxu0 %v6985_v16  ;;  %486 = vst.msk [vmem:[#allocation3 + $0x6f] sm:$0xff] %vm477_vm4, %v445_v35  ;;  %484 = vst.msk [vmem:[#allocation3 + $0x47] sm:$0xff] %vm477_vm4, %v441_v37  ;;  %v7009_v43 = vld [vmem:[#allocation3 + $0x28] sm:$0xff] }
  0xae   :  { %1285 = vmatprep.mubr.f32.mxu1 %v6987_v22  ;;  %1146 = vmatmul.mubr.f32.gmra.mxu0 %v6987_v22  ;;  %v7011_v45 = vld [vmem:[#allocation3 + $0x16] sm:$0xff]  ;;  %v7047_v60 = vld [vmem:[#allocation3 + $0x2a] sm:$0xff]  ;;  %v1028_v33 = vld [vmem:[%s9020_s1 + $0x328] sm:$0xff] }
  0xaf   :  { %1286 = vmatmul.mubr.f32.gmra.mxu1 %v6993_v38  ;;  %1150 = vmatprep.mubr.f32.mxu0 %v6983_v34  ;;  %v1043_v35 = vld [vmem:[%s9020_s1 + $0x3a0] sm:$0xff] }
  0xb0   :  { %1290 = vmatprep.mubr.f32.mxu1 %v6989_v36  ;;  %v449_v41 = vpop.permute.xlu1 %448  ;;  %v447_v44 = vpop.permute.xlu0 %446  ;;  %4896 = vmatpush3.msra.mxu1 %v1037_v39  ;;  %v7025_v49 = vld [vmem:[#allocation3 + $0x33] sm:$0xff]  ;;  %v7043_v56 = vld [vmem:[#allocation3 + $0x3d] sm:$0xff] }
  0xb1   :  { %488 = vst.msk [vmem:[#allocation3 + $0x83] sm:$0xff] %vm477_vm4, %v449_v41  ;;  %487 = vst.msk [vmem:[#allocation3 + $0x79] sm:$0xff] %vm477_vm4, %v447_v44  ;;  %4897 = vmatprep.subr.mxu1 %v1052_v40  ;;  %v7027_v50 = vld [vmem:[#allocation3 + $0x32] sm:$0xff]  ;;  %v7045_v58 = vld [vmem:[#allocation3 + $0x3c] sm:$0xff] }
  0xb2   :  { %1151 = vmatmul.mubr.f32.gmra.mxu0 %v6989_v36  ;;  %4898 = vmatpush3.msra.mxu1 %v1036_v46  ;;  %v7065_v3 = vld [vmem:[#allocation3 + $0x34] sm:$0xff]  ;;  %v7081_v14 = vld [vmem:[#allocation3 + $0x3e] sm:$0xff] }
  0xb3   :  { %1291 = vmatmul.mubr.f32.gmra.mxu1 %v7011_v45  ;;  %1155 = vmatprep.mubr.f32.mxu0 %v7007_v42  ;;  %v1027_v41 = vld [vmem:[%s9020_s1 + $0x320] sm:$0xff]  ;;  %v1042_v44 = vld [vmem:[%s9020_s1 + $0x398] sm:$0xff] }
  0xb4   :  { %1295 = vmatprep.mubr.f32.mxu1 %v7009_v43  ;;  %v453_v48 = vpop.permute.xlu1 %452  ;;  %v451_v51 = vpop.permute.xlu0 %450  ;;  %4899 = vmatprep.subr.mxu1 %v1051_v47  ;;  %v7061_v62 = vld [vmem:[#allocation3 + $0x47] sm:$0xff]  ;;  %v7092_v18 = vld [vmem:[#allocation3 + $0x6f] sm:$0xff] }
  0xb5   :  { %490 = vst.msk [vmem:[#allocation3 + $0x97] sm:$0xff] %vm477_vm4, %v453_v48  ;;  %489 = vst.msk [vmem:[#allocation3 + $0x8d] sm:$0xff] %vm477_vm4, %v451_v51  ;;  %4900 = vmatpush3.msra.mxu1 %v1035_v53  ;;  %v7063_v63 = vld [vmem:[#allocation3 + $0x46] sm:$0xff]  ;;  %v598_v19 = vld [vmem:[#allocation3 + $0x6e] sm:$0xff] }
  0xb6   :  { %1156 = vmatmul.mubr.f32.gmra.mxu0 %v7009_v43  ;;  %4901 = vmatprep.subr.mxu1 %v1050_v54  ;;  %v7094_v20 = vld [vmem:[#allocation3 + $0x48] sm:$0xff]  ;;  %v7120_v29 = vld [vmem:[#allocation3 + $0x70] sm:$0xff] }
  0xb7   :  { %1296 = vmatmul.mubr.f32.gmra.mxu1 %v7029_v52  ;;  %1160 = vmatprep.mubr.f32.mxu0 %v7025_v49  ;;  %v1026_v51 = vld [vmem:[%s9020_s1 + $0x318] sm:$0xff]  ;;  %v1041_v53 = vld [vmem:[%s9020_s1 + $0x390] sm:$0xff] }
  0xb8   :  { %1300 = vmatprep.mubr.f32.mxu1 %v7027_v50  ;;  %v443_v55 = vpop.permute.xlu1 %442  ;;  %v455_v59 = vpop.permute.xlu0 %454  ;;  %4902 = vmatpush3.msra.mxu1 %v1034_v57  ;;  %v7104_v23 = vld [vmem:[#allocation3 + $0x79] sm:$0xff]  ;;  %v7116_v27 = vld [vmem:[#allocation3 + $0x83] sm:$0xff] }
  0xb9   :  { %485 = vst.msk [vmem:[#allocation3 + $0x51] sm:$0xff] %vm477_vm4, %v443_v55  ;;  %491 = vst.msk [vmem:[#allocation3 + $0xa1] sm:$0xff] %vm477_vm4, %v455_v59  ;;  %4903 = vmatprep.subr.mxu1 %v1049_v61  ;;  %v7106_v24 = vld [vmem:[#allocation3 + $0x78] sm:$0xff]  ;;  %v7118_v28 = vld [vmem:[#allocation3 + $0x82] sm:$0xff] }
  0xba   :  { %1161 = vmatmul.mubr.f32.gmra.mxu0 %v7027_v50  ;;  %4904 = vmatpush3.msra.mxu1 %v1033_v0  ;;  %v7136_v32 = vld [vmem:[#allocation3 + $0x7a] sm:$0xff]  ;;  %v7152_v40 = vld [vmem:[#allocation3 + $0x84] sm:$0xff] }
  0xbb   :  { %1301 = vmatmul.mubr.f32.gmra.mxu1 %v7047_v60  ;;  %1165 = vmatprep.mubr.f32.mxu0 %v7043_v56  ;;  %v1025_v57 = vld [vmem:[%s9020_s1 + $0x310] sm:$0xff]  ;;  %v1040_v61 = vld [vmem:[%s9020_s1 + $0x388] sm:$0xff] }
  0xbc   :  { %1305 = vmatprep.mubr.f32.mxu1 %v7045_v58  ;;  %v457_v1 = vpop.permute.xlu0 %456  ;;  %v459_v2 = vpop.permute.xlu1 %458  ;;  %4905 = vmatprep.subr.mxu1 %v1048_v4  ;;  %v7132_v25 = vld [vmem:[#allocation3 + $0x8d] sm:$0xff]  ;;  %v7148_v37 = vld [vmem:[#allocation3 + $0x97] sm:$0xff]  ;;  %v1024_v0 = vld [vmem:[%s9020_s1 + $0x308] sm:$0xff] }
  0xbd   :  { %492 = vst.msk [vmem:[#allocation3 + $0xab] sm:$0xff] %vm477_vm4, %v457_v1  ;;  %493 = vst.msk [vmem:[#allocation3 + $0xb5] sm:$0xff] %vm477_vm4, %v459_v2  ;;  %4906 = vmatpush3.msra.mxu1 %v1032_v7  ;;  %v7134_v31 = vld [vmem:[#allocation3 + $0x8c] sm:$0xff]  ;;  %v7150_v39 = vld [vmem:[#allocation3 + $0x96] sm:$0xff] }
  0xbe   :  { %1166 = vmatmul.mubr.f32.gmra.mxu0 %v7045_v58  ;;  %4907 = vmatprep.subr.mxu1 %v1047_v5  ;;  %v7168_v48 = vld [vmem:[#allocation3 + $0x8e] sm:$0xff]  ;;  %v7184_v59 = vld [vmem:[#allocation3 + $0x98] sm:$0xff] }
  0xbf   :  { %1306 = vmatmul.mubr.f32.gmra.mxu1 %v7065_v3  ;;  %1170 = vmatprep.mubr.f32.mxu0 %v7061_v62  ;;  %v1039_v4 = vld [vmem:[%s9020_s1 + $0x380] sm:$0xff]  ;;  %v1069_v5 = vld [vmem:[%s9020_s1 + $0x470] sm:$0xff] }
  0xc0   :  { %1310 = vmatprep.mubr.f32.mxu1 %v7063_v63  ;;  %v7079_v13 = vld [vmem:[#allocation3 + $0x50] sm:$0xff]  ;;  %4908 = vmatpush3.msra.mxu1 %v1031_v10  ;;  %v7164_v46 = vld [vmem:[#allocation3 + $0xa1] sm:$0xff]  ;;  %v1023_v7 = vld [vmem:[%s9020_s1 + $0x300] sm:$0xff] }
  0xc1   :  { %4909 = vmatprep.subr.mxu1 %v1046_v9  ;;  %v7166_v47 = vld [vmem:[#allocation3 + $0xa0] sm:$0xff] }
  0xc2   :  { %1171 = vmatmul.mubr.f32.gmra.mxu0 %v7063_v63  ;;  %4910 = vmatpush3.msra.mxu1 %v1030_v26  ;;  %v7198_v2 = vld [vmem:[#allocation3 + $0xa2] sm:$0xff] }
  0xc3   :  { %1311 = vmatmul.mubr.f32.gmra.mxu1 %v7081_v14  ;;  %1175 = vmatprep.mubr.f32.mxu0 %v534_v8  ;;  %v734_v9 = vld [vmem:[#allocation3 + $0xbf] sm:$0xff] }
  0xc4   :  { %1315 = vmatprep.mubr.f32.mxu1 %v7079_v13  ;;  %4911 = vmatprep.subr.mxu1 %v1045_v11  ;;  %v7180_v54 = vld [vmem:[#allocation3 + $0xab] sm:$0xff]  ;;  %v7196_v1 = vld [vmem:[#allocation3 + $0xb4] sm:$0xff]  ;;  %v1797_v26 = vld [vmem:[%s9023_s4 + $0x8] sm:$0xff] }
  0xc5   :  { %4912 = vmatpush3.msra.mxu1 %v1029_v30  ;;  %v7182_v55 = vld [vmem:[#allocation3 + $0xaa] sm:$0xff]  ;;  %v733_v10 = vld [vmem:[#allocation3 + $0xb5] sm:$0xff] }
  0xc6   :  { %1176 = vmatmul.mubr.f32.gmra.mxu0 %v502_v17  ;;  %4913 = vmatprep.subr.mxu1 %v1044_v15  ;;  %v7210_v8 = vld [vmem:[#allocation3 + $0xac] sm:$0xff]  ;;  %v1056_v17 = vld [vmem:[%s9020_s1 + $0x408] sm:$0xff]  ;;  %v1796_v11 = vld [vmem:[%s9023_s4] sm:$0xff] }
  0xc7   :  { %1316 = vmatmul.mubr.f32.gmra.mxu1 %v7094_v20  ;;  %1180 = vmatprep.mubr.f32.mxu0 %v7092_v18 }
  0xc8   :  { %1320 = vmatprep.mubr.f32.mxu1 %v598_v19  ;;  %4914 = vmatpush3.msra.mxu1 %v1028_v33 }
  0xc9   :  { %4915 = vmatprep.subr.mxu1 %v1043_v35 }
  0xca   :  { %1181 = vmatmul.mubr.f32.gmra.mxu0 %v598_v19  ;;  %4916 = vmatpush3.msra.mxu1 %v1027_v41  ;;  %v669_v19 = vld [vmem:[#allocation3 + $0xb6] sm:$0xff] }
  0xcb   :  { %1321 = vmatmul.mubr.f32.gmra.mxu1 %v566_v21  ;;  %1185 = vmatprep.mubr.f32.mxu0 %v7104_v23  ;;  %v702_v21 = vld [vmem:[#allocation3 + $0xbe] sm:$0xff] }
  0xcc   :  { %1325 = vmatprep.mubr.f32.mxu1 %v7106_v24  ;;  %4917 = vmatprep.subr.mxu1 %v1042_v44 }
  0xcd   :  { %4918 = vmatpush3.msra.mxu1 %v1026_v51 }
  0xce   :  { %1186 = vmatmul.mubr.f32.gmra.mxu0 %v7106_v24  ;;  %4919 = vmatprep.subr.mxu1 %v1041_v53 }
  0xcf   :  { %1326 = vmatmul.mubr.f32.gmra.mxu1 %v7120_v29  ;;  %1190 = vmatprep.mubr.f32.mxu0 %v7116_v27 }
  0xd0   :  { %1330 = vmatprep.mubr.f32.mxu1 %v7118_v28  ;;  %4920 = vmatpush3.msra.mxu1 %v1025_v57 }
  0xd1   :  { %4921 = vmatprep.subr.mxu1 %v1040_v61 }
  0xd2   :  { %1191 = vmatmul.mubr.f32.gmra.mxu0 %v7118_v28  ;;  %4922 = vmatpush3.msra.mxu1 %v1024_v0 }
  0xd3   :  { %1331 = vmatmul.mubr.f32.gmra.mxu1 %v7136_v32  ;;  %1195 = vmatprep.mubr.f32.mxu0 %v7132_v25 }
  0xd4   :  { %1335 = vmatprep.mubr.f32.mxu1 %v7134_v31  ;;  %4923 = vmatprep.subr.mxu1 %v1039_v4 }
  0xd5   :  { %4924 = vmatpush3.msra.mxu1 %v1023_v7 }
  0xd6   :  { %1196 = vmatmul.mubr.f32.gmra.mxu0 %v7134_v31 }
  0xd7   :  { %1336 = vmatmul.mubr.f32.gmra.mxu1 %v7152_v40  ;;  %1200 = vmatprep.mubr.f32.mxu0 %v7148_v37 }
  0xd8   :  { %1340 = vmatprep.mubr.f32.mxu1 %v7150_v39 }
  0xda   :  { %1201 = vmatmul.mubr.f32.gmra.mxu0 %v7150_v39 }
  0xdb   :  { %1341 = vmatmul.mubr.f32.gmra.mxu1 %v7168_v48  ;;  %1205 = vmatprep.mubr.f32.mxu0 %v7164_v46 }
  0xdc   :  { %1345 = vmatprep.mubr.f32.mxu1 %v7166_v47 }
  0xde   :  { %1206 = vmatmul.mubr.f32.gmra.mxu0 %v7166_v47 }
  0xdf   :  { %1346 = vmatmul.mubr.f32.gmra.mxu1 %v7184_v59  ;;  %1210 = vmatprep.mubr.f32.mxu0 %v7180_v54 }
  0xe0   :  { %1350 = vmatprep.mubr.f32.mxu1 %v7182_v55 }
  0xe2   :  { %1211 = vmatmul.mubr.f32.gmra.mxu0 %v7182_v55 }
  0xe3   :  { %1351 = vmatmul.mubr.f32.gmra.mxu1 %v7198_v2  ;;  %1425 = vmatprep.mubr.f32.mxu0 %v6993_v38  ;;  %v1068_v38 = vld [vmem:[%s9020_s1 + $0x468] sm:$0xff] }
  0xe4   :  { %1355 = vmatprep.mubr.f32.mxu1 %v7196_v1 }
  0xe6   :  { %1426 = vmatmul.mubr.f32.vlgmr.msra.gmra.mxu0 %v6972_v6  ;;  %v1066_v6 = vld [vmem:[%s9020_s1 + $0x458] sm:$0xff] }
  0xe7   :  { %1356 = vmatmul.mubr.f32.gmra.mxu1 %v7210_v8  ;;  %5454 = vmatpush3.msra.mxu0 %v6965_v12  ;;  %v1067_v12 = vld [vmem:[%s9020_s1 + $0x460] sm:$0xff] }
  0xe8   :  { %1430 = vmatprep.mubr.f32.mxu0 %v7011_v45  ;;  %1570 = vmatprep.mubr.f32.mxu1 %v6985_v16 }
  0xe9   :  { %5455 = vmatprep.subr.mxu0 %v1069_v5 }
  0xea   :  { %1431 = vmatmul.mubr.f32.gmra.mxu0 %v6985_v16  ;;  %v1064_v16 = vld [vmem:[%s9020_s1 + $0x448] sm:$0xff] }
  0xeb   :  { %1571 = vmatmul.mubr.f32.vlgmr.msra.gmra.mxu1 %v6987_v22  ;;  %5456 = vmatpush3.msra.mxu0 %v1069_v5  ;;  %v1063_v22 = vld [vmem:[%s9020_s1 + $0x440] sm:$0xff] }
  0xec   :  { %1435 = vmatprep.mubr.f32.mxu0 %v7029_v52  ;;  %1575 = vmatprep.mubr.f32.mxu1 %v6983_v34 }
  0xed   :  { %5457 = vmatprep.subr.mxu0 %v1068_v38 }
  0xee   :  { %5458 = vmatpush3.msra.mxu0 %v1068_v38 }
  0xef   :  { %1436 = vmatmul.mubr.f32.gmra.mxu0 %v6983_v34  ;;  %1576 = vmatmul.mubr.f32.gmra.mxu1 %v6989_v36  ;;  %v1065_v34 = vld [vmem:[%s9020_s1 + $0x450] sm:$0xff]  ;;  %v7263_v36 = vld [vmem:[#allocation3 + $0x52] sm:$0xff] }
  0xf0   :  { %1440 = vmatprep.mubr.f32.mxu0 %v7047_v60  ;;  %1580 = vmatprep.mubr.f32.mxu1 %v7007_v42 }
  0xf1   :  { %5459 = vmatprep.subr.mxu0 %v1067_v12 }
  0xf2   :  { %5460 = vmatpush3.msra.mxu0 %v1067_v12 }
  0xf3   :  { %1441 = vmatmul.mubr.f32.gmra.mxu0 %v7007_v42  ;;  %1581 = vmatmul.mubr.f32.gmra.mxu1 %v7009_v43  ;;  %v725_v42 = vld [vmem:[#allocation3 + $0x51] sm:$0xff]  ;;  %v726_v43 = vld [vmem:[#allocation3 + $0x5b] sm:$0xff] }
  0xf4   :  { %1445 = vmatprep.mubr.f32.mxu0 %v7065_v3  ;;  %1585 = vmatprep.mubr.f32.mxu1 %v7025_v49 }
  0xf5   :  { %5461 = vmatprep.subr.mxu0 %v1066_v6 }
  0xf6   :  { %5462 = vmatpush3.msra.mxu0 %v1066_v6 }
  0xf7   :  { %1446 = vmatmul.mubr.f32.gmra.mxu0 %v7025_v49  ;;  %1586 = vmatmul.mubr.f32.gmra.mxu1 %v7027_v50  ;;  %v1062_v49 = vld [vmem:[%s9020_s1 + $0x438] sm:$0xff]  ;;  %v694_v50 = vld [vmem:[#allocation3 + $0x5a] sm:$0xff] }
  0xf8   :  { %1450 = vmatprep.mubr.f32.mxu0 %v7081_v14  ;;  %1590 = vmatprep.mubr.f32.mxu1 %v7043_v56 }
  0xf9   :  { %5463 = vmatprep.subr.mxu0 %v1065_v34 }
  0xfa   :  { %5464 = vmatpush3.msra.mxu0 %v1065_v34 }
  0xfb   :  { %1451 = vmatmul.mubr.f32.gmra.mxu0 %v7043_v56  ;;  %1591 = vmatmul.mubr.f32.gmra.mxu1 %v7045_v58  ;;  %v1061_v56 = vld [vmem:[%s9020_s1 + $0x430] sm:$0xff]  ;;  %v1060_v58 = vld [vmem:[%s9020_s1 + $0x428] sm:$0xff] }
  0xfc   :  { %1455 = vmatprep.mubr.f32.mxu0 %v7094_v20  ;;  %1595 = vmatprep.mubr.f32.mxu1 %v7061_v62 }
  0xfd   :  { %5465 = vmatprep.subr.mxu0 %v1064_v16 }
  0xfe   :  { %5466 = vmatpush3.msra.mxu0 %v1064_v16 }
  0xff   :  { %1456 = vmatmul.mubr.f32.gmra.mxu0 %v7061_v62  ;;  %1596 = vmatmul.mubr.f32.gmra.mxu1 %v7063_v63  ;;  %v1059_v62 = vld [vmem:[%s9020_s1 + $0x420] sm:$0xff]  ;;  %v1058_v63 = vld [vmem:[%s9020_s1 + $0x418] sm:$0xff] }
 0x100   :  { %1460 = vmatprep.mubr.f32.mxu0 %v7263_v36  ;;  %1600 = vmatprep.mubr.f32.mxu1 %v725_v42 }
 0x101   :  { %5467 = vmatprep.subr.mxu0 %v1063_v22 }
 0x102   :  { %5468 = vmatpush3.msra.mxu0 %v1063_v22 }
 0x103   :  { %1461 = vmatmul.mubr.f32.gmra.mxu0 %v725_v42  ;;  %1601 = vmatmul.mubr.f32.gmra.mxu1 %v7079_v13  ;;  %v1057_v13 = vld [vmem:[%s9020_s1 + $0x410] sm:$0xff] }
 0x104   :  { %1465 = vmatprep.mubr.f32.mxu0 %v7120_v29  ;;  %1605 = vmatprep.mubr.f32.mxu1 %v726_v43 }
 0x105   :  { %5469 = vmatprep.subr.mxu0 %v1062_v49 }
 0x106   :  { %5470 = vmatpush3.msra.mxu0 %v1062_v49 }
 0x107   :  { %1466 = vmatmul.mubr.f32.gmra.mxu0 %v7092_v18  ;;  %1606 = vmatmul.mubr.f32.gmra.mxu1 %v694_v50  ;;  %v1055_v18 = vld [vmem:[%s9020_s1 + $0x400] sm:$0xff] }
 0x108   :  { %1470 = vmatprep.mubr.f32.mxu0 %v7136_v32  ;;  %1610 = vmatprep.mubr.f32.mxu1 %v7104_v23 }
 0x109   :  { %5471 = vmatprep.subr.mxu0 %v1061_v56 }
 0x10a   :  { %5472 = vmatpush3.msra.mxu0 %v1061_v56 }
 0x10b   :  { %1471 = vmatmul.mubr.f32.gmra.mxu0 %v7104_v23  ;;  %1611 = vmatmul.mubr.f32.gmra.mxu1 %v7106_v24  ;;  %v1803_v23 = vld [vmem:[%s9023_s4 + $0x38] sm:$0xff]  ;;  %v1798_v24 = vld [vmem:[%s9023_s4 + $0x10] sm:$0xff] }
 0x10c   :  { %1475 = vmatprep.mubr.f32.mxu0 %v7152_v40  ;;  %1615 = vmatprep.mubr.f32.mxu1 %v7116_v27 }
 0x10d   :  { %5473 = vmatprep.subr.mxu0 %v1060_v58  ;;  %5509 = vmatprep.subr.mxu1 %v1803_v23 }
 0x10e   :  { %5474 = vmatpush3.msra.mxu0 %v1060_v58  ;;  %5510 = vmatpush3.msra.mxu1 %v1803_v23 }
 0x10f   :  { %1476 = vmatmul.mubr.f32.gmra.mxu0 %v7116_v27  ;;  %1616 = vmatmul.mubr.f32.gmra.mxu1 %v7118_v28 }
 0x110   :  { %1480 = vmatprep.mubr.f32.mxu0 %v7168_v48  ;;  %1620 = vmatprep.mubr.f32.mxu1 %v7132_v25 }
 0x111   :  { %5475 = vmatprep.subr.mxu0 %v1059_v62 }
 0x112   :  { %5476 = vmatpush3.msra.mxu0 %v1059_v62 }
 0x113   :  { %1481 = vmatmul.mubr.f32.gmra.mxu0 %v7132_v25  ;;  %1621 = vmatmul.mubr.f32.gmra.mxu1 %v7134_v31 }
 0x114   :  { %1485 = vmatprep.mubr.f32.mxu0 %v7184_v59  ;;  %1625 = vmatprep.mubr.f32.mxu1 %v7148_v37 }
 0x115   :  { %5477 = vmatprep.subr.mxu0 %v1058_v63 }
 0x116   :  { %5478 = vmatpush3.msra.mxu0 %v1058_v63 }
 0x117   :  { %1486 = vmatmul.mubr.f32.gmra.mxu0 %v7148_v37  ;;  %1626 = vmatmul.mubr.f32.gmra.mxu1 %v7150_v39 }
 0x118   :  { %1490 = vmatprep.mubr.f32.mxu0 %v7198_v2  ;;  %1630 = vmatprep.mubr.f32.mxu1 %v7164_v46 }
 0x119   :  { %5479 = vmatprep.subr.mxu0 %v1057_v13 }
 0x11a   :  { %5480 = vmatpush3.msra.mxu0 %v1057_v13 }
 0x11b   :  { %1491 = vmatmul.mubr.f32.gmra.mxu0 %v7164_v46  ;;  %1631 = vmatmul.mubr.f32.gmra.mxu1 %v7166_v47 }
 0x11c   :  { %1495 = vmatprep.mubr.f32.mxu0 %v7210_v8  ;;  %1635 = vmatprep.mubr.f32.mxu1 %v7180_v54 }
 0x11d   :  { %5481 = vmatprep.subr.mxu0 %v1056_v17 }
 0x11e   :  { %5482 = vmatpush3.msra.mxu0 %v1056_v17 }
 0x11f   :  { %1496 = vmatmul.mubr.f32.gmra.mxu0 %v7180_v54  ;;  %1636 = vmatmul.mubr.f32.gmra.mxu1 %v7182_v55 }
 0x120   :  { %1500 = vmatprep.mubr.f32.mxu0 %v669_v19  ;;  %1640 = vmatprep.mubr.f32.mxu1 %v733_v10 }
 0x121   :  { %5483 = vmatprep.subr.mxu0 %v1055_v18 }
 0x122   :  { %5484 = vmatpush3.msra.mxu0 %v1055_v18 }
 0x123   :  { %1501 = vmatmul.mubr.f32.gmra.mxu0 %v733_v10  ;;  %1641 = vmatmul.mubr.f32.gmra.mxu1 %v7196_v1 }
 0x124   :  { %5485 = vmatprep.mubr.f32.mxu0 %v7011_v45  ;;  %1645 = vmatprep.mubr.f32.mxu1 %v734_v9  ;;  %v758_v45 = vld [vmem:[#allocation3 + $0x5c] sm:$0xff] }
 0x125   :  { %5549 = vmatprep.subr.mxu0 %v1803_v23 }
 0x127   :  { %1646 = vmatmul.mubr.f32.gmra.mxu1 %v702_v21  ;;  %5486 = vmatmul.mubr.f32.vlgmr.msra.gmra.mxu0 %v7029_v52  ;;  %v1802_v52 = vld [vmem:[%s9023_s4 + $0x30] sm:$0xff] }
 0x128   :  { %5488 = vmatprep.mubr.f32.mxu0 %v7047_v60  ;;  %5550 = vmatpush3.msra.mxu0 %v1803_v23  ;;  %v1801_v60 = vld [vmem:[%s9023_s4 + $0x28] sm:$0xff] }
 0x129   :  { %5511 = vmatprep.subr.mxu1 %v1802_v52  ;;  %5551 = vmatprep.subr.mxu0 %v1802_v52 }
 0x12a   :  { %5512 = vmatpush3.msra.mxu1 %v1802_v52  ;;  %5552 = vmatpush3.msra.mxu0 %v1802_v52 }
 0x12b   :  { %5489 = vmatmul.mubr.f32.gmra.mxu0 %v7065_v3  ;;  %5513 = vmatprep.subr.mxu1 %v1801_v60  ;;  %v766_v3 = vld [vmem:[#allocation3 + $0xc0] sm:$0xff] }
 0x12c   :  { %5491 = vmatprep.mubr.f32.mxu0 %v7081_v14  ;;  %5553 = vmatprep.subr.mxu0 %v1801_v60  ;;  %v1800_v14 = vld [vmem:[%s9023_s4 + $0x20] sm:$0xff] }
 0x12d   :  { %5514 = vmatpush3.msra.mxu1 %v1801_v60  ;;  %5554 = vmatpush3.msra.mxu0 %v1801_v60 }
 0x12e   :  { %5515 = vmatprep.subr.mxu1 %v1800_v14  ;;  %5555 = vmatprep.subr.mxu0 %v1800_v14 }
 0x12f   :  { %5492 = vmatmul.mubr.f32.gmra.mxu0 %v7094_v20  ;;  %5516 = vmatpush3.msra.mxu1 %v1800_v14  ;;  %v1799_v20 = vld [vmem:[%s9023_s4 + $0x18] sm:$0xff] }
 0x130   :  { %5494 = vmatprep.mubr.f32.mxu0 %v7263_v36  ;;  %5556 = vmatpush3.msra.mxu0 %v1800_v14 }
 0x131   :  { %5517 = vmatprep.subr.mxu1 %v1799_v20  ;;  %5557 = vmatprep.subr.mxu0 %v1799_v20 }
 0x132   :  { %5518 = vmatpush3.msra.mxu1 %v1799_v20  ;;  %5558 = vmatpush3.msra.mxu0 %v1799_v20 }
 0x133   :  { %5495 = vmatmul.mubr.f32.gmra.mxu0 %v758_v45  ;;  %5519 = vmatprep.subr.mxu1 %v1798_v24 }
 0x134   :  { %5497 = vmatprep.mubr.f32.mxu0 %v7136_v32  ;;  %5559 = vmatprep.subr.mxu0 %v1798_v24 }
 0x135   :  { %5520 = vmatpush3.msra.mxu1 %v1798_v24  ;;  %5560 = vmatpush3.msra.mxu0 %v1798_v24  ;;  %v4685_v27 = vpop.f32.mrf.mxu0 }
 0x136   :  { %5521 = vmatprep.subr.mxu1 %v1797_v26  ;;  %5561 = vmatprep.subr.mxu0 %v1797_v26 }
 0x137   :  { %5498 = vmatmul.mubr.f32.gmra.mxu0 %v7152_v40  ;;  %5522 = vmatpush3.msra.mxu1 %v1797_v26  ;;  %v4686_v28 = vpop.f32.mrf.mxu0 }
 0x138   :  { %5500 = vmatprep.mubr.f32.mxu0 %v7168_v48  ;;  %5562 = vmatpush3.msra.mxu0 %v1797_v26  ;;  %v4687_v31 = vadd.f32 %v4686_v28, %v4685_v27 }
 0x139   :  { %5523 = vmatprep.subr.mxu1 %v1796_v11  ;;  %5563 = vmatprep.subr.mxu0 %v1796_v11 }
 0x13a   :  { %5524 = vmatpush3.msra.mxu1 %v1796_v11  ;;  %5564 = vmatpush3.msra.mxu0 %v1796_v11 }
 0x13b   :  { %5501 = vmatmul.mubr.f32.gmra.mxu0 %v7184_v59 }
 0x13c   :  { %5503 = vmatprep.mubr.f32.mxu0 %v7198_v2 }
 0x13f   :  { %5504 = vmatmul.mubr.f32.gmra.mxu0 %v7210_v8 }
 0x140   :  { %5506 = vmatprep.mubr.f32.mxu0 %v669_v19 }
 0x143   :  { %5507 = vmatmul.mubr.f32.gmra.mxu0 %v766_v3 }
 0x16a   :  { %v4688_v29 = vpop.f32.mrf.mxu0 }
 0x16b   :  { %v4765_v30 = vpop.f32.mrf.mxu1 }
 0x16c   :  { %v4689_v15 = vpop.f32.mrf.mxu0 }
 0x16d   :  { %v4766_v25 = vpop.f32.mrf.mxu1  ;;  %v4690_v32 = vadd.f32 %v4689_v15, %v4688_v29 }
 0x16e   :  { %v4767_v33 = vadd.f32 %v4766_v25, %v4765_v30  ;;  %v4691_v35 = vpop.f32.mrf.mxu0 }
 0x16f   :  { %v4768_v37 = vpop.f32.mrf.mxu1 }
 0x170   :  { %v7355_v39 = vadd.f32 %v4767_v33, %v4687_v31  ;;  %v4692_v40 = vpop.f32.mrf.mxu0 }
 0x171   :  { %v4769_v41 = vpop.f32.mrf.mxu1  ;;  %v4693_v44 = vadd.f32 %v4692_v40, %v4691_v35 }
 0x172   :  { %v4770_v46 = vadd.f32 %v4769_v41, %v4768_v37  ;;  %v4694_v47 = vpop.f32.mrf.mxu0 }
 0x173   :  { %v4771_v48 = vpop.f32.mrf.mxu1 }
 0x174   :  { %v7357_v51 = vadd.f32 %v4770_v46, %v4690_v32  ;;  %v4695_v53 = vpop.f32.mrf.mxu0 }
 0x175   :  { %v4772_v54 = vpop.f32.mrf.mxu1  ;;  %v4696_v55 = vadd.f32 %v4695_v53, %v4694_v47 }
 0x176   :  { %v4773_v59 = vadd.f32 %v4772_v54, %v4771_v48  ;;  %v4697_v57 = vpop.f32.mrf.mxu0 }
 0x177   :  { %v4774_v61 = vpop.f32.mrf.mxu1 }
 0x178   :  { %v7359_v1 = vadd.f32 %v4773_v59, %v4693_v44  ;;  %v4698_v2 = vpop.f32.mrf.mxu0 }
 0x179   :  { %v4775_v0 = vpop.f32.mrf.mxu1  ;;  %v4699_v4 = vadd.f32 %v4698_v2, %v4697_v57 }
 0x17a   :  { %v4776_v8 = vadd.f32 %v4775_v0, %v4774_v61  ;;  %v4700_v7 = vpop.f32.mrf.mxu0 }
 0x17b   :  { %v4777_v5 = vpop.f32.mrf.mxu1 }
 0x17c   :  { %v7361_v38 = vadd.f32 %v4776_v8, %v4696_v55  ;;  %v4701_v12 = vpop.f32.mrf.mxu0 }
 0x17d   :  { %v4778_v6 = vpop.f32.mrf.mxu1  ;;  %v4702_v34 = vadd.f32 %v4701_v12, %v4700_v7 }
 0x17e   :  { %v4779_v16 = vadd.f32 %v4778_v6, %v4777_v5  ;;  %v4703_v22 = vpop.f32.mrf.mxu0 }
 0x17f   :  { %v4780_v36 = vpop.f32.mrf.mxu1 }
 0x180   :  { %v7363_v42 = vadd.f32 %v4779_v16, %v4699_v4  ;;  %v4704_v43 = vpop.f32.mrf.mxu0 }
 0x181   :  { %v4781_v49 = vpop.f32.mrf.mxu1  ;;  %v4705_v50 = vadd.f32 %v4704_v43, %v4703_v22 }
 0x182   :  { %v4782_v56 = vadd.f32 %v4781_v49, %v4780_v36  ;;  %v4706_v58 = vpop.f32.mrf.mxu0 }
 0x183   :  { %v4783_v62 = vpop.f32.mrf.mxu1 }
 0x184   :  { %v7365_v63 = vadd.f32 %v4782_v56, %v4702_v34  ;;  %v4707_v13 = vpop.f32.mrf.mxu0 }
 0x185   :  { %v4784_v17 = vpop.f32.mrf.mxu1  ;;  %v4708_v18 = vadd.f32 %v4707_v13, %v4706_v58 }
 0x186   :  { %v4785_v19 = vadd.f32 %v4784_v17, %v4783_v62  ;;  %v4709_v10 = vpop.f32.mrf.mxu0 }
 0x187   :  { %v4786_v9 = vpop.f32.mrf.mxu1 }
 0x188   :  { %v7367_v21 = vadd.f32 %v4785_v19, %v4705_v50  ;;  %v4710_v23 = vpop.f32.mrf.mxu0 }
 0x189   :  { %v4787_v45 = vpop.f32.mrf.mxu1  ;;  %v4711_v52 = vadd.f32 %v4710_v23, %v4709_v10 }
 0x18a   :  { %v4788_v60 = vadd.f32 %v4787_v45, %v4786_v9  ;;  %v4712_v3 = vpop.f32.mrf.mxu0 }
 0x18b   :  { %v4789_v14 = vpop.f32.mrf.mxu1 }
 0x18c   :  { %v7369_v20 = vadd.f32 %v4788_v60, %v4708_v18  ;;  %v4713_v24 = vpop.f32.mrf.mxu0 }
 0x18d   :  { %v4790_v26 = vpop.f32.mrf.mxu1  ;;  %v4714_v11 = vadd.f32 %v4713_v24, %v4712_v3 }
 0x18e   :  { %v4791_v27 = vadd.f32 %v4790_v26, %v4789_v14  ;;  %v4715_v28 = vpop.f32.mrf.mxu0 }
 0x18f   :  { %v4792_v29 = vpop.f32.mrf.mxu1 }
 0x190   :  { %v7371_v30 = vadd.f32 %v4791_v27, %v4711_v52  ;;  %v4716_v15 = vpop.f32.mrf.mxu0 }
 0x191   :  { %v4793_v25 = vpop.f32.mrf.mxu1  ;;  %v4717_v31 = vadd.f32 %v4716_v15, %v4715_v28 }
 0x192   :  { %9032 = vst [vmem:[#allocation7_spill] sm:$0xff] %v7371_v30  ;;  %v4794_v32 = vadd.f32 %v4793_v25, %v4792_v29  ;;  %v4718_v33 = vpop.f32.mrf.mxu0 }
 0x193   :  { %v4795_v35 = vpop.f32.mrf.mxu1 }
 0x194   :  { %v7373_v37 = vadd.f32 %v4794_v32, %v4714_v11  ;;  %v4719_v40 = vpop.f32.mrf.mxu0 }
 0x195   :  { %v4796_v41 = vpop.f32.mrf.mxu1  ;;  %v4720_v44 = vadd.f32 %v4719_v40, %v4718_v33 }
 0x196   :  { %v4797_v46 = vadd.f32 %v4796_v41, %v4795_v35  ;;  %v4721_v47 = vpop.f32.mrf.mxu0 }
 0x197   :  { %v4798_v48 = vpop.f32.mrf.mxu1 }
 0x198   :  { %v7375_v53 = vadd.f32 %v4797_v46, %v4717_v31  ;;  %v4722_v54 = vpop.f32.mrf.mxu0 }
 0x199   :  { %v4799_v55 = vpop.f32.mrf.mxu1  ;;  %v4723_v59 = vadd.f32 %v4722_v54, %v4721_v47 }
 0x19a   :  { %9033 = vst [vmem:[#allocation8_spill] sm:$0xff] %v7375_v53  ;;  %v4800_v57 = vadd.f32 %v4799_v55, %v4798_v48  ;;  %v4724_v61 = vpop.f32.mrf.mxu0 }
 0x19b   :  { %v4801_v2 = vpop.f32.mrf.mxu1 }
 0x19c   :  { %v7377_v0 = vadd.f32 %v4800_v57, %v4720_v44  ;;  %v4725_v4 = vpop.f32.mrf.mxu0 }
 0x19d   :  { %v4802_v8 = vpop.f32.mrf.mxu1  ;;  %v4726_v7 = vadd.f32 %v4725_v4, %v4724_v61 }
 0x19e   :  { %9034 = vst [vmem:[#allocation9_spill] sm:$0xff] %v7377_v0  ;;  %v4803_v5 = vadd.f32 %v4802_v8, %v4801_v2  ;;  %v4727_v12 = vpop.f32.mrf.mxu0 }
 0x19f   :  { %v4804_v6 = vpop.f32.mrf.mxu1 }
 0x1a0   :  { %v7379_v34 = vadd.f32 %v4803_v5, %v4723_v59  ;;  %v4728_v16 = vpop.f32.mrf.mxu0 }
 0x1a1   :  { %v4805_v22 = vpop.f32.mrf.mxu1  ;;  %v4729_v36 = vadd.f32 %v4728_v16, %v4727_v12 }
 0x1a2   :  { %9035 = vst [vmem:[#allocation10_spill] sm:$0xff] %v7379_v34  ;;  %v4806_v43 = vadd.f32 %v4805_v22, %v4804_v6  ;;  %v4730_v49 = vpop.f32.mrf.mxu0 }
 0x1a3   :  { %v4807_v50 = vpop.f32.mrf.mxu1 }
 0x1a4   :  { %v7381_v56 = vadd.f32 %v4806_v43, %v4726_v7  ;;  %v4731_v58 = vpop.f32.mrf.mxu0 }
 0x1a5   :  { %v4808_v62 = vpop.f32.mrf.mxu1  ;;  %v7383_v13 = vadd.f32 %v4731_v58, %v4730_v49 }
 0x1a6   :  { %9036 = vst [vmem:[#allocation11_spill] sm:$0xff] %v7381_v56  ;;  %v4809_v17 = vadd.f32 %v4808_v62, %v4807_v50  ;;  %v4845_v19 = vpop.f32.mrf.mxu0 }
 0x1a7   :  { %9037 = vst [vmem:[#allocation12_spill] sm:$0xff] %v7383_v13  ;;  %v7385_v18 = vpop.f32.mrf.mxu1 }
 0x1a8   :  { %9038 = vst [vmem:[#allocation13_spill] sm:$0xff] %v7385_v18  ;;  %v7387_v10 = vadd.f32 %v4809_v17, %v4729_v36  ;;  %v4846_v23 = vpop.f32.mrf.mxu0 }
 0x1a9   :  { %v7389_v9 = vpop.f32.mrf.mxu1 }
 0x1aa   :  { %9039 = vst [vmem:[#allocation14_spill] sm:$0xff] %v7387_v10  ;;  %9040 = vst [vmem:[#allocation15_spill] sm:$0xff] %v7389_v9  ;;  %v4848_v45 = vpop.f32.mrf.mxu0 }
 0x1ab   :  { %v4925_v52 = vpop.f32.mrf.mxu1 }
 0x1ac   :  { %v4849_v60 = vpop.f32.mrf.mxu0 }
 0x1ad   :  { %v4926_v3 = vpop.f32.mrf.mxu1 }
 0x1af   :  { %v4851_v14 = vpop.f32.mrf.mxu0  ;;  %v4928_v24 = vpop.f32.mrf.mxu1 }
 0x1b1   :  { %v4852_v26 = vpop.f32.mrf.mxu0  ;;  %v4929_v11 = vpop.f32.mrf.mxu1 }
 0x1b3   :  { %v4854_v27 = vpop.f32.mrf.mxu0  ;;  %v4931_v28 = vpop.f32.mrf.mxu1 }
 0x1b5   :  { %v4855_v29 = vpop.f32.mrf.mxu0  ;;  %v4932_v15 = vpop.f32.mrf.mxu1 }
 0x1b7   :  { %v7391_v25 = vpop.f32.mrf.mxu0  ;;  %v4934_v31 = vpop.f32.mrf.mxu1 }
 0x1b9   :  { %v4858_v32 = vpop.f32.mrf.mxu0  ;;  %v4935_v33 = vpop.f32.mrf.mxu1 }
 0x1bb   :  { %v4860_v35 = vpop.f32.mrf.mxu0  ;;  %v7393_v40 = vpop.f32.mrf.mxu1 }
 0x1bd   :  { %v4861_v41 = vpop.f32.mrf.mxu0  ;;  %v4938_v44 = vpop.f32.mrf.mxu1 }
 0x1bf   :  { %v7395_v46 = vpop.f32.mrf.mxu0  ;;  %v4940_v47 = vpop.f32.mrf.mxu1 }
 0x1c1   :  { %v7397_v48 = vpop.f32.mrf.mxu0  ;;  %v4941_v54 = vpop.f32.mrf.mxu1 }
 0x1c3   :  { %v7399_v55 = vpop.f32.mrf.mxu0  ;;  %v7401_v59 = vpop.f32.mrf.mxu1 }
 0x1c5   :  { %v4867_v57 = vpop.f32.mrf.mxu0  ;;  %v7403_v61 = vpop.f32.mrf.mxu1 }
 0x1c7   :  { %v7405_v2 = vpop.f32.mrf.mxu0  ;;  %v7407_v4 = vpop.f32.mrf.mxu1 }
 0x1c9   :  { %v7409_v8 = vpop.f32.mrf.mxu0  ;;  %v7411_v7 = vpop.f32.mrf.mxu1 }
 0x1cb   :  { %v7413_v5 = vpop.f32.mrf.mxu0  ;;  %v7415_v12 = vpop.f32.mrf.mxu1 }
 0x1cd   :  { %v7417_v6 = vpop.f32.mrf.mxu0  ;;  %v7419_v16 = vpop.f32.mrf.mxu1 }
 0x1cf   :  { %v7421_v22 = vpop.f32.mrf.mxu0  ;;  %v7423_v36 = vpop.f32.mrf.mxu1 }
 0x1d0   :  { %9041 = vst [vmem:[#allocation16_spill] sm:$0xff] %v7421_v22  ;;  %v4930_v22 = vadd.f32 %v4929_v11, %v4928_v24  ;;  %v4859_v11 = vadd.f32 %v4858_v32, %v7391_v25 }
 0x1d1   :  { %v7425_v43 = vpop.f32.mrf.mxu0  ;;  %v7427_v49 = vpop.f32.mrf.mxu1 }
 0x1d2   :  { %9042 = vst [vmem:[#allocation17_spill] sm:$0xff] %v7425_v43 }
 0x1d3   :  { %v7429_v50 = vpop.f32.mrf.mxu0  ;;  %v7431_v58 = vpop.f32.mrf.mxu1 }
 0x1d4   :  { %9043 = vst [vmem:[#allocation18_spill] sm:$0xff] %v7431_v58  ;;  %v4850_v58 = vadd.f32 %v4849_v60, %v4848_v45  ;;  %v4933_v60 = vadd.f32 %v4932_v15, %v4931_v28  ;;  %v4865_v15 = vadd.f32 %v7397_v48, %v7395_v46 }
 0x1d5   :  { %v7433_v62 = vpop.f32.mrf.mxu0  ;;  %v7435_v17 = vpop.f32.mrf.mxu1 }
 0x1d6   :  { %9044 = vst [vmem:[#allocation19_spill] sm:$0xff] %v7433_v62  ;;  %9045 = vst [vmem:[#allocation20_spill] sm:$0xff] %v7435_v17  ;;  %v4847_v17 = vadd.f32 %v4846_v23, %v4845_v19  ;;  %v4936_v62 = vadd.f32 %v4935_v33, %v4934_v31  ;;  %v4945_v33 = vadd.f32 %v7403_v61, %v7401_v59 }
 0x1d7   :  { %v7437_v10 = vpop.f32.mrf.mxu0  ;;  %v7439_v13 = vpop.f32.mrf.mxu1 }
 0x1d8   :  { %9046 = vst [vmem:[#allocation21_spill] sm:$0xff] %v7437_v10  ;;  %9047 = vst [vmem:[#allocation22_spill] sm:$0xff] %v7439_v13  ;;  %v4927_v13 = vadd.f32 %v4926_v3, %v4925_v52  ;;  %v4862_v52 = vadd.f32 %v4861_v41, %v4860_v35 }
 0x1d9   :  { %v7441_v34 = vpop.f32.mrf.mxu0  ;;  %v7445_v9 = vpop.f32.mrf.mxu1 }
 0x1da   :  { %9048 = vst [vmem:[#allocation23_spill] sm:$0xff] %v7441_v34  ;;  %9050 = vst [vmem:[#allocation25_spill] sm:$0xff] %v7445_v9  ;;  %v1433_v34 = vadd.f32 %v4850_v58, %v7357_v51  ;;  %v9057_v58 = vld [vmem:[#allocation16_spill] sm:$0xff] }
 0x1db   :  { %v7443_v56 = vpop.f32.mrf.mxu0  ;;  %v7451_v0 = vpop.f32.mrf.mxu1 }
 0x1dc   :  { %9049 = vst [vmem:[#allocation24_spill] sm:$0xff] %v7443_v56  ;;  %9053 = vst [vmem:[#allocation28_spill] sm:$0xff] %v7451_v0  ;;  %v4856_v56 = vadd.f32 %v4855_v29, %v4854_v27  ;;  %v1578_v0 = vadd.f32 %v4930_v22, %v1433_v34  ;;  %v4939_v27 = vadd.f32 %v4938_v44, %v7393_v40 }
 0x1dd   :  { %v7447_v18 = vpop.f32.mrf.mxu0  ;;  %v7457_v30 = vpop.f32.mrf.mxu1  ;;  %v1448_v29 = vadd.f32 %v4859_v11, %v7363_v42  ;;  %v4874_v44 = vadd.f32 %v7417_v6, %v7413_v5  ;;  %v9055_v5 = vld [vmem:[#allocation19_spill] sm:$0xff] }
 0x1de   :  { %9051 = vst [vmem:[#allocation26_spill] sm:$0xff] %v7447_v18  ;;  %v1428_v18 = vadd.f32 %v4847_v17, %v7355_v39  ;;  %v1443_v23 = vadd.f32 %v4856_v56, %v7361_v38  ;;  %v4880_v6 = vadd.f32 %v9055_v5, %v7429_v50 }
 0x1df   :  { %v7449_v53 = vpop.f32.mrf.mxu0  ;;  %v1593_v40 = vadd.f32 %v4939_v27, %v1448_v29  ;;  %v9066_v29 = vld [vmem:[#allocation8_spill] sm:$0xff] }
 0x1e0   :  { %9052 = vst [vmem:[#allocation27_spill] sm:$0xff] %v7449_v53  ;;  %v4853_v53 = vadd.f32 %v4852_v26, %v4851_v14  ;;  %v1573_v19 = vadd.f32 %v4927_v13, %v1428_v18  ;;  %v4942_v14 = vadd.f32 %v4941_v54, %v4940_v47  ;;  %v1588_v34 = vadd.f32 %v4936_v62, %v1443_v23  ;;  %v9058_v62 = vld [vmem:[#allocation17_spill] sm:$0xff] }
 0x1e1   :  { %v7453_v43 = vpop.f32.mrf.mxu0  ;;  %v1458_v54 = vadd.f32 %v4865_v15, %v7367_v21  ;;  %v4877_v17 = vadd.f32 %v9058_v62, %v9057_v58  ;;  %v9060_v50 = vld [vmem:[#allocation25_spill] sm:$0xff] }
 0x1e2   :  { %9054 = vst [vmem:[#allocation29_spill] sm:$0xff] %v7453_v43  ;;  %v7463_v43 = vpop.f32.mrf.mxu1  ;;  %v1438_v51 = vadd.f32 %v4853_v53, %v7359_v1  ;;  %v1453_v1 = vadd.f32 %v4862_v52, %v7365_v63  ;;  %v4868_v53 = vadd.f32 %v4867_v57, %v7399_v55  ;;  %v4948_v63 = vadd.f32 %v7411_v7, %v7407_v4  ;;  %v9061_v52 = vld [vmem:[#allocation18_spill] sm:$0xff] }
 0x1e3   :  { %v7455_v10 = vpop.f32.mrf.mxu0  ;;  %v4871_v55 = vadd.f32 %v7409_v8, %v7405_v2  ;;  %v4951_v4 = vadd.f32 %v7419_v16, %v7415_v12  ;;  %v1603_v2 = vadd.f32 %v4945_v33, %v1458_v54  ;;  %v1473_v8 = vadd.f32 %v4874_v44, %v7373_v37  ;;  %v9056_v12 = vld [vmem:[#allocation7_spill] sm:$0xff]  ;;  %v9059_v37 = vld [vmem:[#allocation22_spill] sm:$0xff]  ;;  %v9071_v54 = vld [vmem:[#allocation28_spill] sm:$0xff] }
 0x1e4   :  { %v7473_v28 = vpop.f32.mrf.mxu1  ;;  %v1598_v31 = vadd.f32 %v4942_v14, %v1453_v1  ;;  %v1463_v41 = vadd.f32 %v4868_v53, %v7369_v20  ;;  %v4954_v20 = vadd.f32 %v7427_v49, %v7423_v36  ;;  %v1478_v15 = vadd.f32 %v4877_v17, %v9066_v29 }
 0x1e5   :  { %v7460_v9 = vpop.f32.mrf.mxu0  ;;  %v1468_v16 = vadd.f32 %v4871_v55, %v9056_v12  ;;  %v4966_v44 = vadd.f32 %v7473_v28, %v7463_v43  ;;  %v4963_v55 = vadd.f32 %v7457_v30, %v9071_v54  ;;  %v9073_v30 = vld [vmem:[#allocation10_spill] sm:$0xff] }
 0x1e6   :  { %v7498_v35 = vpop.f32.mrf.mxu1  ;;  %v1608_v57 = vadd.f32 %v4948_v63, %v1463_v41  ;;  %v9067_v63 = vld [vmem:[#allocation21_spill] sm:$0xff]  ;;  %v4892_v43 = vadd.f32 %v7460_v9, %v7455_v10 }
 0x1e7   :  { %v5487_v45 = vpop.f32.mrf.mxu0 }
 0x1e8   :  { %v7466_v3 = vadd.f32 %v5487_v45, %v1578_v0  ;;  %v1583_v0 = vadd.f32 %v4933_v60, %v1438_v51  ;;  %v4968_v7 = vpop.f32.mrf.mxu1  ;;  %v4960_v60 = vadd.f32 %v9060_v50, %v9059_v37 }
 0x1e9   :  { %v1717_v24 = vpop.f32.mrf.mxu0  ;;  %v4969_v17 = vadd.f32 %v4968_v7, %v7498_v35 }
 0x1ea   :  { %v7470_v39 = vadd.f32 %v1717_v24, %v1573_v19  ;;  %v2037_v56 = vmul.f32 %v7466_v3, %v7466_v3  ;;  %v1618_v19 = vadd.f32 %v4954_v20, %v1473_v8  ;;  %v9062_v24 = vld [vmem:[#allocation20_spill] sm:$0xff]  ;;  %v4970_v11 = vpop.f32.mrf.mxu1 }
 0x1eb   :  { %v5490_v26 = vpop.f32.mrf.mxu0  ;;  %v4957_v51 = vadd.f32 %v9062_v24, %v9061_v52  ;;  %v9077_v24 = vld [vmem:[#allocation14_spill] sm:$0xff] }
 0x1ec   :  { %v2036_v38 = vmul.f32 %v7470_v39, %v7470_v39  ;;  %5525 = vmatprep.mubr.msk.f32.mxu1 %vm1804_vm5, %v7470_v39  ;;  %v7483_v13 = vadd.f32 %v5490_v26, %v1588_v34  ;;  %v1613_v34 = vadd.f32 %v4951_v4, %v1468_v16  ;;  %v9063_v26 = vld [vmem:[#allocation9_spill] sm:$0xff]  ;;  %v4971_v20 = vpop.f32.mrf.mxu1  ;;  %v9072_v4 = vld [vmem:[#allocation11_spill] sm:$0xff]  ;;  %v9076_v16 = vld [vmem:[#allocation12_spill] sm:$0xff] }
 0x1ed   :  { %v1727_v18 = vpop.f32.mrf.mxu0  ;;  %5526 = vmatmul.mubr.msk.f32.vlgmr.msra.gmra.mxu1 %vm1804_vm5, %v7466_v3  ;;  %v1483_v27 = vadd.f32 %v4880_v6, %v9063_v26  ;;  %v9074_v6 = vld [vmem:[#allocation27_spill] sm:$0xff]  ;;  %v4972_v9 = vadd.f32 %v4971_v20, %v4970_v11 }
 0x1ee   :  { %v7490_v25 = vadd.f32 %v1727_v18, %v1583_v0  ;;  %5565 = vmatprep.mubr.msk.f32.mxu0 %vm1804_vm5, %v2036_v38  ;;  %v2039_v46 = vmul.f32 %v7483_v13, %v7483_v13  ;;  %v9064_v38 = vld [vmem:[#allocation24_spill] sm:$0xff]  ;;  %v9065_v0 = vld [vmem:[#allocation26_spill] sm:$0xff] }
 0x1ef   :  { %v5493_v32 = vpop.f32.mrf.mxu0  ;;  %5566 = vmatmul.mubr.msk.f32.vlgmr.msra.gmra.mxu0 %vm1804_vm5, %v2037_v56  ;;  %v4886_v1 = vadd.f32 %v9065_v0, %v9064_v38 }
 0x1f0   :  { %v2038_v42 = vmul.f32 %v7490_v25, %v7490_v25  ;;  %5528 = vmatprep.mubr.msk.f32.mxu1 %vm1804_vm5, %v7490_v25  ;;  %v7509_v47 = vadd.f32 %v5493_v32, %v1598_v31  ;;  %v9068_v31 = vld [vmem:[#allocation23_spill] sm:$0xff] }
 0x1f1   :  { %v1737_v48 = vpop.f32.mrf.mxu0  ;;  %5529 = vmatmul.mubr.msk.f32.gmra.mxu1 %vm1804_vm5, %v7483_v13  ;;  %v4883_v32 = vadd.f32 %v9068_v31, %v9067_v63 }
 0x1f2   :  { %v7516_v59 = vadd.f32 %v1737_v48, %v1593_v40  ;;  %5568 = vmatprep.mubr.msk.f32.mxu0 %vm1804_vm5, %v2038_v42  ;;  %v2041_v22 = vmul.f32 %v7509_v47, %v7509_v47  ;;  %v9069_v42 = vld [vmem:[#allocation13_spill] sm:$0xff]  ;;  %v9070_v40 = vld [vmem:[#allocation15_spill] sm:$0xff] }
 0x1f3   :  { %v5496_v61 = vpop.f32.mrf.mxu0  ;;  %5569 = vmatmul.mubr.msk.f32.gmra.mxu0 %vm1804_vm5, %v2039_v46  ;;  %v4812_v41 = vadd.f32 %v9070_v40, %v9069_v42  ;;  %v1628_v46 = vadd.f32 %v4960_v60, %v1483_v27  ;;  %v1488_v5 = vadd.f32 %v4883_v32, %v9073_v30 }
 0x1f4   :  { %v2040_v21 = vmul.f32 %v7516_v59, %v7516_v59  ;;  %5531 = vmatprep.mubr.msk.f32.mxu1 %vm1804_vm5, %v7516_v59  ;;  %v7533_v36 = vadd.f32 %v5496_v61, %v1608_v57  ;;  %v1623_v61 = vadd.f32 %v4957_v51, %v1478_v15 }
 0x1f5   :  { %v1747_v49 = vpop.f32.mrf.mxu0  ;;  %5532 = vmatmul.mubr.msk.f32.gmra.mxu1 %vm1804_vm5, %v7509_v47  ;;  %v1358_v10 = vadd.f32 %v4812_v41, %v9076_v16  ;;  %v1633_v50 = vadd.f32 %v4963_v55, %v1488_v5 }
 0x1f6   :  { %v7540_v45 = vadd.f32 %v1747_v49, %v1603_v2  ;;  %5571 = vmatprep.mubr.msk.f32.mxu0 %vm1804_vm5, %v2040_v21  ;;  %v2043_v53 = vmul.f32 %v7533_v36, %v7533_v36  ;;  %v1493_v21 = vadd.f32 %v4886_v1, %v9072_v4 }
 0x1f7   :  { %v5499_v23 = vpop.f32.mrf.mxu0  ;;  %5572 = vmatmul.mubr.msk.f32.gmra.mxu0 %vm1804_vm5, %v2041_v22  ;;  %v9075_v22 = vld [vmem:[#allocation29_spill] sm:$0xff]  ;;  %v1503_v60 = vadd.f32 %v4892_v43, %v1358_v10 }
 0x1f8   :  { %v2042_v14 = vmul.f32 %v7540_v45, %v7540_v45  ;;  %5534 = vmatprep.mubr.msk.f32.mxu1 %vm1804_vm5, %v7540_v45  ;;  %v7557_v56 = vadd.f32 %v5499_v23, %v1618_v19  ;;  %v4889_v49 = vadd.f32 %v9075_v22, %v9074_v6  ;;  %v1638_v58 = vadd.f32 %v4966_v44, %v1493_v21 }
 0x1f9   :  { %v1757_v18 = vpop.f32.mrf.mxu0  ;;  %5535 = vmatmul.mubr.msk.f32.gmra.mxu1 %vm1804_vm5, %v7533_v36  ;;  %v1648_v7 = vadd.f32 %v4972_v9, %v1503_v60 }
 0x1fa   :  { %v7564_v33 = vadd.f32 %v1757_v18, %v1613_v34  ;;  %5574 = vmatprep.mubr.msk.f32.mxu0 %vm1804_vm5, %v2042_v14  ;;  %v2045_v28 = vmul.f32 %v7557_v56, %v7557_v56  ;;  %v1498_v51 = vadd.f32 %v4889_v49, %v9077_v24 }
 0x1fb   :  { %v5502_v48 = vpop.f32.mrf.mxu0  ;;  %5575 = vmatmul.mubr.msk.f32.gmra.mxu0 %vm1804_vm5, %v2043_v53 }
 0x1fc   :  { %v2044_v57 = vmul.f32 %v7564_v33, %v7564_v33  ;;  %5537 = vmatprep.mubr.msk.f32.mxu1 %vm1804_vm5, %v7564_v33  ;;  %v7583_v2 = vadd.f32 %v5502_v48, %v1628_v46  ;;  %v1643_v34 = vadd.f32 %v4969_v17, %v1498_v51 }
 0x1fd   :  { %v1767_v8 = vpop.f32.mrf.mxu0  ;;  %5538 = vmatmul.mubr.msk.f32.gmra.mxu1 %vm1804_vm5, %v7557_v56 }
 0x1fe   :  { %v7590_v12 = vadd.f32 %v1767_v8, %v1623_v61  ;;  %5577 = vmatprep.mubr.msk.f32.mxu0 %vm1804_vm5, %v2044_v57  ;;  %v2047_v19 = vmul.f32 %v7583_v2, %v7583_v2 }
 0x1ff   :  { %v5505_v62 = vpop.f32.mrf.mxu0  ;;  %5578 = vmatmul.mubr.msk.f32.gmra.mxu0 %vm1804_vm5, %v2045_v28 }
 0x200   :  { %v2046_v37 = vmul.f32 %v7590_v12, %v7590_v12  ;;  %5540 = vmatprep.mubr.msk.f32.mxu1 %vm1804_vm5, %v7590_v12  ;;  %v7602_v23 = vadd.f32 %v5505_v62, %v1638_v58 }
 0x201   :  { %v1777_v52 = vpop.f32.mrf.mxu0  ;;  %5541 = vmatmul.mubr.msk.f32.gmra.mxu1 %vm1804_vm5, %v7583_v2 }
 0x202   :  { %v7607_v35 = vadd.f32 %v1777_v52, %v1633_v50  ;;  %5580 = vmatprep.mubr.msk.f32.mxu0 %vm1804_vm5, %v2046_v37  ;;  %v2049_v26 = vmul.f32 %v7602_v23, %v7602_v23 }
 0x203   :  { %v5508_v11 = vpop.f32.mrf.mxu0  ;;  %5581 = vmatmul.mubr.msk.f32.gmra.mxu0 %vm1804_vm5, %v2047_v19 }
 0x204   :  { %v2048_v14 = vmul.f32 %v7607_v35, %v7607_v35  ;;  %5543 = vmatprep.mubr.msk.f32.mxu1 %vm1804_vm5, %v7607_v35  ;;  %v7617_v27 = vadd.f32 %v5508_v11, %v1648_v7 }
 0x205   :  { %v1787_v38 = vpop.f32.mrf.mxu0  ;;  %5544 = vmatmul.mubr.msk.f32.gmra.mxu1 %vm1804_vm5, %v7602_v23 }
 0x206   :  { %v7621_v0 = vadd.f32 %v1787_v38, %v1643_v34  ;;  %5583 = vmatprep.mubr.msk.f32.mxu0 %vm1804_vm5, %v2048_v14  ;;  %v2051_v53 = vmul.f32 %v7617_v27, %v7617_v27 }
 0x207   :  { %5584 = vmatmul.mubr.msk.f32.gmra.mxu0 %vm1804_vm5, %v2049_v26 }
 0x208   :  { %v2050_v1 = vmul.f32 %v7621_v0, %v7621_v0  ;;  %5546 = vmatprep.mubr.msk.f32.mxu1 %vm1804_vm5, %v7621_v0 }
 0x209   :  { %5547 = vmatmul.mubr.msk.f32.gmra.mxu1 %vm1804_vm5, %v7617_v27 }
 0x20a   :  { %5586 = vmatprep.mubr.msk.f32.mxu0 %vm1804_vm5, %v2050_v1 }
 0x20b   :  { %5587 = vmatmul.mubr.msk.f32.gmra.mxu0 %vm1804_vm5, %v2051_v53 }
 0x2ad   :  { %v5527_v18 = vpop.f32.mrf.mxu1 }
 0x2ae   :  { %v1999_v42 = vsel %vm1804_vm5, %v5527_v18, 0.0 }
 0x2af   :  { %v1919_v29 = vpop.f32.mrf.mxu1  ;;  %v5567_v15 = vpop.f32.mrf.mxu0 }
 0x2b0   :  { %v1998_v63 = vsel %vm1804_vm5, %v1919_v29, 0.0  ;;  %v2246_v48 = vsel %vm1804_vm5, %v5567_v15, 0.0 }
 0x2b1   :  { %v5530_v31 = vpop.f32.mrf.mxu1  ;;  %v2166_v32 = vpop.f32.mrf.mxu0  ;;  %v2000_v41 = vadd.f32 %v1999_v42, %v1998_v63 }
 0x2b2   :  { %v2245_v40 = vsel %vm1804_vm5, %v2166_v32, 0.0  ;;  %v2003_v4 = vsel %vm1804_vm5, %v5530_v31, 0.0 }
 0x2b3   :  { %v1929_v44 = vpop.f32.mrf.mxu1  ;;  %v5570_v46 = vpop.f32.mrf.mxu0  ;;  %v2247_v55 = vadd.f32 %v2246_v48, %v2245_v40 }
 0x2b4   :  { %v2001_v54 = vsel %vm1804_vm5, %v1929_v44, 0.0  ;;  %v2250_v5 = vsel %vm1804_vm5, %v5570_v46, 0.0 }
 0x2b5   :  { %v2002_v20 = vadd.f32 %v2001_v54, %v2000_v41  ;;  %v5533_v57 = vpop.f32.mrf.mxu1  ;;  %v2176_v61 = vpop.f32.mrf.mxu0 }
 0x2b6   :  { %v2248_v21 = vsel %vm1804_vm5, %v2176_v61, 0.0  ;;  %v2007_v9 = vsel %vm1804_vm5, %v5533_v57, 0.0 }
 0x2b7   :  { %v2249_v43 = vadd.f32 %v2248_v21, %v2247_v55  ;;  %v1939_v28 = vpop.f32.mrf.mxu1  ;;  %v2004_v8 = vadd.f32 %v2003_v4, %v2002_v20  ;;  %v5573_v30 = vpop.f32.mrf.mxu0 }
 0x2b8   :  { %v2005_v6 = vsel %vm1804_vm5, %v1939_v28, 0.0  ;;  %v2254_v60 = vsel %vm1804_vm5, %v5573_v30, 0.0 }
 0x2b9   :  { %v2006_v22 = vadd.f32 %v2005_v6, %v2004_v8  ;;  %v5536_v49 = vpop.f32.mrf.mxu1  ;;  %v2186_v16 = vpop.f32.mrf.mxu0  ;;  %v2251_v10 = vadd.f32 %v2250_v5, %v2249_v43 }
 0x2ba   :  { %v2252_v58 = vsel %vm1804_vm5, %v2186_v16, 0.0  ;;  %v2011_v11 = vsel %vm1804_vm5, %v5536_v49, 0.0 }
 0x2bb   :  { %v2253_v62 = vadd.f32 %v2252_v58, %v2251_v10  ;;  %v1949_v17 = vpop.f32.mrf.mxu1  ;;  %v2008_v37 = vadd.f32 %v2007_v9, %v2006_v22  ;;  %v5576_v50 = vpop.f32.mrf.mxu0 }
 0x2bc   :  { %v2009_v19 = vsel %vm1804_vm5, %v1949_v17, 0.0  ;;  %v2258_v53 = vsel %vm1804_vm5, %v5576_v50, 0.0 }
 0x2bd   :  { %v2010_v52 = vadd.f32 %v2009_v19, %v2008_v37  ;;  %v5539_v24 = vpop.f32.mrf.mxu1  ;;  %v2196_v51 = vpop.f32.mrf.mxu0  ;;  %v2255_v7 = vadd.f32 %v2254_v60, %v2253_v62 }
 0x2be   :  { %v2256_v14 = vsel %vm1804_vm5, %v2196_v51, 0.0  ;;  %v2015_v32 = vsel %vm1804_vm5, %v5539_v24, 0.0 }
 0x2bf   :  { %v2257_v34 = vadd.f32 %v2256_v14, %v2255_v7  ;;  %v1959_v26 = vpop.f32.mrf.mxu1  ;;  %v2012_v38 = vadd.f32 %v2011_v11, %v2010_v52  ;;  %v5579_v1 = vpop.f32.mrf.mxu0 }
 0x2c0   :  { %v2013_v18 = vsel %vm1804_vm5, %v1959_v26, 0.0  ;;  %v2262_v48 = vsel %vm1804_vm5, %v5579_v1, 0.0 }
 0x2c1   :  { %v2014_v29 = vadd.f32 %v2013_v18, %v2012_v38  ;;  %v5542_v15 = vpop.f32.mrf.mxu1  ;;  %v2206_v63 = vpop.f32.mrf.mxu0  ;;  %v2259_v31 = vadd.f32 %v2258_v53, %v2257_v34 }
 0x2c2   :  { %v2260_v42 = vsel %vm1804_vm5, %v2206_v63, 0.0  ;;  %v2019_v4 = vsel %vm1804_vm5, %v5542_v15, 0.0 }
 0x2c3   :  { %v2261_v40 = vadd.f32 %v2260_v42, %v2259_v31  ;;  %v1969_v41 = vpop.f32.mrf.mxu1  ;;  %v2016_v44 = vadd.f32 %v2015_v32, %v2014_v29  ;;  %v5582_v46 = vpop.f32.mrf.mxu0 }
 0x2c4   :  { %v2017_v54 = vsel %vm1804_vm5, %v1969_v41, 0.0  ;;  %v2266_v5 = vsel %vm1804_vm5, %v5582_v46, 0.0 }
 0x2c5   :  { %v2018_v55 = vadd.f32 %v2017_v54, %v2016_v44  ;;  %v5545_v20 = vpop.f32.mrf.mxu1  ;;  %v2216_v57 = vpop.f32.mrf.mxu0  ;;  %v2263_v61 = vadd.f32 %v2262_v48, %v2261_v40 }
 0x2c6   :  { %v2264_v21 = vsel %vm1804_vm5, %v2216_v57, 0.0  ;;  %v2023_v9 = vsel %vm1804_vm5, %v5545_v20, 0.0  ;;  %v2293_v57 = vlaneseq }
 0x2c7   :  { %v2265_v43 = vadd.f32 %v2264_v21, %v2263_v61  ;;  %v1979_v28 = vpop.f32.mrf.mxu1  ;;  %v2020_v8 = vadd.f32 %v2019_v4, %v2018_v55  ;;  %v5585_v30 = vpop.f32.mrf.mxu0  ;;  %v2287_v4 = vld [vmem:[%s9021_s2] sm:$0x1] }
 0x2c8   :  { %v2021_v6 = vsel %vm1804_vm5, %v1979_v28, 0.0  ;;  %v2270_v60 = vsel %vm1804_vm5, %v5585_v30, 0.0  ;;  %v2294_v61 = vshrl.u32 %v2293_v57, 7 }
 0x2c9   :  { %v2022_v22 = vadd.f32 %v2021_v6, %v2020_v8  ;;  %v5548_v49 = vpop.f32.mrf.mxu1  ;;  %v2226_v16 = vpop.f32.mrf.mxu0  ;;  %v2267_v10 = vadd.f32 %v2266_v5, %v2265_v43  ;;  %v2289_v8 = vld [vmem:[%s9022_s3] sm:$0x1] }
 0x2ca   :  { %v2268_v58 = vsel %vm1804_vm5, %v2226_v16, 0.0  ;;  %v2027_v7 = vsel %vm1804_vm5, %v5548_v49, 0.0  ;;  %v7670_v21 = vsub.s32 0, %v2294_v61 }
 0x2cb   :  { %v2269_v62 = vadd.f32 %v2268_v58, %v2267_v10  ;;  %v1989_v17 = vpop.f32.mrf.mxu1  ;;  %v2024_v37 = vadd.f32 %v2023_v9, %v2022_v22  ;;  %v5588_v50 = vpop.f32.mrf.mxu0 }
 0x2cc   :  { %v2025_v19 = vsel %vm1804_vm5, %v1989_v17, 0.0  ;;  %v2274_v26 = vsel %vm1804_vm5, %v5588_v50, 0.0  ;;  %9078 = vst [vmem:[#allocation30_spill] sm:$0xff] %v7670_v21 }
 0x2cd   :  { %v2026_v52 = vadd.f32 %v2025_v19, %v2024_v37  ;;  %v2236_v24 = vpop.f32.mrf.mxu0  ;;  %v2271_v51 = vadd.f32 %v2270_v60, %v2269_v62 }
 0x2ce   :  { %v2272_v11 = vsel %vm1804_vm5, %v2236_v24, 0.0 }
 0x2cf   :  { %v2028_v14 = vadd.f32 %v2027_v7, %v2026_v52  ;;  %v2273_v34 = vadd.f32 %v2272_v11, %v2271_v51 }
 0x2d1   :  { %v2029_v38 = vrot.slane %v2028_v14, 4  ;;  %v2275_v1 = vadd.f32 %v2274_v26, %v2273_v34 }
 0x2d3   :  { %v2030_v53 = vadd.f32 %v2029_v38, %v2028_v14  ;;  %v2276_v18 = vrot.slane %v2275_v1, 4 }
 0x2d5   :  { %v2031_v29 = vrot.slane %v2030_v53, 2  ;;  %v2277_v15 = vadd.f32 %v2276_v18, %v2275_v1 }
 0x2d7   :  { %v2032_v63 = vadd.f32 %v2031_v29, %v2030_v53  ;;  %v2278_v31 = vrot.slane %v2277_v15, 2 }
 0x2d9   :  { %v2033_v32 = vrot.slane %v2032_v63, 1  ;;  %v2279_v42 = vadd.f32 %v2278_v31, %v2277_v15 }
 0x2db   :  { %v2034_v40 = vadd.f32 %v2033_v32, %v2032_v63  ;;  %v2280_v41 = vrot.slane %v2279_v42, 1 }
 0x2dd   :  { %v2035_v44 = vmul.f32 0.0009765625, %v2034_v40  ;;  %v2281_v46 = vadd.f32 %v2280_v41, %v2279_v42 }
 0x2df   :  { %v2283_v48 = vmul.f32 %v2035_v44, %v2035_v44  ;;  %v2282_v54 = vmul.f32 0.0009765625, %v2281_v46 }
 0x2e1   :  { %v2284_v55 = vsub.f32 %v2282_v54, %v2283_v48 }
 0x2e3   :  { %v2285_v20 = vadd.f32 1e-05, %v2284_v55 }
 0x2e5   :  { %5729 = vrsqrt.f32 %v2285_v20 }
 0x2f2   :  { %v5730_v43 = vpop.eup %5729 }
 0x2f3   :  { %v2288_v28 = vmul.f32 %v5730_v43, %v2287_v4 }
 0x2f5   :  { %v2290_v30 = vmul.f32 %v2288_v28, %v2035_v44  ;;  %v2296_v5 = vrot.slane %v2288_v28, %v7670_v21 }
 0x2f7   :  { %v2291_v6 = vsub.f32 %v2289_v8, %v2290_v30  ;;  %v2298_v22 = vmul.f32 %v2296_v5, %v7470_v39  ;;  %v2299_v49 = vmul.f32 %v2296_v5, %v7466_v3  ;;  %v2300_v16 = vmul.f32 %v2296_v5, %v7490_v25 }
 0x2f8   :  { %v2301_v10 = vmul.f32 %v2296_v5, %v7483_v13  ;;  %v2302_v9 = vmul.f32 %v2296_v5, %v7516_v59  ;;  %v2303_v58 = vmul.f32 %v2296_v5, %v7509_v47  ;;  %v2304_v62 = vmul.f32 %v2296_v5, %v7540_v45 }
 0x2f9   :  { %v2305_v17 = vmul.f32 %v2296_v5, %v7533_v36  ;;  %v2306_v37 = vmul.f32 %v2296_v5, %v7564_v33  ;;  %v2307_v50 = vmul.f32 %v2296_v5, %v7557_v56  ;;  %v2308_v39 = vmul.f32 %v2296_v5, %v7590_v12 }
 0x2fa   :  { %v2309_v3 = vmul.f32 %v2296_v5, %v7583_v2  ;;  %v2318_v25 = vrot.slane %v2291_v6, %v7670_v21  ;;  %v2310_v13 = vmul.f32 %v2296_v5, %v7607_v35  ;;  %v2311_v59 = vmul.f32 %v2296_v5, %v7602_v23 }
 0x2fb   :  { %v2312_v47 = vmul.f32 %v2296_v5, %v7621_v0  ;;  %v2313_v45 = vmul.f32 %v2296_v5, %v7617_v27 }
 0x2fc   :  { %v2320_v60 = vadd.f32 %v2318_v25, %v2298_v22  ;;  %v2321_v36 = vadd.f32 %v2318_v25, %v2299_v49  ;;  %v2322_v19 = vadd.f32 %v2318_v25, %v2300_v16  ;;  %v2323_v33 = vadd.f32 %v2318_v25, %v2301_v10 }
 0x2fd   :  { %v2324_v52 = vadd.f32 %v2318_v25, %v2302_v9  ;;  %v2325_v56 = vadd.f32 %v2318_v25, %v2303_v58  ;;  %v2326_v24 = vadd.f32 %v2318_v25, %v2304_v62  ;;  %v2327_v12 = vadd.f32 %v2318_v25, %v2305_v17 }
 0x2fe   :  { %v2328_v51 = vadd.f32 %v2318_v25, %v2306_v37  ;;  %v2329_v2 = vadd.f32 %v2318_v25, %v2307_v50  ;;  %v2330_v7 = vadd.f32 %v2318_v25, %v2308_v39  ;;  %v2331_v11 = vadd.f32 %v2318_v25, %v2309_v3 }
 0x2ff   :  { %v2332_v14 = vadd.f32 %v2318_v25, %v2310_v13  ;;  %v2333_v35 = vadd.f32 %v2318_v25, %v2311_v59  ;;  %v2334_v34 = vadd.f32 %v2318_v25, %v2312_v47  ;;  %v2335_v23 = vadd.f32 %v2318_v25, %v2313_v45 }
 0x300   :  { %v2336_v26 = vmax.f32 %v2320_v60, 0.0  ;;  %v2337_v0 = vmax.f32 %v2321_v36, 0.0  ;;  %v2338_v38 = vmax.f32 %v2322_v19, 0.0  ;;  %v2339_v27 = vmax.f32 %v2323_v33, 0.0 }
 0x301   :  { %v2340_v1 = vmax.f32 %v2324_v52, 0.0  ;;  %v2341_v53 = vmax.f32 %v2325_v56, 0.0  ;;  %v2342_v18 = vmax.f32 %v2326_v24, 0.0  ;;  %v2343_v29 = vmax.f32 %v2327_v12, 0.0 }
 0x302   :  { %v2344_v15 = vmax.f32 %v2328_v51, 0.0  ;;  %v2345_v63 = vmax.f32 %v2329_v2, 0.0  ;;  %v2346_v31 = vmax.f32 %v2330_v7, 0.0  ;;  %v2347_v32 = vmax.f32 %v2331_v11, 0.0  ;;  %2352 = vst.msk [vmem:[#allocation2] sm:$0xff] %vm1804_vm5, %v2336_v26  ;;  %2353 = vst.msk [vmem:[#allocation2 + $0x8] sm:$0xff] %vm1804_vm5, %v2337_v0 }
 0x303   :  { %2354 = vst.msk [vmem:[#allocation2 + $0x10] sm:$0xff] %vm1804_vm5, %v2338_v38  ;;  %2355 = vst.msk [vmem:[#allocation2 + $0x18] sm:$0xff] %vm1804_vm5, %v2339_v27  ;;  %v2348_v42 = vmax.f32 %v2332_v14, 0.0  ;;  %v2349_v40 = vmax.f32 %v2333_v35, 0.0  ;;  %v2350_v41 = vmax.f32 %v2334_v34, 0.0  ;;  %v2351_v44 = vmax.f32 %v2335_v23, 0.0 }
 0x304   :  { %2356 = vst.msk [vmem:[#allocation2 + $0x20] sm:$0xff] %vm1804_vm5, %v2340_v1  ;;  %2357 = vst.msk [vmem:[#allocation2 + $0x28] sm:$0xff] %vm1804_vm5, %v2341_v53 }
 0x305   :  { %2358 = vst.msk [vmem:[#allocation2 + $0x30] sm:$0xff] %vm1804_vm5, %v2342_v18  ;;  %2359 = vst.msk [vmem:[#allocation2 + $0x38] sm:$0xff] %vm1804_vm5, %v2343_v29 }
 0x306   :  { %2360 = vst.msk [vmem:[#allocation2 + $0x40] sm:$0xff] %vm1804_vm5, %v2344_v15  ;;  %2361 = vst.msk [vmem:[#allocation2 + $0x48] sm:$0xff] %vm1804_vm5, %v2345_v63 }
 0x307   :  { %2362 = vst.msk [vmem:[#allocation2 + $0x50] sm:$0xff] %vm1804_vm5, %v2346_v31  ;;  %2363 = vst.msk [vmem:[#allocation2 + $0x58] sm:$0xff] %vm1804_vm5, %v2347_v32 }
 0x308   :  { %2364 = vst.msk [vmem:[#allocation2 + $0x60] sm:$0xff] %vm1804_vm5, %v2348_v42  ;;  %2365 = vst.msk [vmem:[#allocation2 + $0x68] sm:$0xff] %vm1804_vm5, %v2349_v40 }
 0x309   :  { %2366 = vst.msk [vmem:[#allocation2 + $0x70] sm:$0xff] %vm1804_vm5, %v2350_v41  ;;  %2367 = vst.msk [vmem:[#allocation2 + $0x78] sm:$0xff] %vm1804_vm5, %v2351_v44 }
 0x30a   :  { %v2368_v46 = vld [vmem:[#allocation2] sm:$0xff]  ;;  %v2370_v48 = vld [vmem:[#allocation2 + $0x10] sm:$0xff]  ;;  %vm2433_vm6 = vcmask 64512   ;;  %s5735_s2 = smov 8   ;;  %v5736_v54 = vmov 0.0   ;;  %vm2435_vm7 = vcmask 58368  }
 0x30b   :  { %2533 = vrot.lane.b32.xlu0 %v2368_v46, %s5735_s2  ;;  %2537 = vrot.lane.b32.xlu1 %v2370_v48, %s5735_s2  ;;  %2394 = vst [vmem:[#allocation5 + $0xa] sm:$0x1] %v5736_v54  ;;  %2414 = vst [vmem:[#allocation5 + $0x13] sm:$0x1] %v5736_v54  ;;  %vm2475_vm8 = vcmask 1048128   ;;  %vm2477_vm9 = vcmask 1041984  }
 0x30c   :  { %2384 = vst [vmem:[#allocation5] sm:$0xff] %v5736_v54  ;;  %2385 = vst [vmem:[#allocation5 + $0x8] sm:$0x3] %v5736_v54  ;;  %v7751_v55 = vld [vmem:[#allocation2 + $0x8] sm:$0xff]  ;;  %v7753_v20 = vld [vmem:[#allocation2 + $0x18] sm:$0xff]  ;;  %vm2582_vm10 = vcmask 588864  }
 0x30d   :  { %2386 = vst [vmem:[#allocation5 + $0x64] sm:$0xff] %v5736_v54  ;;  %2387 = vst [vmem:[#allocation5 + $0x6c] sm:$0x3] %v5736_v54  ;;  %v3063_v57 = vld [vmem:[%s9024_s5 + $0xf8] sm:$0xff]  ;;  %v2373_v4 = vld [vmem:[#allocation2 + $0x28] sm:$0xff] }
 0x30e   :  { %2389 = vst [vmem:[#allocation5 + $0x5a] sm:$0xff] %v5736_v54  ;;  %2390 = vst [vmem:[#allocation5 + $0x62] sm:$0x3] %v5736_v54  ;;  %v3047_v61 = vld [vmem:[%s9024_s5 + $0x78] sm:$0xff]  ;;  %v2372_v43 = vld [vmem:[#allocation2 + $0x20] sm:$0xff]  ;;  %5053 = vmatprep.subr.mxu1 %v3063_v57 }
 0x30f   :  { %2391 = vst [vmem:[#allocation5 + $0xbe] sm:$0xff] %v5736_v54  ;;  %2392 = vst [vmem:[#allocation5 + $0xc6] sm:$0x3] %v5736_v54  ;;  %2535 = vrot.lane.b32.xlu0 %v7751_v55, %s5735_s2  ;;  %2539 = vrot.lane.b32.xlu1 %v7753_v20, %s5735_s2  ;;  %v3062_v28 = vld [vmem:[%s9024_s5 + $0xf0] sm:$0xff]  ;;  %v3095_v30 = vld [vmem:[%s9024_s5 + $0x1f8] sm:$0xff] }
 0x310   :  { %2395 = vst [vmem:[#allocation5 + $0x14] sm:$0x1] %v5736_v54  ;;  %2396 = vst [vmem:[#allocation5 + $0x1e] sm:$0x1] %v5736_v54  ;;  %5054 = vmatpush3.msra.mxu1 %v3047_v61  ;;  %v3046_v8 = vld [vmem:[%s9024_s5 + $0x70] sm:$0xff]  ;;  %v3061_v5 = vld [vmem:[%s9024_s5 + $0xe8] sm:$0xff]  ;;  %5133 = vmatprep.subr.mxu0 %v3095_v30 }
 0x311   :  { %2397 = vst [vmem:[#allocation5 + $0x28] sm:$0x1] %v5736_v54  ;;  %2398 = vst [vmem:[#allocation5 + $0x32] sm:$0x1] %v5736_v54  ;;  %5055 = vmatprep.subr.mxu1 %v3062_v28  ;;  %v3079_v6 = vld [vmem:[%s9024_s5 + $0x178] sm:$0xff]  ;;  %v3045_v22 = vld [vmem:[%s9024_s5 + $0x68] sm:$0xff] }
 0x312   :  { %2399 = vst [vmem:[#allocation5 + $0x3c] sm:$0x1] %v5736_v54  ;;  %2400 = vst [vmem:[#allocation5 + $0x46] sm:$0x1] %v5736_v54  ;;  %v3094_v49 = vld [vmem:[%s9024_s5 + $0x1f0] sm:$0xff]  ;;  %v2376_v16 = vld [vmem:[#allocation2 + $0x40] sm:$0xff]  ;;  %5056 = vmatpush3.msra.mxu1 %v3046_v8  ;;  %5134 = vmatpush3.msra.mxu0 %v3079_v6 }
 0x313   :  { %2401 = vst [vmem:[#allocation5 + $0x50] sm:$0x1] %v5736_v54  ;;  %2404 = vst [vmem:[#allocation5 + $0x6e] sm:$0x1] %v5736_v54  ;;  %2543 = vrot.lane.b32.xlu1 %v2373_v4, %s5735_s2  ;;  %2541 = vrot.lane.b32.xlu0 %v2372_v43, %s5735_s2  ;;  %v2374_v10 = vld [vmem:[#allocation2 + $0x30] sm:$0xff]  ;;  %v3060_v58 = vld [vmem:[%s9024_s5 + $0xe0] sm:$0xff] }
 0x314   :  { %2405 = vst [vmem:[#allocation5 + $0x78] sm:$0x1] %v5736_v54  ;;  %2406 = vst [vmem:[#allocation5 + $0x82] sm:$0x1] %v5736_v54  ;;  %v3078_v9 = vld [vmem:[%s9024_s5 + $0x170] sm:$0xff]  ;;  %5057 = vmatprep.subr.mxu1 %v3061_v5  ;;  %5135 = vmatprep.subr.mxu0 %v3094_v49  ;;  %v3093_v62 = vld [vmem:[%s9024_s5 + $0x1e8] sm:$0xff] }
 0x315   :  { %2407 = vst [vmem:[#allocation5 + $0x8c] sm:$0x1] %v5736_v54  ;;  %2408 = vst [vmem:[#allocation5 + $0x96] sm:$0x1] %v5736_v54  ;;  %5058 = vmatpush3.msra.mxu1 %v3045_v22  ;;  %v3044_v17 = vld [vmem:[%s9024_s5 + $0x60] sm:$0xff]  ;;  %5136 = vmatpush3.msra.mxu0 %v3078_v9  ;;  %v3077_v37 = vld [vmem:[%s9024_s5 + $0x168] sm:$0xff] }
 0x316   :  { %2409 = vst [vmem:[#allocation5 + $0xa0] sm:$0x1] %v5736_v54  ;;  %2410 = vst [vmem:[#allocation5 + $0xaa] sm:$0x1] %v5736_v54  ;;  %v3059_v50 = vld [vmem:[%s9024_s5 + $0xd8] sm:$0xff]  ;;  %v3092_v39 = vld [vmem:[%s9024_s5 + $0x1e0] sm:$0xff]  ;;  %5059 = vmatprep.subr.mxu1 %v3060_v58  ;;  %5137 = vmatprep.subr.mxu0 %v3093_v62 }
 0x317   :  { %2411 = vst [vmem:[#allocation5 + $0xb4] sm:$0x1] %v5736_v54  ;;  %2415 = vst [vmem:[#allocation5 + $0x1d] sm:$0x1] %v5736_v54  ;;  %2549 = vrot.lane.b32.xlu1 %v2376_v16, %s5735_s2  ;;  %2545 = vrot.lane.b32.xlu0 %v2374_v10, %s5735_s2  ;;  %v2378_v3 = vld [vmem:[#allocation2 + $0x50] sm:$0xff]  ;;  %v2377_v25 = vld [vmem:[#allocation2 + $0x48] sm:$0xff] }
 0x318   :  { %2416 = vst [vmem:[#allocation5 + $0x27] sm:$0x1] %v5736_v54  ;;  %2417 = vst [vmem:[#allocation5 + $0x31] sm:$0x1] %v5736_v54  ;;  %5060 = vmatpush3.msra.mxu1 %v3044_v17  ;;  %v3043_v13 = vld [vmem:[%s9024_s5 + $0x58] sm:$0xff]  ;;  %5138 = vmatpush3.msra.mxu0 %v3077_v37  ;;  %v3076_v59 = vld [vmem:[%s9024_s5 + $0x160] sm:$0xff] }
 0x319   :  { %2418 = vst [vmem:[#allocation5 + $0x3b] sm:$0x1] %v5736_v54  ;;  %2419 = vst [vmem:[#allocation5 + $0x45] sm:$0x1] %v5736_v54  ;;  %5061 = vmatprep.subr.mxu1 %v3059_v50  ;;  %v3058_v47 = vld [vmem:[%s9024_s5 + $0xd0] sm:$0xff]  ;;  %5139 = vmatprep.subr.mxu0 %v3092_v39  ;;  %v3091_v45 = vld [vmem:[%s9024_s5 + $0x1d8] sm:$0xff] }
 0x31a   :  { %2420 = vst [vmem:[#allocation5 + $0x4f] sm:$0x1] %v5736_v54  ;;  %2421 = vst [vmem:[#allocation5 + $0x59] sm:$0x1] %v5736_v54  ;;  %v3042_v60 = vld [vmem:[%s9024_s5 + $0x50] sm:$0xff]  ;;  %v3075_v36 = vld [vmem:[%s9024_s5 + $0x158] sm:$0xff]  ;;  %5062 = vmatpush3.msra.mxu1 %v3043_v13  ;;  %5140 = vmatpush3.msra.mxu0 %v3076_v59 }
 0x31b   :  { %2424 = vst [vmem:[#allocation5 + $0x77] sm:$0x1] %v5736_v54  ;;  %2425 = vst [vmem:[#allocation5 + $0x81] sm:$0x1] %v5736_v54  ;;  %2553 = vrot.lane.b32.xlu1 %v2378_v3, %s5735_s2  ;;  %2551 = vrot.lane.b32.xlu0 %v2377_v25, %s5735_s2  ;;  %v2380_v19 = vld [vmem:[#allocation2 + $0x60] sm:$0xff]  ;;  %v2379_v33 = vld [vmem:[#allocation2 + $0x58] sm:$0xff] }
 0x31c   :  { %2426 = vst [vmem:[#allocation5 + $0x8b] sm:$0x1] %v5736_v54  ;;  %2427 = vst [vmem:[#allocation5 + $0x95] sm:$0x1] %v5736_v54  ;;  %5063 = vmatprep.subr.mxu1 %v3058_v47  ;;  %v3057_v52 = vld [vmem:[%s9024_s5 + $0xc8] sm:$0xff]  ;;  %5141 = vmatprep.subr.mxu0 %v3091_v45  ;;  %v3090_v56 = vld [vmem:[%s9024_s5 + $0x1d0] sm:$0xff] }
 0x31d   :  { %2428 = vst [vmem:[#allocation5 + $0x9f] sm:$0x1] %v5736_v54  ;;  %2429 = vst [vmem:[#allocation5 + $0xa9] sm:$0x1] %v5736_v54  ;;  %5064 = vmatpush3.msra.mxu1 %v3042_v60  ;;  %v3041_v24 = vld [vmem:[%s9024_s5 + $0x48] sm:$0xff]  ;;  %5142 = vmatpush3.msra.mxu0 %v3075_v36  ;;  %v3074_v12 = vld [vmem:[%s9024_s5 + $0x150] sm:$0xff] }
 0x31e   :  { %2430 = vst [vmem:[#allocation5 + $0xb3] sm:$0x1] %v5736_v54  ;;  %2431 = vst [vmem:[#allocation5 + $0xbd] sm:$0x1] %v5736_v54  ;;  %v3056_v51 = vld [vmem:[%s9024_s5 + $0xc0] sm:$0xff]  ;;  %v3089_v2 = vld [vmem:[%s9024_s5 + $0x1c8] sm:$0xff]  ;;  %5065 = vmatprep.subr.mxu1 %v3057_v52  ;;  %5143 = vmatprep.subr.mxu0 %v3090_v56 }
 0x31f   :  { %2437 = vst.msk [vmem:[#allocation5 + $0xa] sm:$0xff] %vm2433_vm6, %v5736_v54  ;;  %2393 = vst [vmem:[#allocation5] sm:$0x1] %v5736_v54  ;;  %2557 = vrot.lane.b32.xlu1 %v2380_v19, %s5735_s2  ;;  %2555 = vrot.lane.b32.xlu0 %v2379_v33, %s5735_s2  ;;  %v2375_v7 = vld [vmem:[#allocation2 + $0x38] sm:$0xff]  ;;  %v2381_v11 = vld [vmem:[#allocation2 + $0x68] sm:$0xff] }
 0x320   :  { %2438 = vst.msk [vmem:[#allocation5 + $0x12] sm:$0x3] %vm2435_vm7, %v5736_v54  ;;  %2402 = vst [vmem:[#allocation5 + $0x5a] sm:$0x1] %v5736_v54  ;;  %5066 = vmatpush3.msra.mxu1 %v3041_v24  ;;  %v3040_v14 = vld [vmem:[%s9024_s5 + $0x40] sm:$0xff]  ;;  %5144 = vmatpush3.msra.mxu0 %v3074_v12  ;;  %v3073_v35 = vld [vmem:[%s9024_s5 + $0x148] sm:$0xff] }
 0x321   :  { %2403 = vst [vmem:[#allocation5 + $0x64] sm:$0x1] %v5736_v54  ;;  %2412 = vst [vmem:[#allocation5 + $0xbe] sm:$0x1] %v5736_v54  ;;  %5067 = vmatprep.subr.mxu1 %v3056_v51  ;;  %v3055_v34 = vld [vmem:[%s9024_s5 + $0xb8] sm:$0xff]  ;;  %5145 = vmatprep.subr.mxu0 %v3089_v2  ;;  %v3088_v23 = vld [vmem:[%s9024_s5 + $0x1c0] sm:$0xff] }
 0x322   :  { %2413 = vst [vmem:[#allocation5 + $0x9] sm:$0x1] %v5736_v54  ;;  %2422 = vst [vmem:[#allocation5 + $0x63] sm:$0x1] %v5736_v54  ;;  %v3039_v26 = vld [vmem:[%s9024_s5 + $0x38] sm:$0xff]  ;;  %v3072_v0 = vld [vmem:[%s9024_s5 + $0x140] sm:$0xff]  ;;  %5068 = vmatpush3.msra.mxu1 %v3040_v14  ;;  %5146 = vmatpush3.msra.mxu0 %v3073_v35 }
 0x323   :  { %2423 = vst [vmem:[#allocation5 + $0x6d] sm:$0x1] %v5736_v54  ;;  %2432 = vst [vmem:[#allocation5 + $0xc7] sm:$0x1] %v5736_v54  ;;  %2547 = vrot.lane.b32.xlu1 %v2375_v7, %s5735_s2  ;;  %2559 = vrot.lane.b32.xlu0 %v2381_v11, %s5735_s2  ;;  %v2382_v38 = vld [vmem:[#allocation2 + $0x70] sm:$0xff]  ;;  %v2383_v27 = vld [vmem:[#allocation2 + $0x78] sm:$0xff] }
 0x324   :  { %2439 = vst.msk [vmem:[#allocation5 + $0x14] sm:$0xff] %vm2433_vm6, %v5736_v54  ;;  %2441 = vst.msk [vmem:[#allocation5 + $0x1e] sm:$0xff] %vm2433_vm6, %v5736_v54  ;;  %5069 = vmatprep.subr.mxu1 %v3055_v34  ;;  %v3054_v1 = vld [vmem:[%s9024_s5 + $0xb0] sm:$0xff]  ;;  %5147 = vmatprep.subr.mxu0 %v3088_v23  ;;  %v3087_v53 = vld [vmem:[%s9024_s5 + $0x1b8] sm:$0xff] }
 0x325   :  { %2440 = vst.msk [vmem:[#allocation5 + $0x1c] sm:$0x3] %vm2435_vm7, %v5736_v54  ;;  %2442 = vst.msk [vmem:[#allocation5 + $0x26] sm:$0x3] %vm2435_vm7, %v5736_v54  ;;  %5070 = vmatpush3.msra.mxu1 %v3039_v26  ;;  %v3038_v18 = vld [vmem:[%s9024_s5 + $0x30] sm:$0xff]  ;;  %5148 = vmatpush3.msra.mxu0 %v3072_v0  ;;  %v3071_v29 = vld [vmem:[%s9024_s5 + $0x138] sm:$0xff] }
 0x326   :  { %2443 = vst.msk [vmem:[#allocation5 + $0x28] sm:$0xff] %vm2433_vm6, %v5736_v54  ;;  %2445 = vst.msk [vmem:[#allocation5 + $0x32] sm:$0xff] %vm2433_vm6, %v5736_v54  ;;  %v3053_v15 = vld [vmem:[%s9024_s5 + $0xa8] sm:$0xff]  ;;  %v3086_v63 = vld [vmem:[%s9024_s5 + $0x1b0] sm:$0xff]  ;;  %5071 = vmatprep.subr.mxu1 %v3054_v1  ;;  %5149 = vmatprep.subr.mxu0 %v3087_v53 }
 0x327   :  { %2444 = vst.msk [vmem:[#allocation5 + $0x30] sm:$0x3] %vm2435_vm7, %v5736_v54  ;;  %2446 = vst.msk [vmem:[#allocation5 + $0x3a] sm:$0x3] %vm2435_vm7, %v5736_v54  ;;  %2561 = vrot.lane.b32.xlu0 %v2382_v38, %s5735_s2  ;;  %2563 = vrot.lane.b32.xlu1 %v2383_v27, %s5735_s2  ;;  %v3037_v31 = vld [vmem:[%s9024_s5 + $0x28] sm:$0xff]  ;;  %v3070_v32 = vld [vmem:[%s9024_s5 + $0x130] sm:$0xff] }
 0x328   :  { %2447 = vst.msk [vmem:[#allocation5 + $0x3c] sm:$0xff] %vm2433_vm6, %v5736_v54  ;;  %2449 = vst.msk [vmem:[#allocation5 + $0x46] sm:$0xff] %vm2433_vm6, %v5736_v54  ;;  %5072 = vmatpush3.msra.mxu1 %v3038_v18  ;;  %v3052_v42 = vld [vmem:[%s9024_s5 + $0xa0] sm:$0xff]  ;;  %5150 = vmatpush3.msra.mxu0 %v3071_v29  ;;  %v3085_v40 = vld [vmem:[%s9024_s5 + $0x1a8] sm:$0xff] }
 0x329   :  { %2448 = vst.msk [vmem:[#allocation5 + $0x44] sm:$0x3] %vm2435_vm7, %v5736_v54  ;;  %2450 = vst.msk [vmem:[#allocation5 + $0x4e] sm:$0x3] %vm2435_vm7, %v5736_v54  ;;  %5073 = vmatprep.subr.mxu1 %v3053_v15  ;;  %v3036_v41 = vld [vmem:[%s9024_s5 + $0x20] sm:$0xff]  ;;  %5151 = vmatprep.subr.mxu0 %v3086_v63  ;;  %v3069_v44 = vld [vmem:[%s9024_s5 + $0x128] sm:$0xff] }
 0x32a   :  { %2451 = vst.msk [vmem:[#allocation5 + $0x50] sm:$0xff] %vm2433_vm6, %v5736_v54  ;;  %2457 = vst.msk [vmem:[#allocation5 + $0x6e] sm:$0xff] %vm2433_vm6, %v5736_v54  ;;  %5074 = vmatpush3.msra.mxu1 %v3037_v31  ;;  %v3051_v46 = vld [vmem:[%s9024_s5 + $0x98] sm:$0xff]  ;;  %5152 = vmatpush3.msra.mxu0 %v3070_v32  ;;  %v3084_v48 = vld [vmem:[%s9024_s5 + $0x1a0] sm:$0xff] }
 0x32b   :  { %2452 = vst.msk [vmem:[#allocation5 + $0x58] sm:$0x3] %vm2435_vm7, %v5736_v54  ;;  %2458 = vst.msk [vmem:[#allocation5 + $0x76] sm:$0x3] %vm2435_vm7, %v5736_v54  ;;  %5075 = vmatprep.subr.mxu1 %v3052_v42  ;;  %5153 = vmatprep.subr.mxu0 %v3085_v40  ;;  %v3068_v55 = vld [vmem:[%s9024_s5 + $0x120] sm:$0xff]  ;;  %v3050_v20 = vld [vmem:[%s9024_s5 + $0x90] sm:$0xff] }
 0x32c   :  { %2459 = vst.msk [vmem:[#allocation5 + $0x78] sm:$0xff] %vm2433_vm6, %v5736_v54  ;;  %2461 = vst.msk [vmem:[#allocation5 + $0x82] sm:$0xff] %vm2433_vm6, %v5736_v54  ;;  %5076 = vmatpush3.msra.mxu1 %v3036_v41  ;;  %5154 = vmatpush3.msra.mxu0 %v3069_v44  ;;  %v3083_v57 = vld [vmem:[%s9024_s5 + $0x198] sm:$0xff]  ;;  %v3034_v61 = vld [vmem:[%s9024_s5 + $0x10] sm:$0xff] }
 0x32d   :  { %2460 = vst.msk [vmem:[#allocation5 + $0x80] sm:$0x3] %vm2435_vm7, %v5736_v54  ;;  %2462 = vst.msk [vmem:[#allocation5 + $0x8a] sm:$0x3] %vm2435_vm7, %v5736_v54  ;;  %5077 = vmatprep.subr.mxu1 %v3051_v46  ;;  %5155 = vmatprep.subr.mxu0 %v3084_v48  ;;  %v3049_v43 = vld [vmem:[%s9024_s5 + $0x88] sm:$0xff]  ;;  %v3067_v28 = vld [vmem:[%s9024_s5 + $0x118] sm:$0xff] }
 0x32e   :  { %2463 = vst.msk [vmem:[#allocation5 + $0x8c] sm:$0xff] %vm2433_vm6, %v5736_v54  ;;  %2465 = vst.msk [vmem:[#allocation5 + $0x96] sm:$0xff] %vm2433_vm6, %v5736_v54  ;;  %5156 = vmatpush3.msra.mxu0 %v3068_v55  ;;  %v3033_v8 = vld [vmem:[%s9024_s5 + $0x8] sm:$0xff]  ;;  %v3082_v30 = vld [vmem:[%s9024_s5 + $0x190] sm:$0xff] }
 0x32f   :  { %2464 = vst.msk [vmem:[#allocation5 + $0x94] sm:$0x3] %vm2435_vm7, %v5736_v54  ;;  %2466 = vst.msk [vmem:[#allocation5 + $0x9e] sm:$0x3] %vm2435_vm7, %v5736_v54  ;;  %5157 = vmatprep.subr.mxu0 %v3083_v57  ;;  %v3048_v5 = vld [vmem:[%s9024_s5 + $0x80] sm:$0xff]  ;;  %v3066_v6 = vld [vmem:[%s9024_s5 + $0x110] sm:$0xff] }
 0x330   :  { %2467 = vst.msk [vmem:[#allocation5 + $0xa0] sm:$0xff] %vm2433_vm6, %v5736_v54  ;;  %2469 = vst.msk [vmem:[#allocation5 + $0xaa] sm:$0xff] %vm2433_vm6, %v5736_v54  ;;  %v3032_v22 = vld [vmem:[%s9024_s5] sm:$0xff]  ;;  %5158 = vmatpush3.msra.mxu0 %v3067_v28  ;;  %v3081_v49 = vld [vmem:[%s9024_s5 + $0x188] sm:$0xff] }
 0x331   :  { %2468 = vst.msk [vmem:[#allocation5 + $0xa8] sm:$0x3] %vm2435_vm7, %v5736_v54  ;;  %2470 = vst.msk [vmem:[#allocation5 + $0xb2] sm:$0x3] %vm2435_vm7, %v5736_v54  ;;  %5159 = vmatprep.subr.mxu0 %v3082_v30  ;;  %v3127_v10 = vld [vmem:[%s9024_s5 + $0x2f8] sm:$0xff]  ;;  %v3065_v58 = vld [vmem:[%s9024_s5 + $0x108] sm:$0xff] }
 0x332   :  { %2471 = vst.msk [vmem:[#allocation5 + $0xb4] sm:$0xff] %vm2433_vm6, %v5736_v54  ;;  %2434 = vst.msk [vmem:[#allocation5] sm:$0xff] %vm2433_vm6, %v5736_v54  ;;  %5160 = vmatpush3.msra.mxu0 %v3066_v6  ;;  %v3111_v9 = vld [vmem:[%s9024_s5 + $0x278] sm:$0xff]  ;;  %v3080_v62 = vld [vmem:[%s9024_s5 + $0x180] sm:$0xff] }
 0x333   :  { %2472 = vst.msk [vmem:[#allocation5 + $0xbc] sm:$0x3] %vm2435_vm7, %v5736_v54  ;;  %2436 = vst.msk [vmem:[#allocation5 + $0x8] sm:$0x3] %vm2435_vm7, %v5736_v54  ;;  %5161 = vmatprep.subr.mxu0 %v3081_v49  ;;  %v3126_v17 = vld [vmem:[%s9024_s5 + $0x2f0] sm:$0xff]  ;;  %v3064_v37 = vld [vmem:[%s9024_s5 + $0x100] sm:$0xff] }
 0x334   :  { %2479 = vst.msk [vmem:[#allocation5 + $0xa] sm:$0xff] %vm2475_vm8, %v5736_v54  ;;  %2481 = vst.msk [vmem:[#allocation5 + $0x14] sm:$0xff] %vm2475_vm8, %v5736_v54  ;;  %v3110_v50 = vld [vmem:[%s9024_s5 + $0x270] sm:$0xff]  ;;  %5162 = vmatpush3.msra.mxu0 %v3065_v58  ;;  %v3125_v39 = vld [vmem:[%s9024_s5 + $0x2e8] sm:$0xff] }
 0x335   :  { %2480 = vst.msk [vmem:[#allocation5 + $0x12] sm:$0x3] %vm2477_vm9, %v5736_v54  ;;  %2482 = vst.msk [vmem:[#allocation5 + $0x1c] sm:$0x3] %vm2477_vm9, %v5736_v54  ;;  %v3159_v3 = vld [vmem:[%s9024_s5 + $0x3f8] sm:$0xff]  ;;  %5163 = vmatprep.subr.mxu0 %v3080_v62  ;;  %v3109_v25 = vld [vmem:[%s9024_s5 + $0x268] sm:$0xff] }
 0x336   :  { %2453 = vst.msk [vmem:[#allocation5 + $0x5a] sm:$0xff] %vm2433_vm6, %v5736_v54  ;;  %2455 = vst.msk [vmem:[#allocation5 + $0x64] sm:$0xff] %vm2433_vm6, %v5736_v54  ;;  %5164 = vmatpush3.msra.mxu0 %v3064_v37  ;;  %v3124_v13 = vld [vmem:[%s9024_s5 + $0x2e0] sm:$0xff]  ;;  %v3123_v47 = vld [vmem:[%s9024_s5 + $0x2d8] sm:$0xff] }
 0x337   :  { %2454 = vst.msk [vmem:[#allocation5 + $0x62] sm:$0x3] %vm2435_vm7, %v5736_v54  ;;  %2456 = vst.msk [vmem:[#allocation5 + $0x6c] sm:$0x3] %vm2435_vm7, %v5736_v54  ;;  %v3108_v59 = vld [vmem:[%s9024_s5 + $0x260] sm:$0xff]  ;;  %5293 = vmatprep.subr.mxu0 %v3159_v3  ;;  %v3107_v45 = vld [vmem:[%s9024_s5 + $0x258] sm:$0xff] }
 0x338   :  { %2473 = vst.msk [vmem:[#allocation5 + $0xbe] sm:$0xff] %vm2433_vm6, %v5736_v54  ;;  %v3122_v60 = vld [vmem:[%s9024_s5 + $0x2d0] sm:$0xff]  ;;  %v3121_v19 = vld [vmem:[%s9024_s5 + $0x2c8] sm:$0xff]  ;;  %v3120_v52 = vld [vmem:[%s9024_s5 + $0x2c0] sm:$0xff] }
 0x339   :  { %2474 = vst.msk [vmem:[#allocation5 + $0xc6] sm:$0x3] %vm2435_vm7, %v5736_v54  ;;  %v3106_v36 = vld [vmem:[%s9024_s5 + $0x250] sm:$0xff]  ;;  %v3105_v33 = vld [vmem:[%s9024_s5 + $0x248] sm:$0xff]  ;;  %v3104_v56 = vld [vmem:[%s9024_s5 + $0x240] sm:$0xff] }
 0x33a   :  { %2483 = vst.msk [vmem:[#allocation5 + $0x1e] sm:$0xff] %vm2475_vm8, %v5736_v54  ;;  %2485 = vst.msk [vmem:[#allocation5 + $0x28] sm:$0xff] %vm2475_vm8, %v5736_v54  ;;  %v3119_v24 = vld [vmem:[%s9024_s5 + $0x2b8] sm:$0xff]  ;;  %v3118_v51 = vld [vmem:[%s9024_s5 + $0x2b0] sm:$0xff] }
 0x33b   :  { %2484 = vst.msk [vmem:[#allocation5 + $0x26] sm:$0x3] %vm2477_vm9, %v5736_v54  ;;  %2486 = vst.msk [vmem:[#allocation5 + $0x30] sm:$0x3] %vm2477_vm9, %v5736_v54  ;;  %v3103_v12 = vld [vmem:[%s9024_s5 + $0x238] sm:$0xff]  ;;  %v3102_v2 = vld [vmem:[%s9024_s5 + $0x230] sm:$0xff] }
 0x33c   :  { %2487 = vst.msk [vmem:[#allocation5 + $0x32] sm:$0xff] %vm2475_vm8, %v5736_v54  ;;  %2489 = vst.msk [vmem:[#allocation5 + $0x3c] sm:$0xff] %vm2475_vm8, %v5736_v54  ;;  %v3117_v7 = vld [vmem:[%s9024_s5 + $0x2a8] sm:$0xff]  ;;  %v3116_v14 = vld [vmem:[%s9024_s5 + $0x2a0] sm:$0xff] }
 0x33d   :  { %2488 = vst.msk [vmem:[#allocation5 + $0x3a] sm:$0x3] %vm2477_vm9, %v5736_v54  ;;  %2490 = vst.msk [vmem:[#allocation5 + $0x44] sm:$0x3] %vm2477_vm9, %v5736_v54  ;;  %v3101_v11 = vld [vmem:[%s9024_s5 + $0x228] sm:$0xff]  ;;  %v3100_v35 = vld [vmem:[%s9024_s5 + $0x220] sm:$0xff] }
 0x33e   :  { %2491 = vst.msk [vmem:[#allocation5 + $0x46] sm:$0xff] %vm2475_vm8, %v5736_v54  ;;  %2493 = vst.msk [vmem:[#allocation5 + $0x50] sm:$0xff] %vm2475_vm8, %v5736_v54  ;;  %v3115_v34 = vld [vmem:[%s9024_s5 + $0x298] sm:$0xff]  ;;  %v3114_v26 = vld [vmem:[%s9024_s5 + $0x290] sm:$0xff] }
 0x33f   :  { %2492 = vst.msk [vmem:[#allocation5 + $0x4e] sm:$0x3] %vm2477_vm9, %v5736_v54  ;;  %2494 = vst.msk [vmem:[#allocation5 + $0x58] sm:$0x3] %vm2477_vm9, %v5736_v54  ;;  %v3099_v23 = vld [vmem:[%s9024_s5 + $0x218] sm:$0xff]  ;;  %v3098_v0 = vld [vmem:[%s9024_s5 + $0x210] sm:$0xff] }
 0x340   :  { %2499 = vst.msk [vmem:[#allocation5 + $0x6e] sm:$0xff] %vm2475_vm8, %v5736_v54  ;;  %2501 = vst.msk [vmem:[#allocation5 + $0x78] sm:$0xff] %vm2475_vm8, %v5736_v54  ;;  %v3113_v38 = vld [vmem:[%s9024_s5 + $0x288] sm:$0xff]  ;;  %v3112_v1 = vld [vmem:[%s9024_s5 + $0x280] sm:$0xff] }
 0x341   :  { %2500 = vst.msk [vmem:[#allocation5 + $0x76] sm:$0x3] %vm2477_vm9, %v5736_v54  ;;  %2502 = vst.msk [vmem:[#allocation5 + $0x80] sm:$0x3] %vm2477_vm9, %v5736_v54  ;;  %v3097_v27 = vld [vmem:[%s9024_s5 + $0x208] sm:$0xff]  ;;  %v3096_v53 = vld [vmem:[%s9024_s5 + $0x200] sm:$0xff] }
 0x342   :  { %2503 = vst.msk [vmem:[#allocation5 + $0x82] sm:$0xff] %vm2475_vm8, %v5736_v54  ;;  %2505 = vst.msk [vmem:[#allocation5 + $0x8c] sm:$0xff] %vm2475_vm8, %v5736_v54  ;;  %v8233_v18 = vld [vmem:[%s9024_s5 + $0x478] sm:$0xff]  ;;  %v3158_v48 = vld [vmem:[%s9024_s5 + $0x3f0] sm:$0xff] }
 0x343   :  { %2504 = vst.msk [vmem:[#allocation5 + $0x8a] sm:$0x3] %vm2477_vm9, %v5736_v54  ;;  %2506 = vst.msk [vmem:[#allocation5 + $0x94] sm:$0x3] %vm2477_vm9, %v5736_v54  ;;  %v3143_v46 = vld [vmem:[%s9024_s5 + $0x378] sm:$0xff]  ;;  %v3142_v28 = vld [vmem:[%s9024_s5 + $0x370] sm:$0xff] }
 0x344   :  { %2507 = vst.msk [vmem:[#allocation5 + $0x96] sm:$0xff] %vm2475_vm8, %v5736_v54  ;;  %2509 = vst.msk [vmem:[#allocation5 + $0xa0] sm:$0xff] %vm2475_vm8, %v5736_v54 }
 0x345   :  { %2508 = vst.msk [vmem:[#allocation5 + $0x9e] sm:$0x3] %vm2477_vm9, %v5736_v54  ;;  %2510 = vst.msk [vmem:[#allocation5 + $0xa8] sm:$0x3] %vm2477_vm9, %v5736_v54 }
 0x346   :  { %2511 = vst.msk [vmem:[#allocation5 + $0xaa] sm:$0xff] %vm2475_vm8, %v5736_v54  ;;  %2513 = vst.msk [vmem:[#allocation5 + $0xb4] sm:$0xff] %vm2475_vm8, %v5736_v54 }
 0x347   :  { %2512 = vst.msk [vmem:[#allocation5 + $0xb2] sm:$0x3] %vm2477_vm9, %v5736_v54  ;;  %2514 = vst.msk [vmem:[#allocation5 + $0xbc] sm:$0x3] %vm2477_vm9, %v5736_v54 }
 0x348   :  { %2476 = vst.msk [vmem:[#allocation5] sm:$0xff] %vm2475_vm8, %v5736_v54  ;;  %2495 = vst.msk [vmem:[#allocation5 + $0x5a] sm:$0xff] %vm2475_vm8, %v5736_v54 }
 0x349   :  { %2478 = vst.msk [vmem:[#allocation5 + $0x8] sm:$0x3] %vm2477_vm9, %v5736_v54  ;;  %2496 = vst.msk [vmem:[#allocation5 + $0x62] sm:$0x3] %vm2477_vm9, %v5736_v54 }
 0x34a   :  { %2497 = vst.msk [vmem:[#allocation5 + $0x64] sm:$0xff] %vm2475_vm8, %v5736_v54  ;;  %2515 = vst.msk [vmem:[#allocation5 + $0xbe] sm:$0xff] %vm2475_vm8, %v5736_v54 }
 0x34b   :  { %2498 = vst.msk [vmem:[#allocation5 + $0x6c] sm:$0x3] %vm2477_vm9, %v5736_v54  ;;  %2516 = vst.msk [vmem:[#allocation5 + $0xc6] sm:$0x3] %vm2477_vm9, %v5736_v54  ;;  %v3035_v54 = vld [vmem:[%s9024_s5 + $0x18] sm:$0xff] }
 0x34c   :  { %5078 = vmatpush3.msra.mxu1 %v3035_v54 }
 0x34d   :  { %5079 = vmatprep.subr.mxu1 %v3050_v20 }
 0x34e   :  { %5080 = vmatpush3.msra.mxu1 %v3034_v61 }
 0x34f   :  { %5081 = vmatprep.subr.mxu1 %v3049_v43  ;;  %v2599_v16 = vld [vmem:[#allocation5] sm:$0xff] }
 0x350   :  { %v2631_v4 = vld [vmem:[#allocation5 + $0x1] sm:$0xff]  ;;  %5082 = vmatpush3.msra.mxu1 %v3033_v8 }
 0x351   :  { %3240 = vmatprep.mubr.f32.mxu1 %v2631_v4  ;;  %5083 = vmatprep.subr.mxu1 %v3048_v5  ;;  %v2663_v32 = vld [vmem:[#allocation5 + $0x2] sm:$0xff] }
 0x352   :  { %5084 = vmatpush3.msra.mxu1 %v3032_v22  ;;  %v3157_v8 = vld [vmem:[%s9024_s5 + $0x3e8] sm:$0xff] }
 0x353   :  { %3241 = vmatmul.mubr.f32.vlgmr.msra.gmra.mxu1 %v2599_v16  ;;  %5213 = vmatprep.subr.mxu1 %v3127_v10  ;;  %v3141_v16 = vld [vmem:[%s9024_s5 + $0x368] sm:$0xff]  ;;  %v3156_v10 = vld [vmem:[%s9024_s5 + $0x3e0] sm:$0xff] }
 0x354   :  { %5214 = vmatpush3.msra.mxu1 %v3111_v9 }
 0x355   :  { %5215 = vmatprep.subr.mxu1 %v3126_v17 }
 0x356   :  { %5216 = vmatpush3.msra.mxu1 %v3110_v50  ;;  %v3140_v50 = vld [vmem:[%s9024_s5 + $0x360] sm:$0xff] }
 0x357   :  { %5217 = vmatprep.subr.mxu1 %v3125_v39  ;;  %v3155_v39 = vld [vmem:[%s9024_s5 + $0x3d8] sm:$0xff] }
 0x358   :  { %5218 = vmatpush3.msra.mxu1 %v3109_v25 }
 0x359   :  { %5219 = vmatprep.subr.mxu1 %v3124_v13 }
 0x35a   :  { %5220 = vmatpush3.msra.mxu1 %v3108_v59 }
 0x35b   :  { %5221 = vmatprep.subr.mxu1 %v3123_v47 }
 0x35c   :  { %5222 = vmatpush3.msra.mxu1 %v3107_v45  ;;  %v3139_v45 = vld [vmem:[%s9024_s5 + $0x358] sm:$0xff] }
 0x35d   :  { %5223 = vmatprep.subr.mxu1 %v3122_v60  ;;  %v3154_v60 = vld [vmem:[%s9024_s5 + $0x3d0] sm:$0xff] }
 0x35e   :  { %5224 = vmatpush3.msra.mxu1 %v3106_v36 }
 0x35f   :  { %5225 = vmatprep.subr.mxu1 %v3121_v19 }
 0x360   :  { %5226 = vmatpush3.msra.mxu1 %v3105_v33 }
 0x361   :  { %5227 = vmatprep.subr.mxu1 %v3120_v52 }
 0x362   :  { %5228 = vmatpush3.msra.mxu1 %v3104_v56 }
 0x363   :  { %5229 = vmatprep.subr.mxu1 %v3119_v24  ;;  %v3138_v24 = vld [vmem:[%s9024_s5 + $0x350] sm:$0xff] }
 0x364   :  { %5230 = vmatpush3.msra.mxu1 %v3103_v12  ;;  %v3153_v12 = vld [vmem:[%s9024_s5 + $0x3c8] sm:$0xff] }
 0x365   :  { %5231 = vmatprep.subr.mxu1 %v3118_v51  ;;  %v2639_v51 = vld [vmem:[#allocation5 + $0x65] sm:$0xff] }
 0x366   :  { %5232 = vmatpush3.msra.mxu1 %v3102_v2 }
 0x367   :  { %5233 = vmatprep.subr.mxu1 %v3117_v7 }
 0x368   :  { %5234 = vmatpush3.msra.mxu1 %v3101_v11  ;;  %v3137_v11 = vld [vmem:[%s9024_s5 + $0x348] sm:$0xff] }
 0x369   :  { %5235 = vmatprep.subr.mxu1 %v3116_v14  ;;  %v3152_v14 = vld [vmem:[%s9024_s5 + $0x3c0] sm:$0xff] }
 0x36a   :  { %5236 = vmatpush3.msra.mxu1 %v3100_v35  ;;  %v2607_v35 = vld [vmem:[#allocation5 + $0x64] sm:$0xff] }
 0x36b   :  { %5237 = vmatprep.subr.mxu1 %v3115_v34 }
 0x36c   :  { %5238 = vmatpush3.msra.mxu1 %v3099_v23 }
 0x36d   :  { %5239 = vmatprep.subr.mxu1 %v3114_v26 }
 0x36e   :  { %5240 = vmatpush3.msra.mxu1 %v3098_v0  ;;  %v3136_v0 = vld [vmem:[%s9024_s5 + $0x340] sm:$0xff] }
 0x36f   :  { %5241 = vmatprep.subr.mxu1 %v3113_v38  ;;  %v3151_v38 = vld [vmem:[%s9024_s5 + $0x3b8] sm:$0xff] }
 0x370   :  { %5242 = vmatpush3.msra.mxu1 %v3097_v27  ;;  %v2671_v27 = vld [vmem:[#allocation5 + $0x66] sm:$0xff] }
 0x371   :  { %5243 = vmatprep.subr.mxu1 %v3112_v1 }
 0x372   :  { %5244 = vmatpush3.msra.mxu1 %v3096_v53 }
 0x373   :  { %5589 = vmatprep.subr.mxu1 %v8233_v18 }
 0x37d   :  { %v2534_v29 = vpop.permute.xlu0 %2533  ;;  %v2538_v15 = vpop.permute.xlu1 %2537 }
 0x37e   :  { %2583 = vst.msk [vmem:[#allocation5 + $0xb] sm:$0xff] %vm2582_vm10, %v2534_v29  ;;  %2585 = vst.msk [vmem:[#allocation5 + $0x1f] sm:$0xff] %vm2582_vm10, %v2538_v15  ;;  %v3135_v29 = vld [vmem:[%s9024_s5 + $0x338] sm:$0xff]  ;;  %v3150_v15 = vld [vmem:[%s9024_s5 + $0x3b0] sm:$0xff] }
 0x381   :  { %v2536_v63 = vpop.permute.xlu0 %2535  ;;  %v2540_v31 = vpop.permute.xlu1 %2539 }
 0x382   :  { %2584 = vst.msk [vmem:[#allocation5 + $0x15] sm:$0xff] %vm2582_vm10, %v2536_v63  ;;  %2586 = vst.msk [vmem:[#allocation5 + $0x29] sm:$0xff] %vm2582_vm10, %v2540_v31 }
 0x385   :  { %v8240_v42 = vld [vmem:[#allocation5 + $0xb] sm:$0xff]  ;;  %v2544_v41 = vpop.permute.xlu1 %2543  ;;  %v2542_v44 = vpop.permute.xlu0 %2541  ;;  %v8251_v54 = vld [vmem:[#allocation5 + $0x1f] sm:$0xff] }
 0x386   :  { %v2695_v40 = vld [vmem:[#allocation5 + $0xa] sm:$0xff]  ;;  %3245 = vmatprep.mubr.f32.mxu1 %v8240_v42  ;;  %2588 = vst.msk [vmem:[#allocation5 + $0x3d] sm:$0xff] %vm2582_vm10, %v2544_v41  ;;  %2587 = vst.msk [vmem:[#allocation5 + $0x33] sm:$0xff] %vm2582_vm10, %v2542_v44  ;;  %v8257_v61 = vld [vmem:[#allocation5 + $0x1e] sm:$0xff] }
 0x387   :  { %3385 = vmatprep.mubr.f32.mxu0 %v2695_v40  ;;  %3246 = vmatmul.mubr.f32.gmra.mxu1 %v2695_v40  ;;  %v8261_v43 = vld [vmem:[#allocation5 + $0xc] sm:$0xff]  ;;  %v8297_v37 = vld [vmem:[#allocation5 + $0x20] sm:$0xff] }
 0x388   :  { %3386 = vmatmul.mubr.f32.vlgmr.msra.gmra.mxu0 %v2663_v32  ;;  %v3134_v40 = vld [vmem:[%s9024_s5 + $0x330] sm:$0xff]  ;;  %v3149_v41 = vld [vmem:[%s9024_s5 + $0x3a8] sm:$0xff] }
 0x389   :  { %5294 = vmatpush3.msra.mxu0 %v3143_v46  ;;  %v8253_v55 = vld [vmem:[#allocation5 + $0x15] sm:$0xff]  ;;  %v2550_v57 = vpop.permute.xlu1 %2549  ;;  %v2546_v4 = vpop.permute.xlu0 %2545  ;;  %v8275_v5 = vld [vmem:[#allocation5 + $0x29] sm:$0xff] }
 0x38a   :  { %v8255_v20 = vld [vmem:[#allocation5 + $0x14] sm:$0xff]  ;;  %5295 = vmatprep.subr.mxu0 %v3158_v48  ;;  %3250 = vmatprep.mubr.f32.mxu1 %v8253_v55  ;;  %2591 = vst.msk [vmem:[#allocation5 + $0x6f] sm:$0xff] %vm2582_vm10, %v2550_v57  ;;  %2589 = vst.msk [vmem:[#allocation5 + $0x47] sm:$0xff] %vm2582_vm10, %v2546_v4  ;;  %v8277_v6 = vld [vmem:[#allocation5 + $0x28] sm:$0xff] }
 0x38b   :  { %3390 = vmatprep.mubr.f32.mxu0 %v8255_v20  ;;  %3251 = vmatmul.mubr.f32.gmra.mxu1 %v8255_v20  ;;  %v8279_v49 = vld [vmem:[#allocation5 + $0x16] sm:$0xff]  ;;  %v8315_v47 = vld [vmem:[#allocation5 + $0x2a] sm:$0xff]  ;;  %v3133_v57 = vld [vmem:[%s9024_s5 + $0x328] sm:$0xff] }
 0x38c   :  { %3391 = vmatmul.mubr.f32.gmra.mxu0 %v8261_v43  ;;  %3255 = vmatprep.mubr.f32.mxu1 %v8251_v54  ;;  %v3148_v4 = vld [vmem:[%s9024_s5 + $0x3a0] sm:$0xff] }
 0x38d   :  { %3395 = vmatprep.mubr.f32.mxu0 %v8257_v61  ;;  %v2554_v30 = vpop.permute.xlu1 %2553  ;;  %v2552_v22 = vpop.permute.xlu0 %2551  ;;  %5296 = vmatpush3.msra.mxu0 %v3142_v28  ;;  %v8293_v58 = vld [vmem:[#allocation5 + $0x33] sm:$0xff]  ;;  %v8311_v25 = vld [vmem:[#allocation5 + $0x3d] sm:$0xff] }
 0x38e   :  { %2593 = vst.msk [vmem:[#allocation5 + $0x83] sm:$0xff] %vm2582_vm10, %v2554_v30  ;;  %2592 = vst.msk [vmem:[#allocation5 + $0x79] sm:$0xff] %vm2582_vm10, %v2552_v22  ;;  %5297 = vmatprep.subr.mxu0 %v3157_v8  ;;  %v8295_v62 = vld [vmem:[#allocation5 + $0x32] sm:$0xff]  ;;  %v8313_v13 = vld [vmem:[#allocation5 + $0x3c] sm:$0xff] }
 0x38f   :  { %3256 = vmatmul.mubr.f32.gmra.mxu1 %v8257_v61  ;;  %5298 = vmatpush3.msra.mxu0 %v3141_v16  ;;  %v8333_v56 = vld [vmem:[#allocation5 + $0x34] sm:$0xff]  ;;  %v8349_v7 = vld [vmem:[#allocation5 + $0x3e] sm:$0xff] }
 0x390   :  { %3396 = vmatmul.mubr.f32.gmra.mxu0 %v8279_v49  ;;  %3260 = vmatprep.mubr.f32.mxu1 %v8275_v5  ;;  %v3132_v22 = vld [vmem:[%s9024_s5 + $0x320] sm:$0xff]  ;;  %v3147_v16 = vld [vmem:[%s9024_s5 + $0x398] sm:$0xff] }
 0x391   :  { %3400 = vmatprep.mubr.f32.mxu0 %v8277_v6  ;;  %v2558_v9 = vpop.permute.xlu1 %2557  ;;  %v2556_v17 = vpop.permute.xlu0 %2555  ;;  %5299 = vmatprep.subr.mxu0 %v3156_v10  ;;  %v8329_v36 = vld [vmem:[#allocation5 + $0x47] sm:$0xff]  ;;  %v8360_v34 = vld [vmem:[#allocation5 + $0x6f] sm:$0xff] }
 0x392   :  { %2595 = vst.msk [vmem:[#allocation5 + $0x97] sm:$0xff] %vm2582_vm10, %v2558_v9  ;;  %2594 = vst.msk [vmem:[#allocation5 + $0x8d] sm:$0xff] %vm2582_vm10, %v2556_v17  ;;  %5300 = vmatpush3.msra.mxu0 %v3140_v50  ;;  %v8331_v19 = vld [vmem:[#allocation5 + $0x46] sm:$0xff]  ;;  %v2703_v23 = vld [vmem:[#allocation5 + $0x6e] sm:$0xff] }
 0x393   :  { %3261 = vmatmul.mubr.f32.gmra.mxu1 %v8277_v6  ;;  %5301 = vmatprep.subr.mxu0 %v3155_v39  ;;  %v8362_v26 = vld [vmem:[#allocation5 + $0x48] sm:$0xff]  ;;  %v8388_v32 = vld [vmem:[#allocation5 + $0x70] sm:$0xff] }
 0x394   :  { %3401 = vmatmul.mubr.f32.gmra.mxu0 %v8297_v37  ;;  %3265 = vmatprep.mubr.f32.mxu1 %v8293_v58  ;;  %v3131_v50 = vld [vmem:[%s9024_s5 + $0x318] sm:$0xff]  ;;  %v3146_v39 = vld [vmem:[%s9024_s5 + $0x390] sm:$0xff] }
 0x395   :  { %3405 = vmatprep.mubr.f32.mxu0 %v8295_v62  ;;  %v2548_v3 = vpop.permute.xlu1 %2547  ;;  %v2560_v59 = vpop.permute.xlu0 %2559  ;;  %5302 = vmatpush3.msra.mxu0 %v3139_v45  ;;  %v8372_v1 = vld [vmem:[#allocation5 + $0x79] sm:$0xff]  ;;  %v8384_v63 = vld [vmem:[#allocation5 + $0x83] sm:$0xff] }
 0x396   :  { %2590 = vst.msk [vmem:[#allocation5 + $0x51] sm:$0xff] %vm2582_vm10, %v2548_v3  ;;  %2596 = vst.msk [vmem:[#allocation5 + $0xa1] sm:$0xff] %vm2582_vm10, %v2560_v59  ;;  %5303 = vmatprep.subr.mxu0 %v3154_v60  ;;  %v8374_v53 = vld [vmem:[#allocation5 + $0x78] sm:$0xff]  ;;  %v8386_v31 = vld [vmem:[#allocation5 + $0x82] sm:$0xff] }
 0x397   :  { %3266 = vmatmul.mubr.f32.gmra.mxu1 %v8295_v62  ;;  %5304 = vmatpush3.msra.mxu0 %v3138_v24  ;;  %v8404_v48 = vld [vmem:[#allocation5 + $0x7a] sm:$0xff]  ;;  %v8420_v30 = vld [vmem:[#allocation5 + $0x84] sm:$0xff] }
 0x398   :  { %3406 = vmatmul.mubr.f32.gmra.mxu0 %v8315_v47  ;;  %3270 = vmatprep.mubr.f32.mxu1 %v8311_v25  ;;  %v3130_v60 = vld [vmem:[%s9024_s5 + $0x310] sm:$0xff] }
 0x399   :  { %3410 = vmatprep.mubr.f32.mxu0 %v8313_v13  ;;  %v2562_v33 = vpop.permute.xlu0 %2561  ;;  %v2564_v52 = vpop.permute.xlu1 %2563  ;;  %5305 = vmatprep.subr.mxu0 %v3153_v12  ;;  %v8400_v44 = vld [vmem:[#allocation5 + $0x8d] sm:$0xff]  ;;  %v8416_v28 = vld [vmem:[#allocation5 + $0x97] sm:$0xff]  ;;  %v3129_v12 = vld [vmem:[%s9024_s5 + $0x308] sm:$0xff] }
 0x39a   :  { %2597 = vst.msk [vmem:[#allocation5 + $0xab] sm:$0xff] %vm2582_vm10, %v2562_v33  ;;  %2598 = vst.msk [vmem:[#allocation5 + $0xb5] sm:$0xff] %vm2582_vm10, %v2564_v52  ;;  %5306 = vmatpush3.msra.mxu0 %v3137_v11  ;;  %v8402_v46 = vld [vmem:[#allocation5 + $0x8c] sm:$0xff]  ;;  %v8418_v8 = vld [vmem:[#allocation5 + $0x96] sm:$0xff] }
 0x39b   :  { %3271 = vmatmul.mubr.f32.gmra.mxu1 %v8313_v13  ;;  %5307 = vmatprep.subr.mxu0 %v3152_v14  ;;  %v8436_v17 = vld [vmem:[#allocation5 + $0x8e] sm:$0xff]  ;;  %v8452_v45 = vld [vmem:[#allocation5 + $0x98] sm:$0xff]  ;;  %v3145_v33 = vld [vmem:[%s9024_s5 + $0x388] sm:$0xff] }
 0x39c   :  { %3411 = vmatmul.mubr.f32.gmra.mxu0 %v8333_v56  ;;  %3275 = vmatprep.mubr.f32.mxu1 %v8329_v36  ;;  %v3128_v14 = vld [vmem:[%s9024_s5 + $0x300] sm:$0xff] }
 0x39d   :  { %3415 = vmatprep.mubr.f32.mxu0 %v8331_v19  ;;  %v8347_v2 = vld [vmem:[#allocation5 + $0x50] sm:$0xff]  ;;  %5308 = vmatpush3.msra.mxu0 %v3136_v0  ;;  %v8432_v10 = vld [vmem:[#allocation5 + $0xa1] sm:$0xff] }
 0x39e   :  { %5309 = vmatprep.subr.mxu0 %v3151_v38  ;;  %v8434_v9 = vld [vmem:[#allocation5 + $0xa0] sm:$0xff] }
 0x39f   :  { %3276 = vmatmul.mubr.f32.gmra.mxu1 %v8331_v19  ;;  %5310 = vmatpush3.msra.mxu0 %v3135_v29  ;;  %v8466_v24 = vld [vmem:[#allocation5 + $0xa2] sm:$0xff] }
 0x3a0   :  { %3416 = vmatmul.mubr.f32.gmra.mxu0 %v8349_v7  ;;  %3280 = vmatprep.mubr.f32.mxu1 %v2639_v51  ;;  %v3144_v51 = vld [vmem:[%s9024_s5 + $0x380] sm:$0xff]  ;;  %v3903_v29 = vld [vmem:[%s9027_s8 + $0x10] sm:$0xff] }
 0x3a1   :  { %3420 = vmatprep.mubr.f32.mxu0 %v8347_v2  ;;  %5311 = vmatprep.subr.mxu0 %v3150_v15  ;;  %v8448_v3 = vld [vmem:[#allocation5 + $0xab] sm:$0xff]  ;;  %v8464_v52 = vld [vmem:[#allocation5 + $0xb4] sm:$0xff]  ;;  %v3902_v15 = vld [vmem:[%s9027_s8 + $0x8] sm:$0xff] }
 0x3a2   :  { %5312 = vmatpush3.msra.mxu0 %v3134_v40  ;;  %v8450_v59 = vld [vmem:[#allocation5 + $0xaa] sm:$0xff]  ;;  %v2774_v0 = vld [vmem:[#allocation5 + $0xb6] sm:$0xff] }
 0x3a3   :  { %3281 = vmatmul.mubr.f32.gmra.mxu1 %v2607_v35  ;;  %5313 = vmatprep.subr.mxu0 %v3149_v41  ;;  %v8478_v11 = vld [vmem:[#allocation5 + $0xac] sm:$0xff]  ;;  %v2838_v38 = vld [vmem:[#allocation5 + $0xb5] sm:$0xff] }
 0x3a4   :  { %3421 = vmatmul.mubr.f32.gmra.mxu0 %v8362_v26  ;;  %3285 = vmatprep.mubr.f32.mxu1 %v8360_v34  ;;  %v3174_v35 = vld [vmem:[%s9024_s5 + $0x470] sm:$0xff] }
 0x3a5   :  { %3425 = vmatprep.mubr.f32.mxu0 %v2703_v23  ;;  %5314 = vmatpush3.msra.mxu0 %v3133_v57 }
 0x3a6   :  { %5315 = vmatprep.subr.mxu0 %v3148_v4 }
 0x3a7   :  { %3286 = vmatmul.mubr.f32.gmra.mxu1 %v2703_v23  ;;  %5316 = vmatpush3.msra.mxu0 %v3132_v22  ;;  %v3160_v23 = vld [vmem:[%s9024_s5 + $0x400] sm:$0xff] }
 0x3a8   :  { %3426 = vmatmul.mubr.f32.gmra.mxu0 %v2671_v27  ;;  %3290 = vmatprep.mubr.f32.mxu1 %v8372_v1  ;;  %v2839_v27 = vld [vmem:[#allocation5 + $0xbf] sm:$0xff] }
 0x3a9   :  { %3430 = vmatprep.mubr.f32.mxu0 %v8374_v53  ;;  %5317 = vmatprep.subr.mxu0 %v3147_v16 }
 0x3aa   :  { %5318 = vmatpush3.msra.mxu0 %v3131_v50 }
 0x3ab   :  { %3291 = vmatmul.mubr.f32.gmra.mxu1 %v8374_v53  ;;  %5319 = vmatprep.subr.mxu0 %v3146_v39 }
 0x3ac   :  { %3431 = vmatmul.mubr.f32.gmra.mxu0 %v8388_v32  ;;  %3295 = vmatprep.mubr.f32.mxu1 %v8384_v63 }
 0x3ad   :  { %3435 = vmatprep.mubr.f32.mxu0 %v8386_v31  ;;  %5320 = vmatpush3.msra.mxu0 %v3130_v60 }
 0x3ae   :  { %5321 = vmatprep.subr.mxu0 %v3145_v33 }
 0x3af   :  { %3296 = vmatmul.mubr.f32.gmra.mxu1 %v8386_v31  ;;  %5322 = vmatpush3.msra.mxu0 %v3129_v12 }
 0x3b0   :  { %3436 = vmatmul.mubr.f32.gmra.mxu0 %v8404_v48  ;;  %3300 = vmatprep.mubr.f32.mxu1 %v8400_v44 }
 0x3b1   :  { %3440 = vmatprep.mubr.f32.mxu0 %v8402_v46  ;;  %5323 = vmatprep.subr.mxu0 %v3144_v51 }
 0x3b2   :  { %5324 = vmatpush3.msra.mxu0 %v3128_v14 }
 0x3b3   :  { %3301 = vmatmul.mubr.f32.gmra.mxu1 %v8402_v46 }
 0x3b4   :  { %3441 = vmatmul.mubr.f32.gmra.mxu0 %v8420_v30  ;;  %3305 = vmatprep.mubr.f32.mxu1 %v8416_v28 }
 0x3b5   :  { %3445 = vmatprep.mubr.f32.mxu0 %v8418_v8 }
 0x3b7   :  { %3306 = vmatmul.mubr.f32.gmra.mxu1 %v8418_v8 }
 0x3b8   :  { %3446 = vmatmul.mubr.f32.gmra.mxu0 %v8436_v17  ;;  %3310 = vmatprep.mubr.f32.mxu1 %v8432_v10 }
 0x3b9   :  { %3450 = vmatprep.mubr.f32.mxu0 %v8434_v9 }
 0x3bb   :  { %3311 = vmatmul.mubr.f32.gmra.mxu1 %v8434_v9 }
 0x3bc   :  { %3451 = vmatmul.mubr.f32.gmra.mxu0 %v8452_v45  ;;  %3315 = vmatprep.mubr.f32.mxu1 %v8448_v3 }
 0x3bd   :  { %3455 = vmatprep.mubr.f32.mxu0 %v8450_v59 }
 0x3bf   :  { %3316 = vmatmul.mubr.f32.gmra.mxu1 %v8450_v59 }
 0x3c0   :  { %3456 = vmatmul.mubr.f32.gmra.mxu0 %v8466_v24  ;;  %3530 = vmatprep.mubr.f32.mxu1 %v8261_v43  ;;  %v3173_v43 = vld [vmem:[%s9024_s5 + $0x468] sm:$0xff] }
 0x3c1   :  { %3460 = vmatprep.mubr.f32.mxu0 %v8464_v52 }
 0x3c3   :  { %3531 = vmatmul.mubr.f32.vlgmr.msra.gmra.mxu1 %v8240_v42  ;;  %v3171_v42 = vld [vmem:[%s9024_s5 + $0x458] sm:$0xff] }
 0x3c4   :  { %3461 = vmatmul.mubr.f32.gmra.mxu0 %v8478_v11  ;;  %5590 = vmatpush3.msra.mxu1 %v8233_v18  ;;  %v3172_v18 = vld [vmem:[%s9024_s5 + $0x460] sm:$0xff] }
 0x3c5   :  { %3535 = vmatprep.mubr.f32.mxu1 %v8279_v49  ;;  %3675 = vmatprep.mubr.f32.mxu0 %v8253_v55 }
 0x3c6   :  { %5591 = vmatprep.subr.mxu1 %v3174_v35 }
 0x3c7   :  { %3536 = vmatmul.mubr.f32.gmra.mxu1 %v8253_v55  ;;  %v3169_v55 = vld [vmem:[%s9024_s5 + $0x448] sm:$0xff] }
 0x3c8   :  { %3676 = vmatmul.mubr.f32.vlgmr.msra.gmra.mxu0 %v8255_v20  ;;  %5592 = vmatpush3.msra.mxu1 %v3174_v35  ;;  %v3168_v20 = vld [vmem:[%s9024_s5 + $0x440] sm:$0xff] }
 0x3c9   :  { %3540 = vmatprep.mubr.f32.mxu1 %v8297_v37  ;;  %3680 = vmatprep.mubr.f32.mxu0 %v8251_v54 }
 0x3ca   :  { %5593 = vmatprep.subr.mxu1 %v3173_v43 }
 0x3cb   :  { %5594 = vmatpush3.msra.mxu1 %v3173_v43 }
 0x3cc   :  { %3541 = vmatmul.mubr.f32.gmra.mxu1 %v8251_v54  ;;  %3681 = vmatmul.mubr.f32.gmra.mxu0 %v8257_v61  ;;  %v3170_v54 = vld [vmem:[%s9024_s5 + $0x450] sm:$0xff]  ;;  %v8531_v61 = vld [vmem:[#allocation5 + $0x52] sm:$0xff] }
 0x3cd   :  { %3545 = vmatprep.mubr.f32.mxu1 %v8315_v47  ;;  %3685 = vmatprep.mubr.f32.mxu0 %v8275_v5 }
 0x3ce   :  { %5595 = vmatprep.subr.mxu1 %v3172_v18 }
 0x3cf   :  { %5596 = vmatpush3.msra.mxu1 %v3172_v18 }
 0x3d0   :  { %3546 = vmatmul.mubr.f32.gmra.mxu1 %v8275_v5  ;;  %3686 = vmatmul.mubr.f32.gmra.mxu0 %v8277_v6  ;;  %v2830_v5 = vld [vmem:[#allocation5 + $0x51] sm:$0xff]  ;;  %v2831_v6 = vld [vmem:[#allocation5 + $0x5b] sm:$0xff] }
 0x3d1   :  { %3550 = vmatprep.mubr.f32.mxu1 %v8333_v56  ;;  %3690 = vmatprep.mubr.f32.mxu0 %v8293_v58 }
 0x3d2   :  { %5597 = vmatprep.subr.mxu1 %v3171_v42 }
 0x3d3   :  { %5598 = vmatpush3.msra.mxu1 %v3171_v42 }
 0x3d4   :  { %3551 = vmatmul.mubr.f32.gmra.mxu1 %v8293_v58  ;;  %3691 = vmatmul.mubr.f32.gmra.mxu0 %v8295_v62  ;;  %v3167_v58 = vld [vmem:[%s9024_s5 + $0x438] sm:$0xff]  ;;  %v2799_v62 = vld [vmem:[#allocation5 + $0x5a] sm:$0xff] }
 0x3d5   :  { %3555 = vmatprep.mubr.f32.mxu1 %v8349_v7  ;;  %3695 = vmatprep.mubr.f32.mxu0 %v8311_v25 }
 0x3d6   :  { %5599 = vmatprep.subr.mxu1 %v3170_v54 }
 0x3d7   :  { %5600 = vmatpush3.msra.mxu1 %v3170_v54 }
 0x3d8   :  { %3556 = vmatmul.mubr.f32.gmra.mxu1 %v8311_v25  ;;  %3696 = vmatmul.mubr.f32.gmra.mxu0 %v8313_v13  ;;  %v3166_v25 = vld [vmem:[%s9024_s5 + $0x430] sm:$0xff]  ;;  %v3165_v13 = vld [vmem:[%s9024_s5 + $0x428] sm:$0xff] }
 0x3d9   :  { %3560 = vmatprep.mubr.f32.mxu1 %v8362_v26  ;;  %3700 = vmatprep.mubr.f32.mxu0 %v8329_v36 }
 0x3da   :  { %5601 = vmatprep.subr.mxu1 %v3169_v55 }
 0x3db   :  { %5602 = vmatpush3.msra.mxu1 %v3169_v55 }
 0x3dc   :  { %3561 = vmatmul.mubr.f32.gmra.mxu1 %v8329_v36  ;;  %3701 = vmatmul.mubr.f32.gmra.mxu0 %v8331_v19  ;;  %v3164_v36 = vld [vmem:[%s9024_s5 + $0x420] sm:$0xff]  ;;  %v3163_v19 = vld [vmem:[%s9024_s5 + $0x418] sm:$0xff] }
 0x3dd   :  { %3565 = vmatprep.mubr.f32.mxu1 %v8531_v61  ;;  %3705 = vmatprep.mubr.f32.mxu0 %v2830_v5 }
 0x3de   :  { %5603 = vmatprep.subr.mxu1 %v3168_v20 }
 0x3df   :  { %5604 = vmatpush3.msra.mxu1 %v3168_v20 }
 0x3e0   :  { %3566 = vmatmul.mubr.f32.gmra.mxu1 %v2830_v5  ;;  %3706 = vmatmul.mubr.f32.gmra.mxu0 %v8347_v2  ;;  %v3162_v2 = vld [vmem:[%s9024_s5 + $0x410] sm:$0xff] }
 0x3e1   :  { %3570 = vmatprep.mubr.f32.mxu1 %v8388_v32  ;;  %3710 = vmatprep.mubr.f32.mxu0 %v2831_v6 }
 0x3e2   :  { %5605 = vmatprep.subr.mxu1 %v3167_v58 }
 0x3e3   :  { %5606 = vmatpush3.msra.mxu1 %v3167_v58 }
 0x3e4   :  { %3571 = vmatmul.mubr.f32.gmra.mxu1 %v8360_v34  ;;  %3711 = vmatmul.mubr.f32.gmra.mxu0 %v2799_v62  ;;  %v3161_v34 = vld [vmem:[%s9024_s5 + $0x408] sm:$0xff] }
 0x3e5   :  { %3575 = vmatprep.mubr.f32.mxu1 %v8404_v48  ;;  %3715 = vmatprep.mubr.f32.mxu0 %v8372_v1 }
 0x3e6   :  { %5607 = vmatprep.subr.mxu1 %v3166_v25 }
 0x3e7   :  { %5608 = vmatpush3.msra.mxu1 %v3166_v25 }
 0x3e8   :  { %3576 = vmatmul.mubr.f32.gmra.mxu1 %v8372_v1  ;;  %3716 = vmatmul.mubr.f32.gmra.mxu0 %v8374_v53  ;;  %v2807_v1 = vld [vmem:[#allocation5 + $0xbe] sm:$0xff]  ;;  %v3908_v53 = vld [vmem:[%s9027_s8 + $0x38] sm:$0xff] }
 0x3e9   :  { %3580 = vmatprep.mubr.f32.mxu1 %v8420_v30  ;;  %3720 = vmatprep.mubr.f32.mxu0 %v8384_v63 }
 0x3ea   :  { %5609 = vmatprep.subr.mxu1 %v3165_v13  ;;  %5645 = vmatprep.subr.mxu0 %v3908_v53 }
 0x3eb   :  { %5610 = vmatpush3.msra.mxu1 %v3165_v13  ;;  %5646 = vmatpush3.msra.mxu0 %v3908_v53 }
 0x3ec   :  { %3581 = vmatmul.mubr.f32.gmra.mxu1 %v8384_v63  ;;  %3721 = vmatmul.mubr.f32.gmra.mxu0 %v8386_v31  ;;  %v3901_v63 = vld [vmem:[%s9027_s8] sm:$0xff] }
 0x3ed   :  { %3585 = vmatprep.mubr.f32.mxu1 %v8436_v17  ;;  %3725 = vmatprep.mubr.f32.mxu0 %v8400_v44 }
 0x3ee   :  { %5611 = vmatprep.subr.mxu1 %v3164_v36 }
 0x3ef   :  { %5612 = vmatpush3.msra.mxu1 %v3164_v36 }
 0x3f0   :  { %3586 = vmatmul.mubr.f32.gmra.mxu1 %v8400_v44  ;;  %3726 = vmatmul.mubr.f32.gmra.mxu0 %v8402_v46 }
 0x3f1   :  { %3590 = vmatprep.mubr.f32.mxu1 %v8452_v45  ;;  %3730 = vmatprep.mubr.f32.mxu0 %v8416_v28 }
 0x3f2   :  { %5613 = vmatprep.subr.mxu1 %v3163_v19 }
 0x3f3   :  { %5614 = vmatpush3.msra.mxu1 %v3163_v19 }
 0x3f4   :  { %3591 = vmatmul.mubr.f32.gmra.mxu1 %v8416_v28  ;;  %3731 = vmatmul.mubr.f32.gmra.mxu0 %v8418_v8 }
 0x3f5   :  { %3595 = vmatprep.mubr.f32.mxu1 %v8466_v24  ;;  %3735 = vmatprep.mubr.f32.mxu0 %v8432_v10 }
 0x3f6   :  { %5615 = vmatprep.subr.mxu1 %v3162_v2 }
 0x3f7   :  { %5616 = vmatpush3.msra.mxu1 %v3162_v2 }
 0x3f8   :  { %3596 = vmatmul.mubr.f32.gmra.mxu1 %v8432_v10  ;;  %3736 = vmatmul.mubr.f32.gmra.mxu0 %v8434_v9 }
 0x3f9   :  { %3600 = vmatprep.mubr.f32.mxu1 %v8478_v11  ;;  %3740 = vmatprep.mubr.f32.mxu0 %v8448_v3 }
 0x3fa   :  { %5617 = vmatprep.subr.mxu1 %v3161_v34 }
 0x3fb   :  { %5618 = vmatpush3.msra.mxu1 %v3161_v34 }
 0x3fc   :  { %3601 = vmatmul.mubr.f32.gmra.mxu1 %v8448_v3  ;;  %3741 = vmatmul.mubr.f32.gmra.mxu0 %v8450_v59 }
 0x3fd   :  { %3605 = vmatprep.mubr.f32.mxu1 %v2774_v0  ;;  %3745 = vmatprep.mubr.f32.mxu0 %v2838_v38 }
 0x3fe   :  { %5619 = vmatprep.subr.mxu1 %v3160_v23 }
 0x3ff   :  { %5620 = vmatpush3.msra.mxu1 %v3160_v23 }
 0x400   :  { %3606 = vmatmul.mubr.f32.gmra.mxu1 %v2838_v38  ;;  %3746 = vmatmul.mubr.f32.gmra.mxu0 %v8464_v52 }
 0x401   :  { %5621 = vmatprep.mubr.f32.mxu1 %v8279_v49  ;;  %3750 = vmatprep.mubr.f32.mxu0 %v2839_v27  ;;  %v2863_v49 = vld [vmem:[#allocation5 + $0x5c] sm:$0xff] }
 0x402   :  { %5685 = vmatprep.subr.mxu1 %v3908_v53 }
 0x404   :  { %3751 = vmatmul.mubr.f32.gmra.mxu0 %v2807_v1  ;;  %5622 = vmatmul.mubr.f32.vlgmr.msra.gmra.mxu1 %v8297_v37  ;;  %v3907_v37 = vld [vmem:[%s9027_s8 + $0x30] sm:$0xff] }
 0x405   :  { %5624 = vmatprep.mubr.f32.mxu1 %v8315_v47  ;;  %5686 = vmatpush3.msra.mxu1 %v3908_v53  ;;  %v3906_v47 = vld [vmem:[%s9027_s8 + $0x28] sm:$0xff] }
 0x406   :  { %5647 = vmatprep.subr.mxu0 %v3907_v37  ;;  %5687 = vmatprep.subr.mxu1 %v3907_v37 }
 0x407   :  { %5648 = vmatpush3.msra.mxu0 %v3907_v37  ;;  %5688 = vmatpush3.msra.mxu1 %v3907_v37 }
 0x408   :  { %5625 = vmatmul.mubr.f32.gmra.mxu1 %v8333_v56  ;;  %5649 = vmatprep.subr.mxu0 %v3906_v47  ;;  %v2871_v56 = vld [vmem:[#allocation5 + $0xc0] sm:$0xff] }
 0x409   :  { %5627 = vmatprep.mubr.f32.mxu1 %v8349_v7  ;;  %5689 = vmatprep.subr.mxu1 %v3906_v47  ;;  %v3905_v7 = vld [vmem:[%s9027_s8 + $0x20] sm:$0xff] }
 0x40a   :  { %5650 = vmatpush3.msra.mxu0 %v3906_v47  ;;  %5690 = vmatpush3.msra.mxu1 %v3906_v47 }
 0x40b   :  { %5651 = vmatprep.subr.mxu0 %v3905_v7  ;;  %5691 = vmatprep.subr.mxu1 %v3905_v7 }
 0x40c   :  { %5628 = vmatmul.mubr.f32.gmra.mxu1 %v8362_v26  ;;  %5652 = vmatpush3.msra.mxu0 %v3905_v7  ;;  %v3904_v26 = vld [vmem:[%s9027_s8 + $0x18] sm:$0xff] }
 0x40d   :  { %5630 = vmatprep.mubr.f32.mxu1 %v8531_v61  ;;  %5692 = vmatpush3.msra.mxu1 %v3905_v7 }
 0x40e   :  { %5653 = vmatprep.subr.mxu0 %v3904_v26  ;;  %5693 = vmatprep.subr.mxu1 %v3904_v26 }
 0x40f   :  { %5654 = vmatpush3.msra.mxu0 %v3904_v26  ;;  %5694 = vmatpush3.msra.mxu1 %v3904_v26 }
 0x410   :  { %5631 = vmatmul.mubr.f32.gmra.mxu1 %v2863_v49  ;;  %5655 = vmatprep.subr.mxu0 %v3903_v29 }
 0x411   :  { %5633 = vmatprep.mubr.f32.mxu1 %v8404_v48  ;;  %5695 = vmatprep.subr.mxu1 %v3903_v29 }
 0x412   :  { %5656 = vmatpush3.msra.mxu0 %v3903_v29  ;;  %5696 = vmatpush3.msra.mxu1 %v3903_v29 }
 0x413   :  { %5657 = vmatprep.subr.mxu0 %v3902_v15  ;;  %5697 = vmatprep.subr.mxu1 %v3902_v15  ;;  %v5085_v31 = vpop.f32.mrf.mxu1 }
 0x414   :  { %5634 = vmatmul.mubr.f32.gmra.mxu1 %v8420_v30  ;;  %5658 = vmatpush3.msra.mxu0 %v3902_v15 }
 0x415   :  { %5636 = vmatprep.mubr.f32.mxu1 %v8436_v17  ;;  %5698 = vmatpush3.msra.mxu1 %v3902_v15  ;;  %v5086_v32 = vpop.f32.mrf.mxu1 }
 0x416   :  { %5659 = vmatprep.subr.mxu0 %v3901_v63  ;;  %5699 = vmatprep.subr.mxu1 %v3901_v63  ;;  %v5087_v48 = vadd.f32 %v5086_v32, %v5085_v31 }
 0x417   :  { %5660 = vmatpush3.msra.mxu0 %v3901_v63  ;;  %5700 = vmatpush3.msra.mxu1 %v3901_v63 }
 0x418   :  { %5637 = vmatmul.mubr.f32.gmra.mxu1 %v8452_v45 }
 0x419   :  { %5639 = vmatprep.mubr.f32.mxu1 %v8466_v24 }
 0x41c   :  { %5640 = vmatmul.mubr.f32.gmra.mxu1 %v8478_v11 }
 0x41d   :  { %5642 = vmatprep.mubr.f32.mxu1 %v2774_v0 }
 0x420   :  { %5643 = vmatmul.mubr.f32.gmra.mxu1 %v2871_v56 }
 0x447   :  { %v5088_v40 = vpop.f32.mrf.mxu1 }
 0x448   :  { %v5165_v41 = vpop.f32.mrf.mxu0 }
 0x449   :  { %v5089_v44 = vpop.f32.mrf.mxu1 }
 0x44a   :  { %v5166_v46 = vpop.f32.mrf.mxu0  ;;  %v5090_v57 = vadd.f32 %v5089_v44, %v5088_v40 }
 0x44b   :  { %v5167_v4 = vadd.f32 %v5166_v46, %v5165_v41  ;;  %v5091_v28 = vpop.f32.mrf.mxu1 }
 0x44c   :  { %v5168_v8 = vpop.f32.mrf.mxu0 }
 0x44d   :  { %v8623_v30 = vadd.f32 %v5167_v4, %v5087_v48  ;;  %v5092_v22 = vpop.f32.mrf.mxu1 }
 0x44e   :  { %v5169_v16 = vpop.f32.mrf.mxu0  ;;  %v5093_v10 = vadd.f32 %v5092_v22, %v5091_v28 }
 0x44f   :  { %v5170_v9 = vadd.f32 %v5169_v16, %v5168_v8  ;;  %v5094_v17 = vpop.f32.mrf.mxu1 }
 0x450   :  { %v5171_v50 = vpop.f32.mrf.mxu0 }
 0x451   :  { %v8625_v39 = vadd.f32 %v5170_v9, %v5090_v57  ;;  %v5095_v3 = vpop.f32.mrf.mxu1 }
 0x452   :  { %v5172_v59 = vpop.f32.mrf.mxu0  ;;  %v5096_v45 = vadd.f32 %v5095_v3, %v5094_v17 }
 0x453   :  { %v5173_v60 = vadd.f32 %v5172_v59, %v5171_v50  ;;  %v5097_v33 = vpop.f32.mrf.mxu1 }
 0x454   :  { %v5174_v52 = vpop.f32.mrf.mxu0 }
 0x455   :  { %v8627_v24 = vadd.f32 %v5173_v60, %v5093_v10  ;;  %v5098_v12 = vpop.f32.mrf.mxu1 }
 0x456   :  { %v5175_v51 = vpop.f32.mrf.mxu0  ;;  %v5099_v11 = vadd.f32 %v5098_v12, %v5097_v33 }
 0x457   :  { %v5176_v14 = vadd.f32 %v5175_v51, %v5174_v52  ;;  %v5100_v35 = vpop.f32.mrf.mxu1 }
 0x458   :  { %v5177_v43 = vpop.f32.mrf.mxu0 }
 0x459   :  { %v8629_v18 = vadd.f32 %v5176_v14, %v5096_v45  ;;  %v5101_v42 = vpop.f32.mrf.mxu1 }
 0x45a   :  { %v5178_v54 = vpop.f32.mrf.mxu0  ;;  %v5102_v55 = vadd.f32 %v5101_v42, %v5100_v35 }
 0x45b   :  { %v5179_v20 = vadd.f32 %v5178_v54, %v5177_v43  ;;  %v5103_v61 = vpop.f32.mrf.mxu1 }
 0x45c   :  { %v5180_v5 = vpop.f32.mrf.mxu0 }
 0x45d   :  { %v8631_v6 = vadd.f32 %v5179_v20, %v5099_v11  ;;  %v5104_v58 = vpop.f32.mrf.mxu1 }
 0x45e   :  { %v5181_v62 = vpop.f32.mrf.mxu0  ;;  %v5105_v25 = vadd.f32 %v5104_v58, %v5103_v61 }
 0x45f   :  { %v5182_v13 = vadd.f32 %v5181_v62, %v5180_v5  ;;  %v5106_v36 = vpop.f32.mrf.mxu1 }
 0x460   :  { %v5183_v19 = vpop.f32.mrf.mxu0 }
 0x461   :  { %v8633_v2 = vadd.f32 %v5182_v13, %v5102_v55  ;;  %v5107_v34 = vpop.f32.mrf.mxu1 }
 0x462   :  { %v5184_v23 = vpop.f32.mrf.mxu0  ;;  %v5108_v0 = vadd.f32 %v5107_v34, %v5106_v36 }
 0x463   :  { %v5185_v38 = vadd.f32 %v5184_v23, %v5183_v19  ;;  %v5109_v27 = vpop.f32.mrf.mxu1 }
 0x464   :  { %v5186_v1 = vpop.f32.mrf.mxu0 }
 0x465   :  { %v8635_v53 = vadd.f32 %v5185_v38, %v5105_v25  ;;  %v5110_v49 = vpop.f32.mrf.mxu1 }
 0x466   :  { %v5187_v37 = vpop.f32.mrf.mxu0  ;;  %v5111_v47 = vadd.f32 %v5110_v49, %v5109_v27 }
 0x467   :  { %v5188_v56 = vadd.f32 %v5187_v37, %v5186_v1  ;;  %v5112_v7 = vpop.f32.mrf.mxu1 }
 0x468   :  { %v5189_v26 = vpop.f32.mrf.mxu0 }
 0x469   :  { %v8637_v29 = vadd.f32 %v5188_v56, %v5108_v0  ;;  %v5113_v15 = vpop.f32.mrf.mxu1 }
 0x46a   :  { %v5190_v63 = vpop.f32.mrf.mxu0  ;;  %v5114_v31 = vadd.f32 %v5113_v15, %v5112_v7 }
 0x46b   :  { %v5191_v32 = vadd.f32 %v5190_v63, %v5189_v26  ;;  %v5115_v40 = vpop.f32.mrf.mxu1 }
 0x46c   :  { %v5192_v41 = vpop.f32.mrf.mxu0 }
 0x46d   :  { %v8639_v44 = vadd.f32 %v5191_v32, %v5111_v47  ;;  %v5116_v46 = vpop.f32.mrf.mxu1 }
 0x46e   :  { %v5193_v48 = vpop.f32.mrf.mxu0  ;;  %v5117_v57 = vadd.f32 %v5116_v46, %v5115_v40 }
 0x46f   :  { %9079 = vst [vmem:[#allocation31_spill] sm:$0xff] %v8639_v44  ;;  %v5194_v4 = vadd.f32 %v5193_v48, %v5192_v41  ;;  %v5118_v28 = vpop.f32.mrf.mxu1 }
 0x470   :  { %v5195_v8 = vpop.f32.mrf.mxu0 }
 0x471   :  { %v8641_v22 = vadd.f32 %v5194_v4, %v5114_v31  ;;  %v5119_v16 = vpop.f32.mrf.mxu1 }
 0x472   :  { %v5196_v10 = vpop.f32.mrf.mxu0  ;;  %v5120_v9 = vadd.f32 %v5119_v16, %v5118_v28 }
 0x473   :  { %v5197_v17 = vadd.f32 %v5196_v10, %v5195_v8  ;;  %v5121_v50 = vpop.f32.mrf.mxu1 }
 0x474   :  { %v5198_v3 = vpop.f32.mrf.mxu0 }
 0x475   :  { %v8643_v59 = vadd.f32 %v5197_v17, %v5117_v57  ;;  %v5122_v45 = vpop.f32.mrf.mxu1 }
 0x476   :  { %v5199_v60 = vpop.f32.mrf.mxu0  ;;  %v5123_v33 = vadd.f32 %v5122_v45, %v5121_v50 }
 0x477   :  { %9080 = vst [vmem:[#allocation32_spill] sm:$0xff] %v8643_v59  ;;  %v5200_v52 = vadd.f32 %v5199_v60, %v5198_v3  ;;  %v5124_v12 = vpop.f32.mrf.mxu1 }
 0x478   :  { %v5201_v51 = vpop.f32.mrf.mxu0 }
 0x479   :  { %v8645_v11 = vadd.f32 %v5200_v52, %v5120_v9  ;;  %v5125_v14 = vpop.f32.mrf.mxu1 }
 0x47a   :  { %v5202_v35 = vpop.f32.mrf.mxu0  ;;  %v5126_v43 = vadd.f32 %v5125_v14, %v5124_v12 }
 0x47b   :  { %9081 = vst [vmem:[#allocation33_spill] sm:$0xff] %v8645_v11  ;;  %v5203_v42 = vadd.f32 %v5202_v35, %v5201_v51  ;;  %v5127_v54 = vpop.f32.mrf.mxu1 }
 0x47c   :  { %v5204_v55 = vpop.f32.mrf.mxu0 }
 0x47d   :  { %v8647_v20 = vadd.f32 %v5203_v42, %v5123_v33  ;;  %v5128_v61 = vpop.f32.mrf.mxu1 }
 0x47e   :  { %v5205_v5 = vpop.f32.mrf.mxu0  ;;  %v5129_v58 = vadd.f32 %v5128_v61, %v5127_v54 }
 0x47f   :  { %9082 = vst [vmem:[#allocation34_spill] sm:$0xff] %v8647_v20  ;;  %v5206_v62 = vadd.f32 %v5205_v5, %v5204_v55  ;;  %v5130_v25 = vpop.f32.mrf.mxu1 }
 0x480   :  { %v5207_v13 = vpop.f32.mrf.mxu0 }
 0x481   :  { %v8649_v36 = vadd.f32 %v5206_v62, %v5126_v43  ;;  %v5131_v19 = vpop.f32.mrf.mxu1 }
 0x482   :  { %v5208_v34 = vpop.f32.mrf.mxu0  ;;  %v8651_v23 = vadd.f32 %v5131_v19, %v5130_v25 }
 0x483   :  { %9083 = vst [vmem:[#allocation35_spill] sm:$0xff] %v8649_v36  ;;  %v5209_v0 = vadd.f32 %v5208_v34, %v5207_v13  ;;  %v5245_v27 = vpop.f32.mrf.mxu1 }
 0x484   :  { %9084 = vst [vmem:[#allocation36_spill] sm:$0xff] %v8651_v23  ;;  %v8653_v38 = vpop.f32.mrf.mxu0 }
 0x485   :  { %9085 = vst [vmem:[#allocation37_spill] sm:$0xff] %v8653_v38  ;;  %v8655_v1 = vadd.f32 %v5209_v0, %v5129_v58  ;;  %v5246_v37 = vpop.f32.mrf.mxu1 }
 0x486   :  { %v8657_v49 = vpop.f32.mrf.mxu0 }
 0x487   :  { %9086 = vst [vmem:[#allocation38_spill] sm:$0xff] %v8655_v1  ;;  %9087 = vst [vmem:[#allocation39_spill] sm:$0xff] %v8657_v49  ;;  %v5248_v47 = vpop.f32.mrf.mxu1 }
 0x488   :  { %v5325_v56 = vpop.f32.mrf.mxu0 }
 0x489   :  { %v5249_v7 = vpop.f32.mrf.mxu1 }
 0x48a   :  { %v5326_v26 = vpop.f32.mrf.mxu0 }
 0x48c   :  { %v5251_v15 = vpop.f32.mrf.mxu1  ;;  %v5328_v63 = vpop.f32.mrf.mxu0 }
 0x48e   :  { %v5252_v31 = vpop.f32.mrf.mxu1  ;;  %v5329_v32 = vpop.f32.mrf.mxu0 }
 0x490   :  { %v5254_v40 = vpop.f32.mrf.mxu1  ;;  %v5331_v41 = vpop.f32.mrf.mxu0 }
 0x492   :  { %v5255_v46 = vpop.f32.mrf.mxu1  ;;  %v5332_v48 = vpop.f32.mrf.mxu0 }
 0x494   :  { %v8659_v57 = vpop.f32.mrf.mxu1  ;;  %v5334_v4 = vpop.f32.mrf.mxu0 }
 0x496   :  { %v5258_v28 = vpop.f32.mrf.mxu1  ;;  %v5335_v8 = vpop.f32.mrf.mxu0 }
 0x498   :  { %v5260_v16 = vpop.f32.mrf.mxu1  ;;  %v8661_v10 = vpop.f32.mrf.mxu0 }
 0x49a   :  { %v5261_v9 = vpop.f32.mrf.mxu1  ;;  %v5338_v17 = vpop.f32.mrf.mxu0 }
 0x49c   :  { %v8663_v50 = vpop.f32.mrf.mxu1  ;;  %v5340_v3 = vpop.f32.mrf.mxu0 }
 0x49e   :  { %v8665_v45 = vpop.f32.mrf.mxu1  ;;  %v5341_v60 = vpop.f32.mrf.mxu0 }
 0x4a0   :  { %v5266_v33 = vpop.f32.mrf.mxu1  ;;  %v8667_v52 = vpop.f32.mrf.mxu0 }
 0x4a2   :  { %v5267_v12 = vpop.f32.mrf.mxu1  ;;  %v8669_v51 = vpop.f32.mrf.mxu0 }
 0x4a4   :  { %v8671_v14 = vpop.f32.mrf.mxu1  ;;  %v8673_v35 = vpop.f32.mrf.mxu0 }
 0x4a6   :  { %v8675_v43 = vpop.f32.mrf.mxu1  ;;  %v8677_v42 = vpop.f32.mrf.mxu0 }
 0x4a8   :  { %v8679_v54 = vpop.f32.mrf.mxu1  ;;  %v8681_v55 = vpop.f32.mrf.mxu0 }
 0x4aa   :  { %v8683_v61 = vpop.f32.mrf.mxu1  ;;  %v8685_v5 = vpop.f32.mrf.mxu0 }
 0x4ac   :  { %v8687_v58 = vpop.f32.mrf.mxu1  ;;  %v8689_v62 = vpop.f32.mrf.mxu0 }
 0x4ad   :  { %9088 = vst [vmem:[#allocation40_spill] sm:$0xff] %v8687_v58  ;;  %v5330_v58 = vadd.f32 %v5329_v32, %v5328_v63  ;;  %v5259_v32 = vadd.f32 %v5258_v28, %v8659_v57  ;;  %v5345_v28 = vadd.f32 %v8669_v51, %v8667_v52  ;;  %v5351_v51 = vadd.f32 %v8685_v5, %v8681_v55  ;;  %v9103_v5 = vld [vmem:[#allocation31_spill] sm:$0xff] }
 0x4ae   :  { %v8691_v25 = vpop.f32.mrf.mxu1  ;;  %v8693_v13 = vpop.f32.mrf.mxu0 }
 0x4af   :  { %9089 = vst [vmem:[#allocation41_spill] sm:$0xff] %v8691_v25 }
 0x4b0   :  { %v8695_v19 = vpop.f32.mrf.mxu1  ;;  %v8697_v34 = vpop.f32.mrf.mxu0 }
 0x4b1   :  { %9090 = vst [vmem:[#allocation42_spill] sm:$0xff] %v8697_v34  ;;  %v5250_v34 = vadd.f32 %v5249_v7, %v5248_v47  ;;  %v5333_v7 = vadd.f32 %v5332_v48, %v5331_v41  ;;  %v3553_v41 = vadd.f32 %v5259_v32, %v8631_v6 }
 0x4b2   :  { %v8699_v0 = vpop.f32.mrf.mxu1  ;;  %v8701_v21 = vpop.f32.mrf.mxu0 }
 0x4b3   :  { %9091 = vst [vmem:[#allocation43_spill] sm:$0xff] %v8699_v0  ;;  %9092 = vst [vmem:[#allocation44_spill] sm:$0xff] %v8701_v21  ;;  %v5247_v21 = vadd.f32 %v5246_v37, %v5245_v27  ;;  %v5336_v0 = vadd.f32 %v5335_v8, %v5334_v4 }
 0x4b4   :  { %v8703_v1 = vpop.f32.mrf.mxu1  ;;  %v8705_v23 = vpop.f32.mrf.mxu0 }
 0x4b5   :  { %9093 = vst [vmem:[#allocation45_spill] sm:$0xff] %v8703_v1  ;;  %9094 = vst [vmem:[#allocation46_spill] sm:$0xff] %v8705_v23  ;;  %v5327_v23 = vadd.f32 %v5326_v26, %v5325_v56  ;;  %v5262_v56 = vadd.f32 %v5261_v9, %v5260_v16  ;;  %v5274_v9 = vadd.f32 %v8683_v61, %v8679_v54 }
 0x4b6   :  { %v8707_v20 = vpop.f32.mrf.mxu1  ;;  %v8711_v49 = vpop.f32.mrf.mxu0 }
 0x4b7   :  { %9095 = vst [vmem:[#allocation47_spill] sm:$0xff] %v8707_v20  ;;  %9097 = vst [vmem:[#allocation49_spill] sm:$0xff] %v8711_v49  ;;  %v3538_v20 = vadd.f32 %v5250_v34, %v8625_v39  ;;  %v9105_v34 = vld [vmem:[#allocation41_spill] sm:$0xff] }
 0x4b8   :  { %v8709_v36 = vpop.f32.mrf.mxu1  ;;  %v8717_v11 = vpop.f32.mrf.mxu0 }
 0x4b9   :  { %9096 = vst [vmem:[#allocation48_spill] sm:$0xff] %v8709_v36  ;;  %9100 = vst [vmem:[#allocation52_spill] sm:$0xff] %v8717_v11  ;;  %v5256_v36 = vadd.f32 %v5255_v46, %v5254_v40  ;;  %v3683_v11 = vadd.f32 %v5330_v58, %v3538_v20  ;;  %v5265_v46 = vadd.f32 %v8665_v45, %v8663_v50 }
 0x4ba   :  { %v8713_v38 = vpop.f32.mrf.mxu1  ;;  %v8723_v44 = vpop.f32.mrf.mxu0 }
 0x4bb   :  { %9098 = vst [vmem:[#allocation50_spill] sm:$0xff] %v8713_v38  ;;  %v3533_v38 = vadd.f32 %v5247_v21, %v8623_v30  ;;  %v3548_v37 = vadd.f32 %v5256_v36, %v8629_v18  ;;  %v5342_v21 = vadd.f32 %v5341_v60, %v5340_v3  ;;  %v3563_v45 = vadd.f32 %v5265_v46, %v8635_v53 }
 0x4bc   :  { %v8715_v59 = vpop.f32.mrf.mxu1  ;;  %v5271_v60 = vadd.f32 %v8675_v43, %v8671_v14  ;;  %v3578_v43 = vadd.f32 %v5274_v9, %v8641_v22  ;;  %v9106_v22 = vld [vmem:[#allocation46_spill] sm:$0xff] }
 0x4bd   :  { %9099 = vst [vmem:[#allocation51_spill] sm:$0xff] %v8715_v59  ;;  %v5253_v59 = vadd.f32 %v5252_v31, %v5251_v15  ;;  %v3678_v27 = vadd.f32 %v5327_v23, %v3533_v38  ;;  %v3693_v30 = vadd.f32 %v5336_v0, %v3548_v37  ;;  %v5339_v15 = vadd.f32 %v5338_v17, %v8661_v10 }
 0x4be   :  { %v8719_v25 = vpop.f32.mrf.mxu1  ;;  %v3708_v53 = vadd.f32 %v5345_v28, %v3563_v45 }
 0x4bf   :  { %9101 = vst [vmem:[#allocation53_spill] sm:$0xff] %v8719_v25  ;;  %v8729_v25 = vpop.f32.mrf.mxu0  ;;  %v3543_v39 = vadd.f32 %v5253_v59, %v8627_v24  ;;  %v3558_v24 = vadd.f32 %v5262_v56, %v8633_v2  ;;  %v5268_v59 = vadd.f32 %v5267_v12, %v5266_v33  ;;  %v5348_v2 = vadd.f32 %v8677_v42, %v8673_v35  ;;  %v9102_v42 = vld [vmem:[#allocation43_spill] sm:$0xff]  ;;  %v9108_v56 = vld [vmem:[#allocation42_spill] sm:$0xff] }
 0x4c0   :  { %v8721_v1 = vpop.f32.mrf.mxu1  ;;  %v3698_v6 = vadd.f32 %v5339_v15, %v3553_v41  ;;  %v5280_v54 = vadd.f32 %v9102_v42, %v8695_v19  ;;  %v9107_v19 = vld [vmem:[#allocation49_spill] sm:$0xff]  ;;  %v9113_v41 = vld [vmem:[#allocation32_spill] sm:$0xff] }
 0x4c1   :  { %v8739_v31 = vpop.f32.mrf.mxu0  ;;  %v3688_v18 = vadd.f32 %v5333_v7, %v3543_v39  ;;  %v3703_v57 = vadd.f32 %v5342_v21, %v3558_v24  ;;  %v3568_v10 = vadd.f32 %v5268_v59, %v8637_v29  ;;  %v5354_v29 = vadd.f32 %v8693_v13, %v8689_v62  ;;  %v9104_v13 = vld [vmem:[#allocation40_spill] sm:$0xff] }
 0x4c2   :  { %v8726_v49 = vpop.f32.mrf.mxu1  ;;  %v3573_v62 = vadd.f32 %v5271_v60, %v9103_v5  ;;  %v5277_v0 = vadd.f32 %v9105_v34, %v9104_v13  ;;  %v5360_v7 = vadd.f32 %v9107_v19, %v9106_v22  ;;  %v5366_v9 = vadd.f32 %v8739_v31, %v8729_v25  ;;  %v9118_v45 = vld [vmem:[#allocation52_spill] sm:$0xff] }
 0x4c3   :  { %v8763_v8 = vpop.f32.mrf.mxu0  ;;  %v3713_v52 = vadd.f32 %v5348_v2, %v3568_v10  ;;  %v9114_v2 = vld [vmem:[#allocation45_spill] sm:$0xff]  ;;  %v5363_v60 = vadd.f32 %v8723_v44, %v9118_v45  ;;  %v5292_v25 = vadd.f32 %v8726_v49, %v8721_v1 }
 0x4c4   :  { %v5623_v47 = vpop.f32.mrf.mxu1  ;;  %v3718_v21 = vadd.f32 %v5351_v51, %v3573_v62  ;;  %v3583_v46 = vadd.f32 %v5277_v0, %v9113_v41  ;;  %v9119_v51 = vld [vmem:[#allocation35_spill] sm:$0xff]  ;;  %v9123_v62 = vld [vmem:[#allocation36_spill] sm:$0xff] }
 0x4c5   :  { %v8732_v26 = vadd.f32 %v5623_v47, %v3683_v11  ;;  %v5368_v35 = vpop.f32.mrf.mxu0 }
 0x4c6   :  { %v3822_v63 = vpop.f32.mrf.mxu1  ;;  %v5369_v0 = vadd.f32 %v5368_v35, %v8763_v8 }
 0x4c7   :  { %v8736_v40 = vadd.f32 %v3822_v63, %v3678_v27  ;;  %v4142_v36 = vmul.f32 %v8732_v26, %v8732_v26  ;;  %v3723_v27 = vadd.f32 %v5354_v29, %v3578_v43  ;;  %v9109_v63 = vld [vmem:[#allocation44_spill] sm:$0xff]  ;;  %v5370_v32 = vpop.f32.mrf.mxu0  ;;  %v9120_v43 = vld [vmem:[#allocation34_spill] sm:$0xff] }
 0x4c8   :  { %v5626_v20 = vpop.f32.mrf.mxu1  ;;  %v5357_v39 = vadd.f32 %v9109_v63, %v9108_v56  ;;  %v9124_v63 = vld [vmem:[#allocation38_spill] sm:$0xff] }
 0x4c9   :  { %5661 = vmatprep.mubr.msk.f32.mxu0 %vm1804_vm5, %v8736_v40  ;;  %v4141_v11 = vmul.f32 %v8736_v40, %v8736_v40  ;;  %v8748_v23 = vadd.f32 %v5626_v20, %v3693_v30  ;;  %v9110_v20 = vld [vmem:[#allocation33_spill] sm:$0xff]  ;;  %v5371_v29 = vpop.f32.mrf.mxu0 }
 0x4ca   :  { %v3832_v38 = vpop.f32.mrf.mxu1  ;;  %5662 = vmatmul.mubr.msk.f32.vlgmr.msra.gmra.mxu0 %vm1804_vm5, %v8732_v26  ;;  %v3588_v15 = vadd.f32 %v5280_v54, %v9110_v20  ;;  %v9121_v54 = vld [vmem:[#allocation51_spill] sm:$0xff]  ;;  %v5372_v49 = vadd.f32 %v5371_v29, %v5370_v32 }
 0x4cb   :  { %v8755_v48 = vadd.f32 %v3832_v38, %v3688_v18  ;;  %5701 = vmatprep.mubr.msk.f32.mxu1 %vm1804_vm5, %v4141_v11  ;;  %v4144_v3 = vmul.f32 %v8748_v23, %v8748_v23  ;;  %v9111_v18 = vld [vmem:[#allocation48_spill] sm:$0xff]  ;;  %v9112_v11 = vld [vmem:[#allocation50_spill] sm:$0xff] }
 0x4cc   :  { %v5629_v4 = vpop.f32.mrf.mxu1  ;;  %5702 = vmatmul.mubr.msk.f32.vlgmr.msra.gmra.mxu1 %vm1804_vm5, %v4142_v36  ;;  %v5286_v24 = vadd.f32 %v9112_v11, %v9111_v18 }
 0x4cd   :  { %5664 = vmatprep.mubr.msk.f32.mxu0 %vm1804_vm5, %v8755_v48  ;;  %v4143_v16 = vmul.f32 %v8755_v48, %v8755_v48  ;;  %v8772_v17 = vadd.f32 %v5629_v4, %v3703_v57  ;;  %v9115_v57 = vld [vmem:[#allocation47_spill] sm:$0xff] }
 0x4ce   :  { %v3842_v50 = vpop.f32.mrf.mxu1  ;;  %5665 = vmatmul.mubr.msk.f32.gmra.mxu0 %vm1804_vm5, %v8748_v23  ;;  %v5283_v4 = vadd.f32 %v9115_v57, %v9114_v2 }
 0x4cf   :  { %v8781_v33 = vadd.f32 %v3842_v50, %v3698_v6  ;;  %5704 = vmatprep.mubr.msk.f32.mxu1 %vm1804_vm5, %v4143_v16  ;;  %v4146_v55 = vmul.f32 %v8772_v17, %v8772_v17  ;;  %v9116_v6 = vld [vmem:[#allocation37_spill] sm:$0xff]  ;;  %v9117_v16 = vld [vmem:[#allocation39_spill] sm:$0xff]  ;;  %v3733_v50 = vadd.f32 %v5360_v7, %v3588_v15 }
 0x4d0   :  { %v5632_v12 = vpop.f32.mrf.mxu1  ;;  %5705 = vmatmul.mubr.msk.f32.gmra.mxu1 %vm1804_vm5, %v4144_v3  ;;  %v5212_v10 = vadd.f32 %v9117_v16, %v9116_v6  ;;  %v3593_v42 = vadd.f32 %v5283_v4, %v9120_v43 }
 0x4d1   :  { %5667 = vmatprep.mubr.msk.f32.mxu0 %vm1804_vm5, %v8781_v33  ;;  %v4145_v14 = vmul.f32 %v8781_v33, %v8781_v33  ;;  %v8796_v61 = vadd.f32 %v5632_v12, %v3713_v52  ;;  %v3728_v52 = vadd.f32 %v5357_v39, %v3583_v46 }
 0x4d2   :  { %v3852_v58 = vpop.f32.mrf.mxu1  ;;  %5668 = vmatmul.mubr.msk.f32.gmra.mxu0 %vm1804_vm5, %v8772_v17  ;;  %v3463_v1 = vadd.f32 %v5212_v10, %v9123_v62  ;;  %v3738_v22 = vadd.f32 %v5363_v60, %v3593_v42 }
 0x4d3   :  { %v8805_v47 = vadd.f32 %v3852_v58, %v3708_v53  ;;  %5707 = vmatprep.mubr.msk.f32.mxu1 %vm1804_vm5, %v4145_v14  ;;  %v4148_v38 = vmul.f32 %v8796_v61, %v8796_v61  ;;  %v3598_v53 = vadd.f32 %v5286_v24, %v9119_v51  ;;  %v9122_v58 = vld [vmem:[#allocation53_spill] sm:$0xff] }
 0x4d4   :  { %v5635_v37 = vpop.f32.mrf.mxu1  ;;  %5708 = vmatmul.mubr.msk.f32.gmra.mxu1 %vm1804_vm5, %v4146_v55  ;;  %v5289_v55 = vadd.f32 %v9122_v58, %v9121_v54  ;;  %v3608_v7 = vadd.f32 %v5292_v25, %v3463_v1 }
 0x4d5   :  { %5670 = vmatprep.mubr.msk.f32.mxu0 %vm1804_vm5, %v8805_v47  ;;  %v4147_v30 = vmul.f32 %v8805_v47, %v8805_v47  ;;  %v8820_v59 = vadd.f32 %v5635_v37, %v3723_v27  ;;  %v3743_v13 = vadd.f32 %v5366_v9, %v3598_v53 }
 0x4d6   :  { %v3862_v36 = vpop.f32.mrf.mxu1  ;;  %5671 = vmatmul.mubr.msk.f32.gmra.mxu0 %vm1804_vm5, %v8796_v61  ;;  %v3603_v39 = vadd.f32 %v5289_v55, %v9124_v63  ;;  %v3753_v35 = vadd.f32 %v5372_v49, %v3608_v7 }
 0x4d7   :  { %v8829_v28 = vadd.f32 %v3862_v36, %v3718_v21  ;;  %5710 = vmatprep.mubr.msk.f32.mxu1 %vm1804_vm5, %v4147_v30  ;;  %v4150_v44 = vmul.f32 %v8820_v59, %v8820_v59 }
 0x4d8   :  { %v5638_v3 = vpop.f32.mrf.mxu1  ;;  %5711 = vmatmul.mubr.msk.f32.gmra.mxu1 %vm1804_vm5, %v4148_v38  ;;  %v3748_v21 = vadd.f32 %v5369_v0, %v3603_v39 }
 0x4d9   :  { %5673 = vmatprep.mubr.msk.f32.mxu0 %vm1804_vm5, %v8829_v28  ;;  %v4149_v12 = vmul.f32 %v8829_v28, %v8829_v28  ;;  %v8846_v31 = vadd.f32 %v5638_v3, %v3733_v50 }
 0x4da   :  { %v3872_v14 = vpop.f32.mrf.mxu1  ;;  %5674 = vmatmul.mubr.msk.f32.gmra.mxu0 %vm1804_vm5, %v8820_v59 }
 0x4db   :  { %v8855_v5 = vadd.f32 %v3872_v14, %v3728_v52  ;;  %5713 = vmatprep.mubr.msk.f32.mxu1 %vm1804_vm5, %v4149_v12  ;;  %v4152_v56 = vmul.f32 %v8846_v31, %v8846_v31 }
 0x4dc   :  { %v5641_v34 = vpop.f32.mrf.mxu1  ;;  %5714 = vmatmul.mubr.msk.f32.gmra.mxu1 %vm1804_vm5, %v4150_v44 }
 0x4dd   :  { %5676 = vmatprep.mubr.msk.f32.mxu0 %vm1804_vm5, %v8855_v5  ;;  %v4151_v19 = vmul.f32 %v8855_v5, %v8855_v5  ;;  %v8865_v27 = vadd.f32 %v5641_v34, %v3743_v13 }
 0x4de   :  { %v3882_v37 = vpop.f32.mrf.mxu1  ;;  %5677 = vmatmul.mubr.msk.f32.gmra.mxu0 %vm1804_vm5, %v8846_v31 }
 0x4df   :  { %v8872_v8 = vadd.f32 %v3882_v37, %v3738_v22  ;;  %5716 = vmatprep.mubr.msk.f32.mxu1 %vm1804_vm5, %v4151_v19  ;;  %v4154_v18 = vmul.f32 %v8865_v27, %v8865_v27 }
 0x4e0   :  { %v5644_v32 = vpop.f32.mrf.mxu1  ;;  %5717 = vmatmul.mubr.msk.f32.gmra.mxu1 %vm1804_vm5, %v4152_v56 }
 0x4e1   :  { %5679 = vmatprep.mubr.msk.f32.mxu0 %vm1804_vm5, %v8872_v8  ;;  %v4153_v30 = vmul.f32 %v8872_v8, %v8872_v8  ;;  %v8880_v20 = vadd.f32 %v5644_v32, %v3753_v35 }
 0x4e2   :  { %v3892_v15 = vpop.f32.mrf.mxu1  ;;  %5680 = vmatmul.mubr.msk.f32.gmra.mxu0 %vm1804_vm5, %v8865_v27 }
 0x4e3   :  { %v8886_v11 = vadd.f32 %v3892_v15, %v3748_v21  ;;  %5719 = vmatprep.mubr.msk.f32.mxu1 %vm1804_vm5, %v4153_v30  ;;  %v4156_v36 = vmul.f32 %v8880_v20, %v8880_v20 }
 0x4e4   :  { %5720 = vmatmul.mubr.msk.f32.gmra.mxu1 %vm1804_vm5, %v4154_v18 }
 0x4e5   :  { %5682 = vmatprep.mubr.msk.f32.mxu0 %vm1804_vm5, %v8886_v11  ;;  %v4155_v24 = vmul.f32 %v8886_v11, %v8886_v11 }
 0x4e6   :  { %5683 = vmatmul.mubr.msk.f32.gmra.mxu0 %vm1804_vm5, %v8880_v20 }
 0x4e7   :  { %5722 = vmatprep.mubr.msk.f32.mxu1 %vm1804_vm5, %v4155_v24 }
 0x4e8   :  { %5723 = vmatmul.mubr.msk.f32.gmra.mxu1 %vm1804_vm5, %v4156_v36 }
 0x58a   :  { %v5663_v38 = vpop.f32.mrf.mxu0 }
 0x58b   :  { %v4104_v6 = vsel %vm1804_vm5, %v5663_v38, 0.0 }
 0x58c   :  { %v4024_v41 = vpop.f32.mrf.mxu0  ;;  %v5703_v46 = vpop.f32.mrf.mxu1 }
 0x58d   :  { %v4103_v2 = vsel %vm1804_vm5, %v4024_v41, 0.0  ;;  %v4351_v3 = vsel %vm1804_vm5, %v5703_v46, 0.0 }
 0x58e   :  { %v5666_v57 = vpop.f32.mrf.mxu0  ;;  %v4271_v4 = vpop.f32.mrf.mxu1  ;;  %v4105_v10 = vadd.f32 %v4104_v6, %v4103_v2 }
 0x58f   :  { %v4350_v16 = vsel %vm1804_vm5, %v4271_v4, 0.0  ;;  %v4108_v51 = vsel %vm1804_vm5, %v5666_v57, 0.0 }
 0x590   :  { %v4034_v9 = vpop.f32.mrf.mxu0  ;;  %v5706_v50 = vpop.f32.mrf.mxu1  ;;  %v4352_v60 = vadd.f32 %v4351_v3, %v4350_v16 }
 0x591   :  { %v4106_v45 = vsel %vm1804_vm5, %v4034_v9, 0.0  ;;  %v4355_v42 = vsel %vm1804_vm5, %v5706_v50, 0.0 }
 0x592   :  { %v4107_v29 = vadd.f32 %v4106_v45, %v4105_v10  ;;  %v5669_v52 = vpop.f32.mrf.mxu0  ;;  %v4281_v12 = vpop.f32.mrf.mxu1 }
 0x593   :  { %v4353_v53 = vsel %vm1804_vm5, %v4281_v12, 0.0  ;;  %v4112_v49 = vsel %vm1804_vm5, %v5669_v52, 0.0 }
 0x594   :  { %v4354_v25 = vadd.f32 %v4353_v53, %v4352_v60  ;;  %v4044_v14 = vpop.f32.mrf.mxu0  ;;  %v4109_v44 = vadd.f32 %v4108_v51, %v4107_v29  ;;  %v5709_v43 = vpop.f32.mrf.mxu1 }
 0x595   :  { %v4110_v54 = vsel %vm1804_vm5, %v4044_v14, 0.0  ;;  %v4359_v7 = vsel %vm1804_vm5, %v5709_v43, 0.0 }
 0x596   :  { %v4111_v58 = vadd.f32 %v4110_v54, %v4109_v44  ;;  %v5672_v55 = vpop.f32.mrf.mxu0  ;;  %v4291_v62 = vpop.f32.mrf.mxu1  ;;  %v4356_v1 = vadd.f32 %v4355_v42, %v4354_v25 }
 0x597   :  { %v4357_v13 = vsel %vm1804_vm5, %v4291_v62, 0.0  ;;  %v4116_v32 = vsel %vm1804_vm5, %v5672_v55, 0.0 }
 0x598   :  { %v4358_v34 = vadd.f32 %v4357_v13, %v4356_v1  ;;  %v4054_v0 = vpop.f32.mrf.mxu0  ;;  %v4113_v22 = vadd.f32 %v4112_v49, %v4111_v58  ;;  %v5712_v19 = vpop.f32.mrf.mxu1 }
 0x599   :  { %v4114_v37 = vsel %vm1804_vm5, %v4054_v0, 0.0  ;;  %v4363_v36 = vsel %vm1804_vm5, %v5712_v19, 0.0 }
 0x59a   :  { %v4115_v56 = vadd.f32 %v4114_v37, %v4113_v22  ;;  %v5675_v63 = vpop.f32.mrf.mxu0  ;;  %v4301_v39 = vpop.f32.mrf.mxu1  ;;  %v4360_v35 = vadd.f32 %v4359_v7, %v4358_v34 }
 0x59b   :  { %v4361_v21 = vsel %vm1804_vm5, %v4301_v39, 0.0  ;;  %v4120_v4 = vsel %vm1804_vm5, %v5675_v63, 0.0 }
 0x59c   :  { %v4362_v30 = vadd.f32 %v4361_v21, %v4360_v35  ;;  %v4064_v15 = vpop.f32.mrf.mxu0  ;;  %v4117_v18 = vadd.f32 %v4116_v32, %v4115_v56  ;;  %v5715_v24 = vpop.f32.mrf.mxu1 }
 0x59d   :  { %v4118_v38 = vsel %vm1804_vm5, %v4064_v15, 0.0  ;;  %v4367_v3 = vsel %vm1804_vm5, %v5715_v24, 0.0 }
 0x59e   :  { %v4119_v41 = vadd.f32 %v4118_v38, %v4117_v18  ;;  %v5678_v46 = vpop.f32.mrf.mxu0  ;;  %v4311_v2 = vpop.f32.mrf.mxu1  ;;  %v4364_v57 = vadd.f32 %v4363_v36, %v4362_v30 }
 0x59f   :  { %v4365_v6 = vsel %vm1804_vm5, %v4311_v2, 0.0  ;;  %v4124_v51 = vsel %vm1804_vm5, %v5678_v46, 0.0 }
 0x5a0   :  { %v4366_v16 = vadd.f32 %v4365_v6, %v4364_v57  ;;  %v4074_v10 = vpop.f32.mrf.mxu0  ;;  %v4121_v9 = vadd.f32 %v4120_v4, %v4119_v41  ;;  %v5718_v50 = vpop.f32.mrf.mxu1 }
 0x5a1   :  { %v4122_v45 = vsel %vm1804_vm5, %v4074_v10, 0.0  ;;  %v4371_v42 = vsel %vm1804_vm5, %v5718_v50, 0.0 }
 0x5a2   :  { %v4123_v60 = vadd.f32 %v4122_v45, %v4121_v9  ;;  %v5681_v29 = vpop.f32.mrf.mxu0  ;;  %v4321_v52 = vpop.f32.mrf.mxu1  ;;  %v4368_v12 = vadd.f32 %v4367_v3, %v4366_v16 }
 0x5a3   :  { %v4369_v53 = vsel %vm1804_vm5, %v4321_v52, 0.0  ;;  %v4128_v49 = vsel %vm1804_vm5, %v5681_v29, 0.0  ;;  %v4392_v52 = vld [vmem:[%s9025_s6] sm:$0x1] }
 0x5a4   :  { %v4370_v25 = vadd.f32 %v4369_v53, %v4368_v12  ;;  %v4084_v14 = vpop.f32.mrf.mxu0  ;;  %v4125_v44 = vadd.f32 %v4124_v51, %v4123_v60  ;;  %v5721_v43 = vpop.f32.mrf.mxu1  ;;  %v4394_v53 = vld [vmem:[%s9026_s7] sm:$0x1] }
 0x5a5   :  { %v4126_v54 = vsel %vm1804_vm5, %v4084_v14, 0.0  ;;  %v4375_v7 = vsel %vm1804_vm5, %v5721_v43, 0.0  ;;  %v9125_v14 = vld [vmem:[#allocation30_spill] sm:$0xff] }
 0x5a6   :  { %v4127_v58 = vadd.f32 %v4126_v54, %v4125_v44  ;;  %v5684_v55 = vpop.f32.mrf.mxu0  ;;  %v4331_v62 = vpop.f32.mrf.mxu1  ;;  %v4372_v1 = vadd.f32 %v4371_v42, %v4370_v25 }
 0x5a7   :  { %v4373_v13 = vsel %vm1804_vm5, %v4331_v62, 0.0  ;;  %v4132_v35 = vsel %vm1804_vm5, %v5684_v55, 0.0 }
 0x5a8   :  { %v4374_v34 = vadd.f32 %v4373_v13, %v4372_v1  ;;  %v4094_v0 = vpop.f32.mrf.mxu0  ;;  %v4129_v22 = vadd.f32 %v4128_v49, %v4127_v58  ;;  %v5724_v19 = vpop.f32.mrf.mxu1 }
 0x5a9   :  { %v4130_v37 = vsel %vm1804_vm5, %v4094_v0, 0.0  ;;  %v4379_v15 = vsel %vm1804_vm5, %v5724_v19, 0.0 }
 0x5aa   :  { %v4131_v56 = vadd.f32 %v4130_v37, %v4129_v22  ;;  %v4341_v63 = vpop.f32.mrf.mxu1  ;;  %v4376_v39 = vadd.f32 %v4375_v7, %v4374_v34 }
 0x5ab   :  { %v4377_v32 = vsel %vm1804_vm5, %v4341_v63, 0.0 }
 0x5ac   :  { %v4133_v21 = vadd.f32 %v4132_v35, %v4131_v56  ;;  %v4378_v30 = vadd.f32 %v4377_v32, %v4376_v39 }
 0x5ae   :  { %v4134_v18 = vrot.slane %v4133_v21, 4  ;;  %v4380_v24 = vadd.f32 %v4379_v15, %v4378_v30 }
 0x5b0   :  { %v4135_v36 = vadd.f32 %v4134_v18, %v4133_v21  ;;  %v4381_v38 = vrot.slane %v4380_v24, 4 }
 0x5b2   :  { %v4136_v41 = vrot.slane %v4135_v36, 2  ;;  %v4382_v46 = vadd.f32 %v4381_v38, %v4380_v24 }
 0x5b4   :  { %v4137_v2 = vadd.f32 %v4136_v41, %v4135_v36  ;;  %v4383_v57 = vrot.slane %v4382_v46, 2 }
 0x5b6   :  { %v4138_v4 = vrot.slane %v4137_v2, 1  ;;  %v4384_v6 = vadd.f32 %v4383_v57, %v4382_v46 }
 0x5b8   :  { %v4139_v16 = vadd.f32 %v4138_v4, %v4137_v2  ;;  %v4385_v10 = vrot.slane %v4384_v6, 1 }
 0x5ba   :  { %v4140_v9 = vmul.f32 0.0009765625, %v4139_v16  ;;  %v4386_v50 = vadd.f32 %v4385_v10, %v4384_v6 }
 0x5bc   :  { %v4388_v3 = vmul.f32 %v4140_v9, %v4140_v9  ;;  %v4387_v45 = vmul.f32 0.0009765625, %v4386_v50 }
 0x5be   :  { %v4389_v60 = vsub.f32 %v4387_v45, %v4388_v3 }
 0x5c0   :  { %v4390_v29 = vadd.f32 1e-05, %v4389_v60 }
 0x5c2   :  { %5731 = vrsqrt.f32 %v4390_v29 }
 0x5cf   :  { %v5732_v12 = vpop.eup %5731 }
 0x5d0   :  { %v4393_v51 = vmul.f32 %v5732_v12, %v4392_v52 }
 0x5d2   :  { %v4395_v25 = vmul.f32 %v4393_v51, %v4140_v9  ;;  %v4401_v44 = vrot.slane %v4393_v51, %v9125_v14 }
 0x5d4   :  { %v4396_v43 = vsub.f32 %v4394_v53, %v4395_v25  ;;  %v4403_v42 = vmul.f32 %v4401_v44, %v8736_v40  ;;  %v4404_v54 = vmul.f32 %v4401_v44, %v8732_v26  ;;  %v4405_v58 = vmul.f32 %v4401_v44, %v8755_v48 }
 0x5d5   :  { %v4406_v55 = vmul.f32 %v4401_v44, %v8748_v23  ;;  %v4407_v62 = vmul.f32 %v4401_v44, %v8781_v33  ;;  %v4408_v1 = vmul.f32 %v4401_v44, %v8772_v17  ;;  %v4409_v49 = vmul.f32 %v4401_v44, %v8805_v47 }
 0x5d6   :  { %v4410_v13 = vmul.f32 %v4401_v44, %v8796_v61  ;;  %v4411_v34 = vmul.f32 %v4401_v44, %v8829_v28  ;;  %v4412_v0 = vmul.f32 %v4401_v44, %v8820_v59  ;;  %v4413_v40 = vmul.f32 %v4401_v44, %v8855_v5 }
 0x5d7   :  { %v4414_v26 = vmul.f32 %v4401_v44, %v8846_v31  ;;  %v4423_v48 = vrot.slane %v4396_v43, %v9125_v14  ;;  %v4415_v23 = vmul.f32 %v4401_v44, %v8872_v8  ;;  %v4416_v33 = vmul.f32 %v4401_v44, %v8865_v27 }
 0x5d8   :  { %v4417_v17 = vmul.f32 %v4401_v44, %v8886_v11  ;;  %v4418_v47 = vmul.f32 %v4401_v44, %v8880_v20 }
 0x5d9   :  { %v4425_v22 = vadd.f32 %v4423_v48, %v4403_v42  ;;  %v4426_v61 = vadd.f32 %v4423_v48, %v4404_v54  ;;  %v4427_v19 = vadd.f32 %v4423_v48, %v4405_v58  ;;  %v4428_v28 = vadd.f32 %v4423_v48, %v4406_v55 }
 0x5da   :  { %v4429_v7 = vadd.f32 %v4423_v48, %v4407_v62  ;;  %v4430_v59 = vadd.f32 %v4423_v48, %v4408_v1  ;;  %v4431_v37 = vadd.f32 %v4423_v48, %v4409_v49  ;;  %v4432_v5 = vadd.f32 %v4423_v48, %v4410_v13 }
 0x5db   :  { %v4433_v56 = vadd.f32 %v4423_v48, %v4411_v34  ;;  %v4434_v31 = vadd.f32 %v4423_v48, %v4412_v0  ;;  %v4435_v63 = vadd.f32 %v4423_v48, %v4413_v40  ;;  %v4436_v39 = vadd.f32 %v4423_v48, %v4414_v26 }
 0x5dc   :  { %v4437_v35 = vadd.f32 %v4423_v48, %v4415_v23  ;;  %v4438_v8 = vadd.f32 %v4423_v48, %v4416_v33  ;;  %v4439_v32 = vadd.f32 %v4423_v48, %v4417_v17  ;;  %v4440_v27 = vadd.f32 %v4423_v48, %v4418_v47 }
 0x5dd   :  { %v4441_v21 = vmax.f32 %v4425_v22, 0.0  ;;  %v4442_v11 = vmax.f32 %v4426_v61, 0.0  ;;  %v4443_v30 = vmax.f32 %v4427_v19, 0.0  ;;  %v4444_v20 = vmax.f32 %v4428_v28, 0.0 }
 0x5de   :  { %v4445_v15 = vmax.f32 %v4429_v7, 0.0  ;;  %v4446_v18 = vmax.f32 %v4430_v59, 0.0  ;;  %v4447_v24 = vmax.f32 %v4431_v37, 0.0  ;;  %v4448_v36 = vmax.f32 %v4432_v5, 0.0 }
 0x5df   :  { %v4449_v38 = vmax.f32 %v4433_v56, 0.0  ;;  %v4450_v41 = vmax.f32 %v4434_v31, 0.0  ;;  %v4451_v46 = vmax.f32 %v4435_v63, 0.0  ;;  %v4452_v2 = vmax.f32 %v4436_v39, 0.0  ;;  %4457 = vst.msk [vmem:[%s9028_s9] sm:$0xff] %vm1804_vm5, %v4441_v21  ;;  %4458 = vst.msk [vmem:[%s9028_s9 + $0x8] sm:$0xff] %vm1804_vm5, %v4442_v11 }
 0x5e0   :  { %4459 = vst.msk [vmem:[%s9028_s9 + $0x10] sm:$0xff] %vm1804_vm5, %v4443_v30  ;;  %4460 = vst.msk [vmem:[%s9028_s9 + $0x18] sm:$0xff] %vm1804_vm5, %v4444_v20  ;;  %v4453_v57 = vmax.f32 %v4437_v35, 0.0  ;;  %v4454_v4 = vmax.f32 %v4438_v8, 0.0  ;;  %v4455_v6 = vmax.f32 %v4439_v32, 0.0  ;;  %v4456_v16 = vmax.f32 %v4440_v27, 0.0 }
 0x5e1   :  { %4461 = vst.msk [vmem:[%s9028_s9 + $0x20] sm:$0xff] %vm1804_vm5, %v4445_v15  ;;  %4462 = vst.msk [vmem:[%s9028_s9 + $0x28] sm:$0xff] %vm1804_vm5, %v4446_v18 }
 0x5e2   :  { %4463 = vst.msk [vmem:[%s9028_s9 + $0x30] sm:$0xff] %vm1804_vm5, %v4447_v24  ;;  %4464 = vst.msk [vmem:[%s9028_s9 + $0x38] sm:$0xff] %vm1804_vm5, %v4448_v36 }
 0x5e3   :  { %4465 = vst.msk [vmem:[%s9028_s9 + $0x40] sm:$0xff] %vm1804_vm5, %v4449_v38  ;;  %4466 = vst.msk [vmem:[%s9028_s9 + $0x48] sm:$0xff] %vm1804_vm5, %v4450_v41 }
 0x5e4   :  { %4467 = vst.msk [vmem:[%s9028_s9 + $0x50] sm:$0xff] %vm1804_vm5, %v4451_v46  ;;  %4468 = vst.msk [vmem:[%s9028_s9 + $0x58] sm:$0xff] %vm1804_vm5, %v4452_v2 }
 0x5e5   :  { %4469 = vst.msk [vmem:[%s9028_s9 + $0x60] sm:$0xff] %vm1804_vm5, %v4453_v57  ;;  %4470 = vst.msk [vmem:[%s9028_s9 + $0x68] sm:$0xff] %vm1804_vm5, %v4454_v4 }
 0x5e6   :  { %4471 = vst.msk [vmem:[%s9028_s9 + $0x70] sm:$0xff] %vm1804_vm5, %v4455_v6  ;;  %4472 = vst.msk [vmem:[%s9028_s9 + $0x78] sm:$0xff] %vm1804_vm5, %v4456_v16 }

</bundles_post_ra>
